<compile_context>
chip_gen: v7x
topology: tpu7x:2x2x1
jax: 0.10.0
libtpu: 0.0.40
codegen_flags: <defaults>
</compile_context>

<pallas_src>
import jax
import jax.numpy as jnp
from jax.experimental import pallas as pl

D_IN, D_HID = 512, 256
NUM_CTRL = 4          # number of control branches
CTRL_OUT = 3          # outputs per control branch
OUT_LANES = 128       # lane-dense padded output width


# -----------------------------------------------------------------------------
# Kernel: whole forward in one invocation.  All refs are full arrays in VMEM.
#   emb_ref : (N, 512) f32      img_ref : (N, 512) f32
#   w1c: (512, 1024) bf16   b1c: (1, 1024) f32      # 4 control L1, fused
#   w2c: (4, 256, 256) bf16 b2c: (4, 1, 256) f32    # control L2, per head
#   w3c: (4, 256, 128) bf16 b3c: (1, 128) f32       # control L3, head i -> lanes [3i,3i+3)
#   w1s: (512, 256) bf16    b1s: (1, 256) f32       # speed branch
#   w2s: (256, 256) bf16    b2s: (1, 256) f32
#   w3s: (256, 128) bf16    b3s: (1, 128) f32       # real output in lane 0
#   ctrl_ref: (N, 128) f32  spd_ref: (N, 128) f32
# -----------------------------------------------------------------------------
def _uncertainnet_kernel(emb_ref, img_ref,
                         w1c_ref, b1c_ref, w2c_ref, b2c_ref, w3c_ref, b3c_ref,
                         w1s_ref, b1s_ref, w2s_ref, b2s_ref, w3s_ref, b3s_ref,
                         ctrl_ref, spd_ref):
    emb = emb_ref[...].astype(jnp.bfloat16)
    img = img_ref[...].astype(jnp.bfloat16)

    # ---- control branches --------------------------------------------------
    # Layer 1 of all 4 heads in one MXU push: (N,512) @ (512,1024).
    h1 = jnp.dot(emb, w1c_ref[...], preferred_element_type=jnp.float32)
    h1 = jnp.maximum(h1 + b1c_ref[...], 0.0).astype(jnp.bfloat16)

    # Layers 2/3 per head, statically unrolled.  w3c[i] is zero except at lanes
    # [3i, 3i+3), so the sum of the four layer-3 results is already the
    # torch.cat(dim=1) layout in lanes 0:12.
    acc = None
    for i in range(NUM_CTRL):
        h1_i = h1[:, i * D_HID:(i + 1) * D_HID]
        h2_i = jnp.dot(h1_i, w2c_ref[i], preferred_element_type=jnp.float32)
        h2_i = jnp.maximum(h2_i + b2c_ref[i], 0.0).astype(jnp.bfloat16)
        o_i = jnp.dot(h2_i, w3c_ref[i], preferred_element_type=jnp.float32)
        acc = o_i if acc is None else acc + o_i
    ctrl_ref[...] = (acc + b3c_ref[...]).astype(ctrl_ref.dtype)

    # ---- speed branch --------------------------------------------------------
    hs = jnp.dot(img, w1s_ref[...], preferred_element_type=jnp.float32)
    hs = jnp.maximum(hs + b1s_ref[...], 0.0).astype(jnp.bfloat16)
    hs = jnp.dot(hs, w2s_ref[...], preferred_element_type=jnp.float32)
    hs = jnp.maximum(hs + b2s_ref[...], 0.0).astype(jnp.bfloat16)
    so = jnp.dot(hs, w3s_ref[...], preferred_element_type=jnp.float32)
    spd_ref[...] = (so + b3s_ref[...]).astype(spd_ref.dtype)


# -----------------------------------------------------------------------------
# Forward: a single grid-less pallas_call; inputs are passed through untouched.
# -----------------------------------------------------------------------------
def uncertainnet_forward(params, img_emb, emb):
    N = emb.shape[0]
    ctrl, spd = pl.pallas_call(
        _uncertainnet_kernel,
        out_shape=(
            jax.ShapeDtypeStruct((N, OUT_LANES), jnp.float32),
            jax.ShapeDtypeStruct((N, OUT_LANES), jnp.float32),
        ),
    )(emb, img_emb,
      params["w1c"], params["b1c"], params["w2c"], params["b2c"],
      params["w3c"], params["b3c"],
      params["w1s"], params["b1s"], params["w2s"], params["b2s"],
      params["w3s"], params["b3s"])

    log_var_control = ctrl[:, :NUM_CTRL * CTRL_OUT]   # (N, 12)
    log_var_speed = spd[:, :1]                        # (N, 1)
    return log_var_control, log_var_speed


# -----------------------------------------------------------------------------
# Deterministic synthetic parameters (PyTorch Linear default init range),
# packed / padded / cast to bf16 ONCE here, never repacked in the forward.
# -----------------------------------------------------------------------------
def init_params(key):
    def lin(k, din, dout):
        kw, kb = jax.random.split(k)
        bound = 1.0 / (din ** 0.5)
        w = jax.random.uniform(kw, (din, dout), jnp.float32, -bound, bound)
        b = jax.random.uniform(kb, (dout,), jnp.float32, -bound, bound)
        return w, b

    w1c = jnp.zeros((D_IN, NUM_CTRL * D_HID), jnp.float32)
    b1c = jnp.zeros((1, NUM_CTRL * D_HID), jnp.float32)
    w2c = jnp.zeros((NUM_CTRL, D_HID, D_HID), jnp.float32)
    b2c = jnp.zeros((NUM_CTRL, 1, D_HID), jnp.float32)
    w3c = jnp.zeros((NUM_CTRL, D_HID, OUT_LANES), jnp.float32)
    b3c = jnp.zeros((1, OUT_LANES), jnp.float32)

    for i in range(NUM_CTRL):
        key, k1, k2, k3 = jax.random.split(key, 4)
        wa, ba = lin(k1, D_IN, D_HID)
        wb, bb = lin(k2, D_HID, D_HID)
        wc, bc = lin(k3, D_HID, CTRL_OUT)
        w1c = w1c.at[:, i * D_HID:(i + 1) * D_HID].set(wa)
        b1c = b1c.at[0, i * D_HID:(i + 1) * D_HID].set(ba)
        w2c = w2c.at[i].set(wb)
        b2c = b2c.at[i, 0].set(bb)
        w3c = w3c.at[i, :, i * CTRL_OUT:(i + 1) * CTRL_OUT].set(wc)
        b3c = b3c.at[0, i * CTRL_OUT:(i + 1) * CTRL_OUT].set(bc)

    key, k1, k2, k3 = jax.random.split(key, 4)
    ws1, bs1 = lin(k1, D_IN, D_HID)
    ws2, bs2 = lin(k2, D_HID, D_HID)
    ws3, bs3 = lin(k3, D_HID, 1)
    w1s = ws1
    b1s = bs1[None, :]
    w2s = ws2
    b2s = bs2[None, :]
    w3s = jnp.zeros((D_HID, OUT_LANES), jnp.float32).at[:, :1].set(ws3)
    b3s = jnp.zeros((1, OUT_LANES), jnp.float32).at[0, :1].set(bs3)

    return {
        "w1c": w1c.astype(jnp.bfloat16), "b1c": b1c,
        "w2c": w2c.astype(jnp.bfloat16), "b2c": b2c,
        "w3c": w3c.astype(jnp.bfloat16), "b3c": b3c,
        "w1s": w1s.astype(jnp.bfloat16), "b1s": b1s,
        "w2s": w2s.astype(jnp.bfloat16), "b2s": b2s,
        "w3s": w3s.astype(jnp.bfloat16), "b3s": b3s,
    }


# -----------------------------------------------------------------------------
# Pure-JAX reference (same bf16-quantized weights/inputs, f32 math).
# -----------------------------------------------------------------------------
def _reference_forward(params, img_emb, emb):
    emb32 = emb.astype(jnp.bfloat16).astype(jnp.float32)
    img32 = img_emb.astype(jnp.bfloat16).astype(jnp.float32)
    f32 = lambda a: a.astype(jnp.float32)

    ctrl_heads = []
    for i in range(NUM_CTRL):
        w1 = f32(params["w1c"])[:, i * D_HID:(i + 1) * D_HID]
        b1 = params["b1c"][0, i * D_HID:(i + 1) * D_HID]
        h = jnp.maximum(emb32 @ w1 + b1, 0.0)
        h = jnp.maximum(h @ f32(params["w2c"][i]) + params["b2c"][i, 0], 0.0)
        w3 = f32(params["w3c"][i])[:, i * CTRL_OUT:(i + 1) * CTRL_OUT]
        b3 = params["b3c"][0, i * CTRL_OUT:(i + 1) * CTRL_OUT]
        ctrl_heads.append(h @ w3 + b3)
    ctrl = jnp.concatenate(ctrl_heads, axis=1)

    h = jnp.maximum(img32 @ f32(params["w1s"]) + params["b1s"][0], 0.0)
    h = jnp.maximum(h @ f32(params["w2s"]) + params["b2s"][0], 0.0)
    spd = (h @ f32(params["w3s"]) + params["b3s"][0])[:, :1]
    return ctrl, spd


if __name__ == "__main__":
    key = jax.random.PRNGKey(0)
    k_img, k_emb = jax.random.split(key)
    img_emb = jax.random.normal(k_img, (2, D_IN), jnp.float32)
    emb = jax.random.normal(k_emb, (2, D_IN), jnp.float32)

    params = init_params(jax.random.PRNGKey(42))

    fwd = jax.jit(uncertainnet_forward)
    log_var_control, log_var_speed = fwd(params, img_emb, emb)
    jax.block_until_ready((log_var_control, log_var_speed))

    assert log_var_control.shape == (2, 12)
    assert log_var_speed.shape == (2, 1)
    assert bool(jnp.all(jnp.isfinite(log_var_control)))
    assert bool(jnp.all(jnp.isfinite(log_var_speed)))

    ref_ctrl, ref_spd = _reference_forward(params, img_emb, emb)
    assert bool(jnp.all(jnp.abs(log_var_control - ref_ctrl) < 5e-2))
    assert bool(jnp.all(jnp.abs(log_var_speed - ref_spd) < 5e-2))

    print("KERNEL_OK")
</pallas_src>

<mosaic_0001>
module attributes {stable_mosaic.version = 11 : i64} {
  func.func @_uncertainnet_kernel(%arg0: memref<2x512xf32, #tpu.memory_space<vmem>>, %arg1: memref<2x512xf32, #tpu.memory_space<vmem>>, %arg2: memref<512x1024xbf16, #tpu.memory_space<vmem>>, %arg3: memref<1x1024xf32, #tpu.memory_space<vmem>>, %arg4: memref<4x256x256xbf16, #tpu.memory_space<vmem>>, %arg5: memref<4x1x256xf32, #tpu.memory_space<vmem>>, %arg6: memref<4x256x128xbf16, #tpu.memory_space<vmem>>, %arg7: memref<1x128xf32, #tpu.memory_space<vmem>>, %arg8: memref<512x256xbf16, #tpu.memory_space<vmem>>, %arg9: memref<1x256xf32, #tpu.memory_space<vmem>>, %arg10: memref<256x256xbf16, #tpu.memory_space<vmem>>, %arg11: memref<1x256xf32, #tpu.memory_space<vmem>>, %arg12: memref<256x128xbf16, #tpu.memory_space<vmem>>, %arg13: memref<1x128xf32, #tpu.memory_space<vmem>>, %arg14: memref<2x128xf32, #tpu.memory_space<vmem>>, %arg15: memref<2x128xf32, #tpu.memory_space<vmem>>) attributes {dimension_semantics = [], scalar_prefetch = 0 : i64, scratch_operands = 0 : i64, tpu.core_type = #tpu.core_type<tc>} {
    %c0 = arith.constant 0 : index
    %c0_0 = arith.constant 0 : index
    %0 = vector.load %arg0[%c0, %c0_0] : memref<2x512xf32, #tpu.memory_space<vmem>>, vector<2x512xf32>
    %1 = arith.truncf %0 : vector<2x512xf32> to vector<2x512xbf16>
    %c0_1 = arith.constant 0 : index
    %c0_2 = arith.constant 0 : index
    %2 = vector.load %arg1[%c0_1, %c0_2] : memref<2x512xf32, #tpu.memory_space<vmem>>, vector<2x512xf32>
    %3 = arith.truncf %2 : vector<2x512xf32> to vector<2x512xbf16>
    %c0_3 = arith.constant 0 : index
    %c0_4 = arith.constant 0 : index
    %4 = vector.load %arg2[%c0_3, %c0_4] : memref<512x1024xbf16, #tpu.memory_space<vmem>>, vector<512x1024xbf16>
    %cst = arith.constant dense<0.000000e+00> : vector<2x1024xf32>
    %5 = tpu.matmul %1, %4, %cst {dimension_numbers = #tpu.dot_dimension_numbers<[1], [0], [0], [1], [0, 0, 1, 1], [], []>} : vector<2x512xbf16>, vector<512x1024xbf16>, vector<2x1024xf32> -> vector<2x1024xf32>
    %c0_5 = arith.constant 0 : index
    %c0_6 = arith.constant 0 : index
    %6 = vector.load %arg3[%c0_5, %c0_6] : memref<1x1024xf32, #tpu.memory_space<vmem>>, vector<1x1024xf32>
    %7 = vector.broadcast %6 : vector<1x1024xf32> to vector<2x1024xf32>
    %8 = arith.addf %5, %7 : vector<2x1024xf32>
    %cst_7 = arith.constant 0.000000e+00 : f32
    %9 = vector.broadcast %cst_7 : f32 to vector<2x1024xf32>
    %10 = arith.maximumf %8, %9 : vector<2x1024xf32>
    %11 = arith.truncf %10 : vector<2x1024xf32> to vector<2x1024xbf16>
    %12 = vector.extract_strided_slice %11 {offsets = [0, 0], sizes = [2, 256], strides = [1, 1]} : vector<2x1024xbf16> to vector<2x256xbf16>
    %c0_8 = arith.constant 0 : index
    %c0_9 = arith.constant 0 : index
    %c0_10 = arith.constant 0 : index
    %13 = vector.load %arg4[%c0_8, %c0_9, %c0_10] : memref<4x256x256xbf16, #tpu.memory_space<vmem>>, vector<1x256x256xbf16>
    %14 = vector.shape_cast %13 : vector<1x256x256xbf16> to vector<256x256xbf16>
    %cst_11 = arith.constant dense<0.000000e+00> : vector<2x256xf32>
    %15 = tpu.matmul %12, %14, %cst_11 {dimension_numbers = #tpu.dot_dimension_numbers<[1], [0], [0], [1], [0, 0, 1, 1], [], []>} : vector<2x256xbf16>, vector<256x256xbf16>, vector<2x256xf32> -> vector<2x256xf32>
    %c0_12 = arith.constant 0 : index
    %c0_13 = arith.constant 0 : index
    %c0_14 = arith.constant 0 : index
    %16 = vector.load %arg5[%c0_12, %c0_13, %c0_14] : memref<4x1x256xf32, #tpu.memory_space<vmem>>, vector<1x1x256xf32>
    %17 = vector.shape_cast %16 : vector<1x1x256xf32> to vector<1x256xf32>
    %18 = vector.broadcast %17 : vector<1x256xf32> to vector<2x256xf32>
    %19 = arith.addf %15, %18 : vector<2x256xf32>
    %cst_15 = arith.constant 0.000000e+00 : f32
    %20 = vector.broadcast %cst_15 : f32 to vector<2x256xf32>
    %21 = arith.maximumf %19, %20 : vector<2x256xf32>
    %22 = arith.truncf %21 : vector<2x256xf32> to vector<2x256xbf16>
    %c0_16 = arith.constant 0 : index
    %c0_17 = arith.constant 0 : index
    %c0_18 = arith.constant 0 : index
    %23 = vector.load %arg6[%c0_16, %c0_17, %c0_18] : memref<4x256x128xbf16, #tpu.memory_space<vmem>>, vector<1x256x128xbf16>
    %24 = vector.shape_cast %23 : vector<1x256x128xbf16> to vector<256x128xbf16>
    %cst_19 = arith.constant dense<0.000000e+00> : vector<2x128xf32>
    %25 = tpu.matmul %22, %24, %cst_19 {dimension_numbers = #tpu.dot_dimension_numbers<[1], [0], [0], [1], [0, 0, 1, 1], [], []>} : vector<2x256xbf16>, vector<256x128xbf16>, vector<2x128xf32> -> vector<2x128xf32>
    %26 = vector.extract_strided_slice %11 {offsets = [0, 256], sizes = [2, 256], strides = [1, 1]} : vector<2x1024xbf16> to vector<2x256xbf16>
    %c1 = arith.constant 1 : index
    %c0_20 = arith.constant 0 : index
    %c0_21 = arith.constant 0 : index
    %27 = vector.load %arg4[%c1, %c0_20, %c0_21] : memref<4x256x256xbf16, #tpu.memory_space<vmem>>, vector<1x256x256xbf16>
    %28 = vector.shape_cast %27 : vector<1x256x256xbf16> to vector<256x256xbf16>
    %cst_22 = arith.constant dense<0.000000e+00> : vector<2x256xf32>
    %29 = tpu.matmul %26, %28, %cst_22 {dimension_numbers = #tpu.dot_dimension_numbers<[1], [0], [0], [1], [0, 0, 1, 1], [], []>} : vector<2x256xbf16>, vector<256x256xbf16>, vector<2x256xf32> -> vector<2x256xf32>
    %c1_23 = arith.constant 1 : index
    %c0_24 = arith.constant 0 : index
    %c0_25 = arith.constant 0 : index
    %30 = vector.load %arg5[%c1_23, %c0_24, %c0_25] : memref<4x1x256xf32, #tpu.memory_space<vmem>>, vector<1x1x256xf32>
    %31 = vector.shape_cast %30 : vector<1x1x256xf32> to vector<1x256xf32>
    %32 = vector.broadcast %31 : vector<1x256xf32> to vector<2x256xf32>
    %33 = arith.addf %29, %32 : vector<2x256xf32>
    %cst_26 = arith.constant 0.000000e+00 : f32
    %34 = vector.broadcast %cst_26 : f32 to vector<2x256xf32>
    %35 = arith.maximumf %33, %34 : vector<2x256xf32>
    %36 = arith.truncf %35 : vector<2x256xf32> to vector<2x256xbf16>
    %c1_27 = arith.constant 1 : index
    %c0_28 = arith.constant 0 : index
    %c0_29 = arith.constant 0 : index
    %37 = vector.load %arg6[%c1_27, %c0_28, %c0_29] : memref<4x256x128xbf16, #tpu.memory_space<vmem>>, vector<1x256x128xbf16>
    %38 = vector.shape_cast %37 : vector<1x256x128xbf16> to vector<256x128xbf16>
    %cst_30 = arith.constant dense<0.000000e+00> : vector<2x128xf32>
    %39 = tpu.matmul %36, %38, %cst_30 {dimension_numbers = #tpu.dot_dimension_numbers<[1], [0], [0], [1], [0, 0, 1, 1], [], []>} : vector<2x256xbf16>, vector<256x128xbf16>, vector<2x128xf32> -> vector<2x128xf32>
    %40 = arith.addf %25, %39 : vector<2x128xf32>
    %41 = vector.extract_strided_slice %11 {offsets = [0, 512], sizes = [2, 256], strides = [1, 1]} : vector<2x1024xbf16> to vector<2x256xbf16>
    %c2 = arith.constant 2 : index
    %c0_31 = arith.constant 0 : index
    %c0_32 = arith.constant 0 : index
    %42 = vector.load %arg4[%c2, %c0_31, %c0_32] : memref<4x256x256xbf16, #tpu.memory_space<vmem>>, vector<1x256x256xbf16>
    %43 = vector.shape_cast %42 : vector<1x256x256xbf16> to vector<256x256xbf16>
    %cst_33 = arith.constant dense<0.000000e+00> : vector<2x256xf32>
    %44 = tpu.matmul %41, %43, %cst_33 {dimension_numbers = #tpu.dot_dimension_numbers<[1], [0], [0], [1], [0, 0, 1, 1], [], []>} : vector<2x256xbf16>, vector<256x256xbf16>, vector<2x256xf32> -> vector<2x256xf32>
    %c2_34 = arith.constant 2 : index
    %c0_35 = arith.constant 0 : index
    %c0_36 = arith.constant 0 : index
    %45 = vector.load %arg5[%c2_34, %c0_35, %c0_36] : memref<4x1x256xf32, #tpu.memory_space<vmem>>, vector<1x1x256xf32>
    %46 = vector.shape_cast %45 : vector<1x1x256xf32> to vector<1x256xf32>
    %47 = vector.broadcast %46 : vector<1x256xf32> to vector<2x256xf32>
    %48 = arith.addf %44, %47 : vector<2x256xf32>
    %cst_37 = arith.constant 0.000000e+00 : f32
    %49 = vector.broadcast %cst_37 : f32 to vector<2x256xf32>
    %50 = arith.maximumf %48, %49 : vector<2x256xf32>
    %51 = arith.truncf %50 : vector<2x256xf32> to vector<2x256xbf16>
    %c2_38 = arith.constant 2 : index
    %c0_39 = arith.constant 0 : index
    %c0_40 = arith.constant 0 : index
    %52 = vector.load %arg6[%c2_38, %c0_39, %c0_40] : memref<4x256x128xbf16, #tpu.memory_space<vmem>>, vector<1x256x128xbf16>
    %53 = vector.shape_cast %52 : vector<1x256x128xbf16> to vector<256x128xbf16>
    %cst_41 = arith.constant dense<0.000000e+00> : vector<2x128xf32>
    %54 = tpu.matmul %51, %53, %cst_41 {dimension_numbers = #tpu.dot_dimension_numbers<[1], [0], [0], [1], [0, 0, 1, 1], [], []>} : vector<2x256xbf16>, vector<256x128xbf16>, vector<2x128xf32> -> vector<2x128xf32>
    %55 = arith.addf %40, %54 : vector<2x128xf32>
    %56 = vector.extract_strided_slice %11 {offsets = [0, 768], sizes = [2, 256], strides = [1, 1]} : vector<2x1024xbf16> to vector<2x256xbf16>
    %c3 = arith.constant 3 : index
    %c0_42 = arith.constant 0 : index
    %c0_43 = arith.constant 0 : index
    %57 = vector.load %arg4[%c3, %c0_42, %c0_43] : memref<4x256x256xbf16, #tpu.memory_space<vmem>>, vector<1x256x256xbf16>
    %58 = vector.shape_cast %57 : vector<1x256x256xbf16> to vector<256x256xbf16>
    %cst_44 = arith.constant dense<0.000000e+00> : vector<2x256xf32>
    %59 = tpu.matmul %56, %58, %cst_44 {dimension_numbers = #tpu.dot_dimension_numbers<[1], [0], [0], [1], [0, 0, 1, 1], [], []>} : vector<2x256xbf16>, vector<256x256xbf16>, vector<2x256xf32> -> vector<2x256xf32>
    %c3_45 = arith.constant 3 : index
    %c0_46 = arith.constant 0 : index
    %c0_47 = arith.constant 0 : index
    %60 = vector.load %arg5[%c3_45, %c0_46, %c0_47] : memref<4x1x256xf32, #tpu.memory_space<vmem>>, vector<1x1x256xf32>
    %61 = vector.shape_cast %60 : vector<1x1x256xf32> to vector<1x256xf32>
    %62 = vector.broadcast %61 : vector<1x256xf32> to vector<2x256xf32>
    %63 = arith.addf %59, %62 : vector<2x256xf32>
    %cst_48 = arith.constant 0.000000e+00 : f32
    %64 = vector.broadcast %cst_48 : f32 to vector<2x256xf32>
    %65 = arith.maximumf %63, %64 : vector<2x256xf32>
    %66 = arith.truncf %65 : vector<2x256xf32> to vector<2x256xbf16>
    %c3_49 = arith.constant 3 : index
    %c0_50 = arith.constant 0 : index
    %c0_51 = arith.constant 0 : index
    %67 = vector.load %arg6[%c3_49, %c0_50, %c0_51] : memref<4x256x128xbf16, #tpu.memory_space<vmem>>, vector<1x256x128xbf16>
    %68 = vector.shape_cast %67 : vector<1x256x128xbf16> to vector<256x128xbf16>
    %cst_52 = arith.constant dense<0.000000e+00> : vector<2x128xf32>
    %69 = tpu.matmul %66, %68, %cst_52 {dimension_numbers = #tpu.dot_dimension_numbers<[1], [0], [0], [1], [0, 0, 1, 1], [], []>} : vector<2x256xbf16>, vector<256x128xbf16>, vector<2x128xf32> -> vector<2x128xf32>
    %70 = arith.addf %55, %69 : vector<2x128xf32>
    %c0_53 = arith.constant 0 : index
    %c0_54 = arith.constant 0 : index
    %71 = vector.load %arg7[%c0_53, %c0_54] : memref<1x128xf32, #tpu.memory_space<vmem>>, vector<1x128xf32>
    %72 = vector.broadcast %71 : vector<1x128xf32> to vector<2x128xf32>
    %73 = arith.addf %70, %72 : vector<2x128xf32>
    %c0_55 = arith.constant 0 : index
    %c0_56 = arith.constant 0 : index
    %74 = vector.load %arg14[%c0_55, %c0_56] : memref<2x128xf32, #tpu.memory_space<vmem>>, vector<2x128xf32>
    tpu.vector_store %arg14[%c0_55, %c0_56], %73 {strides = array<i32>} : memref<2x128xf32, #tpu.memory_space<vmem>>, vector<2x128xf32>,
    %c0_57 = arith.constant 0 : index
    %c0_58 = arith.constant 0 : index
    %75 = vector.load %arg8[%c0_57, %c0_58] : memref<512x256xbf16, #tpu.memory_space<vmem>>, vector<512x256xbf16>
    %cst_59 = arith.constant dense<0.000000e+00> : vector<2x256xf32>
    %76 = tpu.matmul %3, %75, %cst_59 {dimension_numbers = #tpu.dot_dimension_numbers<[1], [0], [0], [1], [0, 0, 1, 1], [], []>} : vector<2x512xbf16>, vector<512x256xbf16>, vector<2x256xf32> -> vector<2x256xf32>
    %c0_60 = arith.constant 0 : index
    %c0_61 = arith.constant 0 : index
    %77 = vector.load %arg9[%c0_60, %c0_61] : memref<1x256xf32, #tpu.memory_space<vmem>>, vector<1x256xf32>
    %78 = vector.broadcast %77 : vector<1x256xf32> to vector<2x256xf32>
    %79 = arith.addf %76, %78 : vector<2x256xf32>
    %cst_62 = arith.constant 0.000000e+00 : f32
    %80 = vector.broadcast %cst_62 : f32 to vector<2x256xf32>
    %81 = arith.maximumf %79, %80 : vector<2x256xf32>
    %82 = arith.truncf %81 : vector<2x256xf32> to vector<2x256xbf16>
    %c0_63 = arith.constant 0 : index
    %c0_64 = arith.constant 0 : index
    %83 = vector.load %arg10[%c0_63, %c0_64] : memref<256x256xbf16, #tpu.memory_space<vmem>>, vector<256x256xbf16>
    %cst_65 = arith.constant dense<0.000000e+00> : vector<2x256xf32>
    %84 = tpu.matmul %82, %83, %cst_65 {dimension_numbers = #tpu.dot_dimension_numbers<[1], [0], [0], [1], [0, 0, 1, 1], [], []>} : vector<2x256xbf16>, vector<256x256xbf16>, vector<2x256xf32> -> vector<2x256xf32>
    %c0_66 = arith.constant 0 : index
    %c0_67 = arith.constant 0 : index
    %85 = vector.load %arg11[%c0_66, %c0_67] : memref<1x256xf32, #tpu.memory_space<vmem>>, vector<1x256xf32>
    %86 = vector.broadcast %85 : vector<1x256xf32> to vector<2x256xf32>
    %87 = arith.addf %84, %86 : vector<2x256xf32>
    %cst_68 = arith.constant 0.000000e+00 : f32
    %88 = vector.broadcast %cst_68 : f32 to vector<2x256xf32>
    %89 = arith.maximumf %87, %88 : vector<2x256xf32>
    %90 = arith.truncf %89 : vector<2x256xf32> to vector<2x256xbf16>
    %c0_69 = arith.constant 0 : index
    %c0_70 = arith.constant 0 : index
    %91 = vector.load %arg12[%c0_69, %c0_70] : memref<256x128xbf16, #tpu.memory_space<vmem>>, vector<256x128xbf16>
    %cst_71 = arith.constant dense<0.000000e+00> : vector<2x128xf32>
    %92 = tpu.matmul %90, %91, %cst_71 {dimension_numbers = #tpu.dot_dimension_numbers<[1], [0], [0], [1], [0, 0, 1, 1], [], []>} : vector<2x256xbf16>, vector<256x128xbf16>, vector<2x128xf32> -> vector<2x128xf32>
    %c0_72 = arith.constant 0 : index
    %c0_73 = arith.constant 0 : index
    %93 = vector.load %arg13[%c0_72, %c0_73] : memref<1x128xf32, #tpu.memory_space<vmem>>, vector<1x128xf32>
    %94 = vector.broadcast %93 : vector<1x128xf32> to vector<2x128xf32>
    %95 = arith.addf %92, %94 : vector<2x128xf32>
    %c0_74 = arith.constant 0 : index
    %c0_75 = arith.constant 0 : index
    %96 = vector.load %arg15[%c0_74, %c0_75] : memref<2x128xf32, #tpu.memory_space<vmem>>, vector<2x128xf32>
    tpu.vector_store %arg15[%c0_74, %c0_75], %95 {strides = array<i32>} : memref<2x128xf32, #tpu.memory_space<vmem>>, vector<2x128xf32>,
    return
  }
}

</mosaic_0001>

<bundles_post_ra>
// kernel: uncertainnet_forward.1
= control target key start
LH: loop header
LB: loop body
LE: loop exit
PB: predicated region body
PF: predicated region fallthrough
CT: control target
= control target key end

     0   :  { %21 = vsyncpa [#allocation3], 0  ;;  %s6604_s0 = inlined_call_operand.vmem [shape: f32[2,512], index: 0, kind: input, shape index: {}]   ;;  %s6605_s1 = inlined_call_operand.vmem [shape: f32[2,512], index: 1, kind: input, shape index: {}]   ;;  %s6606_s2 = inlined_call_operand.hbm [shape: bf16[512,1024], index: 2, kind: input, shape index: {}]   ;;  %s6607_s3 = inlined_call_operand.hbm [shape: f32[1,1024], index: 3, kind: input, shape index: {}]   ;;  %s6608_s4 = inlined_call_operand.hbm [shape: bf16[4,256,256], index: 4, kind: input, shape index: {}]   ;;  %s6609_s5 = inlined_call_operand.hbm [shape: f32[4,1,256], index: 5, kind: input, shape index: {}]   ;;  %s6610_s6 = inlined_call_operand.hbm [shape: bf16[4,256,128], index: 6, kind: input, shape index: {}]   ;;  %s6611_s7 = inlined_call_operand.hbm [shape: f32[1,128], index: 7, kind: input, shape index: {}]   ;;  %s6612_s8 = inlined_call_operand.hbm [shape: bf16[512,256], index: 8, kind: input, shape index: {}]   ;;  %s6613_s9 = inlined_call_operand.vmem [shape: f32[1,256], index: 9, kind: input, shape index: {}]   ;;  %s6614_s10 = inlined_call_operand.hbm [shape: bf16[256,256], index: 10, kind: input, shape index: {}]   ;;  %s6615_s11 = inlined_call_operand.hbm [shape: f32[1,256], index: 11, kind: input, shape index: {}]   ;;  %s6616_s12 = inlined_call_operand.hbm [shape: bf16[256,128], index: 12, kind: input, shape index: {}]   ;;  %s6617_s13 = inlined_call_operand.hbm [shape: f32[1,128], index: 13, kind: input, shape index: {}]   ;;  %s6618_s14 = inlined_call_operand.hbm [shape: f32[2,128], index: 14, kind: output, shape index: {0}]   ;;  %s6619_s15 = inlined_call_operand.vmem [shape: f32[2,128], index: 15, kind: output, shape index: {1}]  }
   0x1   :  { %22 = vsyncpa [#allocation6], 0 }
   0x2   :  { %23 = vsyncpa [#allocation9], 0 }
   0x3   :  { %24 = vsyncpa [#allocation12], 0 }
   0x4   :  { %25 = vsyncpa [#allocation15], 0 }
   0x5   :  { %26 = vsyncpa [#allocation18], 0 }
   0x6   :  { %27 = vsyncpa [#allocation4], 0  ;;  %s6205_s18 = smov [#allocation5]   ;;  %s6206_s20 = smov [#allocation8]  }
   0x7   :  { %s50_s19 = sshll.u32 %s6205_s18, 4  ;;  %s71_s21 = sshll.u32 %s6206_s20, 4  ;;  %s51_s19 = int_to_ptr.vmem [resolvable:$true] %s50_s19  ;;  %s72_s21 = int_to_ptr.vmem [resolvable:$true] %s71_s21 }
   0x8   :  { %s5927_s24 = scalar_lea.hbm %s6607_s3, 128 }
   0x9   :  { %p5928_p0 = scmp.ne.s32.totalorder %s6607_s3, %s5927_s24  ;;  %p5931_p1 = scmp.lt.u32.totalorder %s5927_s24, %s6607_s3 }
   0xb   :  { %p5933_p2 = pnand %p5931_p1, %p5928_p0 }
   0xd   :  { %5936 = shalt.err (!%p5933_p2)
}
   0xe   :  { %s5937_s29 = scalar_lea.vmem %s51_s19, 128  ;;  %p5942_p4 = scmp.lt.s32.totalorder %s51_s19, %s51_s19 }
   0xf   :  { %p5938_p3 = scmp.ne.s32.totalorder %s51_s19, %s5937_s29  ;;  %p5943_p5 = scmp.lt.s32.totalorder %s5937_s29, %s5937_s29 }
  0x11   :  { %p5944_p6 = por %p5943_p5, %p5942_p4 }
  0x13   :  { %p5945_p7 = pnand %p5944_p6, %p5938_p3 }
  0x15   :  { %5948 = shalt.err (!%p5945_p7)
}
  0x16   :  { %53 = dma.hbm_to_vmem [thread:$0]  %s6607_s3, 128, %s51_s19, [#allocation6]  }
  0x17   :  { %s5949_s20 = scalar_lea.hbm %s6609_s5, 128 }
  0x18   :  { %p5950_p8 = scmp.ne.s32.totalorder %s6609_s5, %s5949_s20  ;;  %p5953_p9 = scmp.lt.u32.totalorder %s5949_s20, %s6609_s5 }
  0x1a   :  { %p5955_p10 = pnand %p5953_p9, %p5950_p8 }
  0x1c   :  { %5958 = shalt.err (!%p5955_p10)
}
  0x1d   :  { %s5959_s26 = scalar_lea.vmem %s72_s21, 128  ;;  %p5964_p12 = scmp.lt.s32.totalorder %s72_s21, %s72_s21 }
  0x1e   :  { %p5960_p11 = scmp.ne.s32.totalorder %s72_s21, %s5959_s26  ;;  %p5965_p13 = scmp.lt.s32.totalorder %s5959_s26, %s5959_s26 }
  0x20   :  { %p5966_p0 = por %p5965_p13, %p5964_p12 }
  0x22   :  { %p5967_p1 = pnand %p5966_p0, %p5960_p11 }
  0x24   :  { %5970 = shalt.err (!%p5967_p1)
}
  0x25   :  { %s6207_s3 = smov 32   ;;  %s6208_s19 = smov 2  }
  0x26   :  { %77 = dma.hbm_to_vmem [thread:$0]  %s6609_s5, 128, %s72_s21, [#allocation9], %s6207_s3, %s6207_s3, %s6208_s19  }
  0x27   :  { %s6209_s29 = smov [#allocation11]   ;;  %s5971_s18 = scalar_lea.hbm %s6611_s7, 16 }
  0x28   :  { %s96_s30 = sshll.u32 %s6209_s29, 4  ;;  %p5972_p2 = scmp.ne.s32.totalorder %s6611_s7, %s5971_s18  ;;  %s97_s30 = int_to_ptr.vmem [resolvable:$true] %s96_s30 }
  0x29   :  { %p5975_p3 = scmp.lt.u32.totalorder %s5971_s18, %s6611_s7 }
  0x2b   :  { %p5977_p4 = pnand %p5975_p3, %p5972_p2 }
  0x2d   :  { %5980 = shalt.err (!%p5977_p4)
}
  0x2e   :  { %s5981_s25 = scalar_lea.vmem %s97_s30, 16  ;;  %s5985_s5 = scalar_lea.vmem %s97_s30, 32 }
  0x2f   :  { %p5982_p5 = scmp.ne.s32.totalorder %s97_s30, %s5981_s25  ;;  %p5986_p6 = scmp.lt.s32.totalorder %s97_s30, %s97_s30 }
  0x30   :  { %p5987_p7 = scmp.lt.s32.totalorder %s5985_s5, %s5981_s25 }
  0x32   :  { %p5988_p8 = por %p5987_p7, %p5986_p6 }
  0x34   :  { %p5989_p9 = pnand %p5988_p8, %p5982_p5 }
  0x36   :  { %5992 = shalt.err (!%p5989_p9)
}
  0x37   :  { %99 = dma.hbm_to_vmem [thread:$0]  %s6611_s7, 16, %s97_s30, [#allocation12]  }
  0x38   :  { %s6210_s19 = smov [#allocation14]   ;;  %s5993_s16 = scalar_lea.hbm %s6614_s10, 4096 }
  0x39   :  { %s119_s27 = sshll.u32 %s6210_s19, 4  ;;  %p5994_p10 = scmp.ne.s32.totalorder %s6614_s10, %s5993_s16  ;;  %s120_s27 = int_to_ptr.vmem [resolvable:$true] %s119_s27 }
  0x3a   :  { %p5997_p11 = scmp.lt.u32.totalorder %s5993_s16, %s6614_s10 }
  0x3c   :  { %p5999_p12 = pnand %p5997_p11, %p5994_p10 }
  0x3e   :  { %6002 = shalt.err (!%p5999_p12)
}
  0x3f   :  { %s6003_s23 = scalar_lea.vmem %s120_s27, 4096  ;;  %p6008_p0 = scmp.lt.s32.totalorder %s120_s27, %s120_s27 }
  0x40   :  { %p6004_p13 = scmp.ne.s32.totalorder %s120_s27, %s6003_s23  ;;  %p6009_p1 = scmp.lt.s32.totalorder %s6003_s23, %s6003_s23 }
  0x42   :  { %p6010_p2 = por %p6009_p1, %p6008_p0 }
  0x44   :  { %p6011_p3 = pnand %p6010_p2, %p6004_p13 }
  0x46   :  { %6014 = shalt.err (!%p6011_p3)
}
  0x47   :  { %s6211_s7 = smov 128   ;;  %s6212_s30 = smov 8  }
  0x48   :  { %125 = dma.hbm_to_vmem [thread:$0]  %s6614_s10, 4096, %s120_s27, [#allocation15], %s6211_s7, %s6211_s7, %s6212_s30  }
  0x49   :  { %s6213_s5 = smov [#allocation17]   ;;  %s6214_s26 = smov [#allocation2]  }
  0x4a   :  { %s141_s21 = sshll.u32 %s6213_s5, 4  ;;  %s37_s19 = sshll.u32 %s6214_s26, 4  ;;  %s142_s21 = int_to_ptr.vmem [resolvable:$true] %s141_s21  ;;  %s6358_s19 = int_to_ptr.vmem [resolvable:$true] %s37_s19 }
  0x4b   :  { %s6015_s16 = scalar_lea.hbm %s6616_s12, 2048 }
  0x4c   :  { %p6016_p4 = scmp.ne.s32.totalorder %s6616_s12, %s6015_s16  ;;  %p6019_p5 = scmp.lt.u32.totalorder %s6015_s16, %s6616_s12 }
  0x4e   :  { %p6021_p6 = pnand %p6019_p5, %p6016_p4 }
  0x50   :  { %6024 = shalt.err (!%p6021_p6)
}
  0x51   :  { %s6025_s10 = scalar_lea.vmem %s142_s21, 2048  ;;  %p6030_p8 = scmp.lt.s32.totalorder %s142_s21, %s142_s21 }
  0x52   :  { %p6026_p7 = scmp.ne.s32.totalorder %s142_s21, %s6025_s10  ;;  %p6031_p9 = scmp.lt.s32.totalorder %s6025_s10, %s6025_s10 }
  0x54   :  { %p6032_p10 = por %p6031_p9, %p6030_p8 }
  0x56   :  { %p6033_p11 = pnand %p6032_p10, %p6026_p7 }
  0x58   :  { %6036 = shalt.err (!%p6033_p11)
}
  0x59   :  { %s6215_s27 = smov 64   ;;  %s6216_s23 = smov 4  }
  0x5a   :  { %147 = dma.hbm_to_vmem [thread:$0]  %s6616_s12, 2048, %s142_s21, [#allocation18], %s6215_s27, %s6215_s27, %s6216_s23  }
  0x5b   :  { %s6037_s28 = scalar_lea.hbm %s6606_s2, 32768 }
  0x5c   :  { %p6038_p12 = scmp.ne.s32.totalorder %s6606_s2, %s6037_s28  ;;  %p6041_p13 = scmp.lt.u32.totalorder %s6037_s28, %s6606_s2 }
  0x5e   :  { %p6043_p0 = pnand %p6041_p13, %p6038_p12 }
  0x60   :  { %6046 = shalt.err (!%p6043_p0)
}
  0x61   :  { %s6047_s20 = scalar_lea.vmem %s6358_s19, 32768  ;;  %p6052_p2 = scmp.lt.s32.totalorder %s6358_s19, %s6358_s19 }
  0x62   :  { %p6048_p1 = scmp.ne.s32.totalorder %s6358_s19, %s6047_s20  ;;  %p6053_p3 = scmp.lt.s32.totalorder %s6047_s20, %s6047_s20 }
  0x64   :  { %p6054_p4 = por %p6053_p3, %p6052_p2 }
  0x66   :  { %p6055_p5 = pnand %p6054_p4, %p6048_p1 }
  0x68   :  { %6058 = shalt.err (!%p6055_p5)
}
  0x69   :  { %s6217_s12 = smov 512   ;;  %s6218_s10 = smov [#allocation7]  }
  0x6a   :  { %43 = dma.hbm_to_vmem [thread:$0]  %s6606_s2, 32768, %s6358_s19, [#allocation3], %s6217_s12, %s6217_s12, %s6207_s3  }
  0x6b   :  { %s59_s24 = sshll.u32 %s6218_s10, 4  ;;  %s6219_s25 = smov [#allocation10]   ;;  %s60_s24 = int_to_ptr.vmem [resolvable:$true] %s59_s24 }
  0x6c   :  { %s83_s5 = sshll.u32 %s6219_s25, 4  ;;  %s6059_s29 = scalar_lea.hbm %s6608_s4, 16384  ;;  %s84_s5 = int_to_ptr.vmem [resolvable:$true] %s83_s5 }
  0x6d   :  { %p6060_p6 = scmp.ne.s32.totalorder %s6608_s4, %s6059_s29  ;;  %p6063_p7 = scmp.lt.u32.totalorder %s6059_s29, %s6608_s4 }
  0x6f   :  { %p6065_p8 = pnand %p6063_p7, %p6060_p6 }
  0x71   :  { %6068 = shalt.err (!%p6065_p8)
}
  0x72   :  { %s6069_s2 = scalar_lea.vmem %s60_s24, 16384  ;;  %p6074_p10 = scmp.lt.s32.totalorder %s60_s24, %s60_s24 }
  0x73   :  { %p6070_p9 = scmp.ne.s32.totalorder %s60_s24, %s6069_s2  ;;  %p6075_p11 = scmp.lt.s32.totalorder %s6069_s2, %s6069_s2 }
  0x75   :  { %p6076_p12 = por %p6075_p11, %p6074_p10 }
  0x77   :  { %p6077_p13 = pnand %p6076_p12, %p6070_p9 }
  0x79   :  { %6080 = shalt.err (!%p6077_p13)
}
  0x7a   :  { %65 = dma.hbm_to_vmem [thread:$0]  %s6608_s4, 16384, %s60_s24, [#allocation6], %s6211_s7, %s6211_s7, %s6212_s30  }
  0x7b   :  { %s6081_s22 = scalar_lea.hbm %s6610_s6, 8192 }
  0x7c   :  { %p6082_p0 = scmp.ne.s32.totalorder %s6610_s6, %s6081_s22  ;;  %p6085_p1 = scmp.lt.u32.totalorder %s6081_s22, %s6610_s6 }
  0x7e   :  { %p6087_p2 = pnand %p6085_p1, %p6082_p0 }
  0x80   :  { %6090 = shalt.err (!%p6087_p2)
}
  0x81   :  { %s6091_s29 = scalar_lea.vmem %s84_s5, 8192  ;;  %p6096_p4 = scmp.lt.s32.totalorder %s84_s5, %s84_s5 }
  0x82   :  { %p6092_p3 = scmp.ne.s32.totalorder %s84_s5, %s6091_s29  ;;  %p6097_p5 = scmp.lt.s32.totalorder %s6091_s29, %s6091_s29 }
  0x84   :  { %p6098_p6 = por %p6097_p5, %p6096_p4 }
  0x86   :  { %p6099_p7 = pnand %p6098_p6, %p6092_p3 }
  0x88   :  { %6102 = shalt.err (!%p6099_p7)
}
  0x89   :  { %89 = dma.hbm_to_vmem [thread:$0]  %s6610_s6, 8192, %s84_s5, [#allocation9], %s6215_s27, %s6215_s27, %s6216_s23  }
  0x8a   :  { %s6220_s16 = smov [#allocation13]   ;;  %s6221_s18 = smov [#allocation16]  }
  0x8b   :  { %s105_s17 = sshll.u32 %s6220_s16, 4  ;;  %s132_s20 = sshll.u32 %s6221_s18, 4  ;;  %s106_s17 = int_to_ptr.vmem [resolvable:$true] %s105_s17  ;;  %s133_s20 = int_to_ptr.vmem [resolvable:$true] %s132_s20 }
  0x8c   :  { %s6103_s19 = scalar_lea.hbm %s6612_s8, 8192 }
  0x8d   :  { %p6104_p8 = scmp.ne.s32.totalorder %s6612_s8, %s6103_s19  ;;  %p6107_p9 = scmp.lt.u32.totalorder %s6103_s19, %s6612_s8 }
  0x8f   :  { %p6109_p10 = pnand %p6107_p9, %p6104_p8 }
  0x91   :  { %6112 = shalt.err (!%p6109_p10)
}
  0x92   :  { %s6113_s6 = scalar_lea.vmem %s106_s17, 8192  ;;  %p6118_p12 = scmp.lt.s32.totalorder %s106_s17, %s106_s17 }
  0x93   :  { %p6114_p11 = scmp.ne.s32.totalorder %s106_s17, %s6113_s6  ;;  %p6119_p13 = scmp.lt.s32.totalorder %s6113_s6, %s6113_s6 }
  0x95   :  { %p6120_p0 = por %p6119_p13, %p6118_p12 }
  0x97   :  { %p6121_p1 = pnand %p6120_p0, %p6114_p11 }
  0x99   :  { %6124 = shalt.err (!%p6121_p1)
}
  0x9a   :  { %111 = dma.hbm_to_vmem [thread:$0]  %s6612_s8, 8192, %s106_s17, [#allocation12], %s6211_s7, %s6211_s7, %s6212_s30  }
  0x9b   :  { %s6125_s26 = scalar_lea.hbm %s6615_s11, 32 }
  0x9c   :  { %p6126_p2 = scmp.ne.s32.totalorder %s6615_s11, %s6125_s26  ;;  %p6129_p3 = scmp.lt.u32.totalorder %s6125_s26, %s6615_s11 }
  0x9e   :  { %p6131_p4 = pnand %p6129_p3, %p6126_p2 }
  0xa0   :  { %6134 = shalt.err (!%p6131_p4)
}
  0xa1   :  { %s6135_s16 = scalar_lea.vmem %s133_s20, 32  ;;  %p6140_p6 = scmp.lt.s32.totalorder %s133_s20, %s133_s20 }
  0xa2   :  { %p6136_p5 = scmp.ne.s32.totalorder %s133_s20, %s6135_s16  ;;  %p6141_p7 = scmp.lt.s32.totalorder %s6135_s16, %s6135_s16 }
  0xa4   :  { %p6142_p8 = por %p6141_p7, %p6140_p6 }
  0xa6   :  { %p6143_p9 = pnand %p6142_p8, %p6136_p5 }
  0xa8   :  { %6146 = shalt.err (!%p6143_p9)
}
  0xa9   :  { %135 = dma.hbm_to_vmem [thread:$0]  %s6615_s11, 32, %s133_s20, [#allocation15]  }
  0xaa   :  { %s6222_s30 = smov [#allocation19]   ;;  %s6147_s3 = scalar_lea.hbm %s6617_s13, 16 }
  0xab   :  { %s154_s17 = sshll.u32 %s6222_s30, 4  ;;  %p6148_p10 = scmp.ne.s32.totalorder %s6617_s13, %s6147_s3  ;;  %s155_s17 = int_to_ptr.vmem [resolvable:$true] %s154_s17 }
  0xac   :  { %p6151_p11 = scmp.lt.u32.totalorder %s6147_s3, %s6617_s13 }
  0xae   :  { %p6153_p12 = pnand %p6151_p11, %p6148_p10 }
  0xb0   :  { %6156 = shalt.err (!%p6153_p12)
}
  0xb1   :  { %s6157_s10 = scalar_lea.vmem %s155_s17, 16  ;;  %s6161_s11 = scalar_lea.vmem %s155_s17, 32 }
  0xb2   :  { %p6158_p13 = scmp.ne.s32.totalorder %s155_s17, %s6157_s10  ;;  %p6162_p0 = scmp.lt.s32.totalorder %s155_s17, %s155_s17 }
  0xb3   :  { %p6163_p1 = scmp.lt.s32.totalorder %s6161_s11, %s6157_s10 }
  0xb5   :  { %p6164_p2 = por %p6163_p1, %p6162_p0 }
  0xb7   :  { %p6165_p3 = pnand %p6164_p2, %p6158_p13 }
  0xb9   :  { %6168 = shalt.err (!%p6165_p3)
}
  0xba   :  { %157 = dma.hbm_to_vmem [thread:$0]  %s6617_s13, 16, %s155_s17, [#allocation18]  }
  0xbb   :  { %6191 = dma.done.wait [#allocation3], 32768  }
  0xbc   :  { %6192 = vsyncadd [#allocation3], 4294934528 }
  0xbd   :  { %6193 = dma.done.wait [#allocation6], 16512  }
  0xbe   :  { %6194 = vsyncadd [#allocation6], 4294950784 }
  0xbf   :  { %6195 = dma.done.wait [#allocation9], 8320  }
  0xc0   :  { %6196 = vsyncadd [#allocation9], 4294958976 }
  0xc1   :  { %6197 = dma.done.wait [#allocation12], 8208  }
  0xc2   :  { %6198 = vsyncadd [#allocation12], 4294959088 }
  0xc3   :  { %6199 = dma.done.wait [#allocation15], 4128  }
  0xc4   :  { %6200 = vsyncadd [#allocation15], 4294963168 }
  0xc5   :  { %6201 = dma.done.wait [#allocation18], 2064  }
  0xc6   :  { %6202 = vsyncadd [#allocation18], 4294965232  ;;  %v246_v0 = vld [vmem:[#allocation2] sm:$0xff]  ;;  %v247_v2 = vld [vmem:[#allocation2 + $0x8] sm:$0xff]  ;;  %v6223_v32 = vmov 1983009808   ;;  %v198_v34 = vlaneseq }
  0xc7   :  { %v250_v1 = vld [vmem:[#allocation2 + $0x20] sm:$0xff]  ;;  %v251_v4 = vld [vmem:[#allocation2 + $0x28] sm:$0xff]  ;;  %v196_v33 = vunpack.c.l.s4 %v6223_v32  ;;  %v6470_v59 = vld [vmem:[%s6604_s0] sm:$0xff] }
  0xc8   :  { %v4788_v3 = vcombine.high %v246_v0, %v250_v1  ;;  %v4787_v5 = vcombine.low %v246_v0, %v250_v1  ;;  %v254_v6 = vld [vmem:[#allocation2 + $0x40] sm:$0xff]  ;;  %v4790_v8 = vcombine.high %v247_v2, %v251_v4  ;;  %v4789_v9 = vcombine.low %v247_v2, %v251_v4  ;;  %v255_v11 = vld [vmem:[#allocation2 + $0x48] sm:$0xff] }
  0xc9   :  { %v258_v7 = vld [vmem:[#allocation2 + $0x60] sm:$0xff]  ;;  %v259_v12 = vld [vmem:[#allocation2 + $0x68] sm:$0xff]  ;;  %v197_v43 = vunpack.c.0.s8 %v196_v33  ;;  %v6462_v44 = vshrl.u32 %v198_v34, 7 }
  0xca   :  { %v4796_v10 = vcombine.high %v254_v6, %v258_v7  ;;  %v262_v13 = vld [vmem:[#allocation2 + $0x80] sm:$0xff]  ;;  %1824 = vmatprep.subr.bf16.mxu0 %v4788_v3  ;;  %v4798_v14 = vcombine.high %v255_v11, %v259_v12  ;;  %v263_v16 = vld [vmem:[#allocation2 + $0x88] sm:$0xff]  ;;  %1906 = vmatprep.subr.bf16.mxu1 %v4790_v8  ;;  %v4795_v18 = vcombine.low %v254_v6, %v258_v7 }
  0xcb   :  { %v266_v15 = vld [vmem:[#allocation2 + $0xa0] sm:$0xff]  ;;  %v267_v17 = vld [vmem:[#allocation2 + $0xa8] sm:$0xff]  ;;  %1825 = vmatpush1.bf16.msra.mxu0 %v4787_v5  ;;  %1907 = vmatpush1.bf16.msra.mxu1 %v4789_v9  ;;  %v4797_v19 = vcombine.low %v255_v11, %v259_v12  ;;  %v6465_v53 = vsub.s32 %v197_v43, %v6462_v44 }
  0xcc   :  { %1826 = vmatprep.subr.bf16.mxu0 %v4796_v10  ;;  %v4804_v20 = vcombine.high %v262_v13, %v266_v15  ;;  %1908 = vmatprep.subr.bf16.mxu1 %v4798_v14  ;;  %v4806_v21 = vcombine.high %v263_v16, %v267_v17  ;;  %v270_v22 = vld [vmem:[#allocation2 + $0xc0] sm:$0xff]  ;;  %v271_v24 = vld [vmem:[#allocation2 + $0xc8] sm:$0xff]  ;;  %v4803_v26 = vcombine.low %v262_v13, %v266_v15 }
  0xcd   :  { %v274_v23 = vld [vmem:[#allocation2 + $0xe0] sm:$0xff]  ;;  %v275_v25 = vld [vmem:[#allocation2 + $0xe8] sm:$0xff]  ;;  %v4805_v27 = vcombine.low %v263_v16, %v267_v17  ;;  %v6474_v63 = vrot.slane %v6470_v59, %v6465_v53 }
  0xce   :  { %v4812_v28 = vcombine.high %v270_v22, %v274_v23  ;;  %v4814_v29 = vcombine.high %v271_v24, %v275_v25  ;;  %v278_v30 = vld [vmem:[#allocation2 + $0x100] sm:$0xff]  ;;  %v279_v35 = vld [vmem:[#allocation2 + $0x108] sm:$0xff]  ;;  %v4811_v37 = vcombine.low %v270_v22, %v274_v23  ;;  %v4813_v38 = vcombine.low %v271_v24, %v275_v25 }
  0xcf   :  { %1827 = vmatpush1.bf16.msra.mxu0 %v4795_v18  ;;  %1909 = vmatpush1.bf16.msra.mxu1 %v4797_v19  ;;  %v282_v31 = vld [vmem:[#allocation2 + $0x120] sm:$0xff]  ;;  %v283_v36 = vld [vmem:[#allocation2 + $0x128] sm:$0xff]  ;;  %v209_v3 = vcombine.high %v6474_v63, %v6474_v63 }
  0xd0   :  { %1828 = vmatprep.subr.bf16.mxu0 %v4804_v20  ;;  %1910 = vmatprep.subr.bf16.mxu1 %v4806_v21  ;;  %v4820_v39 = vcombine.high %v278_v30, %v282_v31  ;;  %v4822_v40 = vcombine.high %v279_v35, %v283_v36  ;;  %v286_v41 = vld [vmem:[#allocation2 + $0x140] sm:$0xff]  ;;  %v287_v45 = vld [vmem:[#allocation2 + $0x148] sm:$0xff]  ;;  %v4819_v47 = vcombine.low %v278_v30, %v282_v31 }
  0xd1   :  { %v290_v42 = vld [vmem:[#allocation2 + $0x160] sm:$0xff]  ;;  %v291_v46 = vld [vmem:[#allocation2 + $0x168] sm:$0xff]  ;;  %v4821_v48 = vcombine.low %v279_v35, %v283_v36  ;;  %v6478_v9 = vpack.c.bf16 %v209_v3, %v209_v3 }
  0xd2   :  { %v4828_v49 = vcombine.high %v286_v41, %v290_v42  ;;  %v4830_v50 = vcombine.high %v287_v45, %v291_v46  ;;  %v294_v51 = vld [vmem:[#allocation2 + $0x180] sm:$0xff]  ;;  %v295_v54 = vld [vmem:[#allocation2 + $0x188] sm:$0xff]  ;;  %v4827_v56 = vcombine.low %v286_v41, %v290_v42  ;;  %v4829_v57 = vcombine.low %v287_v45, %v291_v46 }
  0xd3   :  { %1829 = vmatpush1.bf16.msra.mxu0 %v4803_v26  ;;  %1911 = vmatpush1.bf16.msra.mxu1 %v4805_v27  ;;  %v298_v52 = vld [vmem:[#allocation2 + $0x1a0] sm:$0xff]  ;;  %v299_v55 = vld [vmem:[#allocation2 + $0x1a8] sm:$0xff] }
  0xd4   :  { %1830 = vmatprep.subr.bf16.mxu0 %v4812_v28  ;;  %1912 = vmatprep.subr.bf16.mxu1 %v4814_v29  ;;  %v4836_v58 = vcombine.high %v294_v51, %v298_v52  ;;  %v4838_v60 = vcombine.high %v295_v54, %v299_v55  ;;  %v302_v61 = vld [vmem:[#allocation2 + $0x1c0] sm:$0xff]  ;;  %v303_v0 = vld [vmem:[#allocation2 + $0x1c8] sm:$0xff]  ;;  %v4835_v2 = vcombine.low %v294_v51, %v298_v52 }
  0xd5   :  { %v306_v62 = vld [vmem:[#allocation2 + $0x1e0] sm:$0xff]  ;;  %v307_v1 = vld [vmem:[#allocation2 + $0x1e8] sm:$0xff]  ;;  %v4837_v4 = vcombine.low %v295_v54, %v299_v55  ;;  %1856 = vmatprep.mubr.bf16.mxu0 %v6478_v9  ;;  %1938 = vmatprep.mubr.bf16.mxu1 %v6478_v9 }
  0xd6   :  { %v4844_v5 = vcombine.high %v302_v61, %v306_v62  ;;  %v4846_v6 = vcombine.high %v303_v0, %v307_v1  ;;  %v310_v7 = vld [vmem:[#allocation2 + $0x200] sm:$0xff]  ;;  %v311_v10 = vld [vmem:[#allocation2 + $0x208] sm:$0xff]  ;;  %v4843_v12 = vcombine.low %v302_v61, %v306_v62  ;;  %v4845_v13 = vcombine.low %v303_v0, %v307_v1 }
  0xd7   :  { %1831 = vmatpush1.bf16.msra.mxu0 %v4811_v37  ;;  %1913 = vmatpush1.bf16.msra.mxu1 %v4813_v38  ;;  %v314_v8 = vld [vmem:[#allocation2 + $0x220] sm:$0xff]  ;;  %v315_v11 = vld [vmem:[#allocation2 + $0x228] sm:$0xff] }
  0xd8   :  { %1832 = vmatprep.subr.bf16.mxu0 %v4820_v39  ;;  %1914 = vmatprep.subr.bf16.mxu1 %v4822_v40  ;;  %v4852_v14 = vcombine.high %v310_v7, %v314_v8  ;;  %v4854_v15 = vcombine.high %v311_v10, %v315_v11  ;;  %v318_v16 = vld [vmem:[#allocation2 + $0x240] sm:$0xff]  ;;  %v319_v18 = vld [vmem:[#allocation2 + $0x248] sm:$0xff]  ;;  %v4851_v20 = vcombine.low %v310_v7, %v314_v8 }
  0xd9   :  { %v322_v17 = vld [vmem:[#allocation2 + $0x260] sm:$0xff]  ;;  %v323_v19 = vld [vmem:[#allocation2 + $0x268] sm:$0xff]  ;;  %v4853_v21 = vcombine.low %v311_v10, %v315_v11 }
  0xda   :  { %v4860_v22 = vcombine.high %v318_v16, %v322_v17  ;;  %v4862_v23 = vcombine.high %v319_v18, %v323_v19  ;;  %v326_v24 = vld [vmem:[#allocation2 + $0x280] sm:$0xff]  ;;  %v327_v26 = vld [vmem:[#allocation2 + $0x288] sm:$0xff]  ;;  %v4859_v28 = vcombine.low %v318_v16, %v322_v17  ;;  %v4861_v29 = vcombine.low %v319_v18, %v323_v19 }
  0xdb   :  { %1833 = vmatpush1.bf16.msra.mxu0 %v4819_v47  ;;  %1915 = vmatpush1.bf16.msra.mxu1 %v4821_v48  ;;  %v330_v25 = vld [vmem:[#allocation2 + $0x2a0] sm:$0xff]  ;;  %v331_v27 = vld [vmem:[#allocation2 + $0x2a8] sm:$0xff] }
  0xdc   :  { %1834 = vmatprep.subr.bf16.mxu0 %v4828_v49  ;;  %1916 = vmatprep.subr.bf16.mxu1 %v4830_v50  ;;  %v4868_v30 = vcombine.high %v326_v24, %v330_v25  ;;  %v4870_v31 = vcombine.high %v327_v26, %v331_v27  ;;  %v334_v32 = vld [vmem:[#allocation2 + $0x2c0] sm:$0xff]  ;;  %v335_v34 = vld [vmem:[#allocation2 + $0x2c8] sm:$0xff]  ;;  %v4867_v36 = vcombine.low %v326_v24, %v330_v25 }
  0xdd   :  { %v338_v33 = vld [vmem:[#allocation2 + $0x2e0] sm:$0xff]  ;;  %v339_v35 = vld [vmem:[#allocation2 + $0x2e8] sm:$0xff]  ;;  %v4869_v37 = vcombine.low %v327_v26, %v331_v27  ;;  %v6491_v27 = vpack.c.bf16 %v6474_v63, %v6474_v63 }
  0xde   :  { %v4876_v38 = vcombine.high %v334_v32, %v338_v33  ;;  %v4878_v39 = vcombine.high %v335_v34, %v339_v35  ;;  %v342_v40 = vld [vmem:[#allocation2 + $0x300] sm:$0xff]  ;;  %v343_v42 = vld [vmem:[#allocation2 + $0x308] sm:$0xff]  ;;  %v4875_v45 = vcombine.low %v334_v32, %v338_v33  ;;  %v4877_v46 = vcombine.low %v335_v34, %v339_v35 }
  0xdf   :  { %1835 = vmatpush1.bf16.msra.mxu0 %v4827_v56  ;;  %1917 = vmatpush1.bf16.msra.mxu1 %v4829_v57  ;;  %v346_v41 = vld [vmem:[#allocation2 + $0x320] sm:$0xff]  ;;  %v347_v43 = vld [vmem:[#allocation2 + $0x328] sm:$0xff] }
  0xe0   :  { %1836 = vmatprep.subr.bf16.mxu0 %v4836_v58  ;;  %1918 = vmatprep.subr.bf16.mxu1 %v4838_v60  ;;  %v4884_v47 = vcombine.high %v342_v40, %v346_v41  ;;  %v4886_v48 = vcombine.high %v343_v42, %v347_v43  ;;  %v350_v49 = vld [vmem:[#allocation2 + $0x340] sm:$0xff]  ;;  %v351_v51 = vld [vmem:[#allocation2 + $0x348] sm:$0xff]  ;;  %v4883_v54 = vcombine.low %v342_v40, %v346_v41 }
  0xe1   :  { %v354_v50 = vld [vmem:[#allocation2 + $0x360] sm:$0xff]  ;;  %v355_v52 = vld [vmem:[#allocation2 + $0x368] sm:$0xff]  ;;  %v4885_v55 = vcombine.low %v343_v42, %v347_v43 }
  0xe2   :  { %v4892_v56 = vcombine.high %v350_v49, %v354_v50  ;;  %v4894_v57 = vcombine.high %v351_v51, %v355_v52  ;;  %v358_v58 = vld [vmem:[#allocation2 + $0x380] sm:$0xff]  ;;  %v359_v61 = vld [vmem:[#allocation2 + $0x388] sm:$0xff]  ;;  %v4891_v0 = vcombine.low %v350_v49, %v354_v50  ;;  %v4893_v1 = vcombine.low %v351_v51, %v355_v52 }
  0xe3   :  { %1837 = vmatpush1.bf16.msra.mxu0 %v4835_v2  ;;  %1919 = vmatpush1.bf16.msra.mxu1 %v4837_v4  ;;  %v362_v60 = vld [vmem:[#allocation2 + $0x3a0] sm:$0xff]  ;;  %v363_v62 = vld [vmem:[#allocation2 + $0x3a8] sm:$0xff] }
  0xe4   :  { %1838 = vmatprep.subr.bf16.mxu0 %v4844_v5  ;;  %1920 = vmatprep.subr.bf16.mxu1 %v4846_v6  ;;  %v4900_v2 = vcombine.high %v358_v58, %v362_v60  ;;  %v4902_v3 = vcombine.high %v359_v61, %v363_v62  ;;  %v366_v4 = vld [vmem:[#allocation2 + $0x3c0] sm:$0xff]  ;;  %v194_v6 = vcombine.high %v6470_v59, %v6470_v59  ;;  %v367_v7 = vld [vmem:[#allocation2 + $0x3c8] sm:$0xff] }
  0xe5   :  { %v370_v5 = vld [vmem:[#allocation2 + $0x3e0] sm:$0xff]  ;;  %v371_v8 = vld [vmem:[#allocation2 + $0x3e8] sm:$0xff]  ;;  %v4899_v10 = vcombine.low %v358_v58, %v362_v60  ;;  %v4901_v11 = vcombine.low %v359_v61, %v363_v62 }
  0xe6   :  { %v4910_v16 = vcombine.high %v367_v7, %v371_v8  ;;  %v379_v17 = vld [vmem:[#allocation2 + $0x428] sm:$0xff]  ;;  %v6485_v18 = vrot.slane %v194_v6, %v6465_v53  ;;  %v4907_v19 = vcombine.low %v366_v4, %v370_v5  ;;  %v4909_v59 = vcombine.low %v367_v7, %v371_v8  ;;  %v394_v32 = vld [vmem:[#allocation2 + $0x4a0] sm:$0xff] }
  0xe7   :  { %1839 = vmatpush1.bf16.msra.mxu0 %v4843_v12  ;;  %1921 = vmatpush1.bf16.msra.mxu1 %v4845_v13  ;;  %v4908_v12 = vcombine.high %v366_v4, %v370_v5  ;;  %v374_v13 = vld [vmem:[#allocation2 + $0x400] sm:$0xff]  ;;  %v387_v25 = vld [vmem:[#allocation2 + $0x468] sm:$0xff] }
  0xe8   :  { %1840 = vmatprep.subr.bf16.mxu0 %v4852_v14  ;;  %1922 = vmatprep.subr.bf16.mxu1 %v4854_v15  ;;  %v378_v14 = vld [vmem:[#allocation2 + $0x420] sm:$0xff]  ;;  %v375_v15 = vld [vmem:[#allocation2 + $0x408] sm:$0xff]  ;;  %v210_v26 = vcombine.high %v6485_v18, %v6485_v18 }
  0xe9   :  { %v4918_v24 = vcombine.high %v375_v15, %v379_v17  ;;  %v391_v33 = vld [vmem:[#allocation2 + $0x488] sm:$0xff]  ;;  %v402_v40 = vld [vmem:[#allocation2 + $0x4e0] sm:$0xff] }
  0xea   :  { %v395_v35 = vld [vmem:[#allocation2 + $0x4a8] sm:$0xff]  ;;  %v410_v49 = vld [vmem:[#allocation2 + $0x520] sm:$0xff] }
  0xeb   :  { %1841 = vmatpush1.bf16.msra.mxu0 %v4851_v20  ;;  %1923 = vmatpush1.bf16.msra.mxu1 %v4853_v21  ;;  %v4916_v20 = vcombine.high %v374_v13, %v378_v14  ;;  %v382_v21 = vld [vmem:[#allocation2 + $0x440] sm:$0xff]  ;;  %v399_v41 = vld [vmem:[#allocation2 + $0x4c8] sm:$0xff]  ;;  %v4934_v42 = vcombine.high %v391_v33, %v395_v35 }
  0xec   :  { %1842 = vmatprep.subr.bf16.mxu0 %v4860_v22  ;;  %1924 = vmatprep.subr.bf16.mxu1 %v4862_v23  ;;  %v386_v22 = vld [vmem:[#allocation2 + $0x460] sm:$0xff]  ;;  %v383_v23 = vld [vmem:[#allocation2 + $0x448] sm:$0xff] }
  0xed   :  { %v4926_v34 = vcombine.high %v383_v23, %v387_v25  ;;  %v4923_v63 = vcombine.low %v382_v21, %v386_v22  ;;  %v403_v43 = vld [vmem:[#allocation2 + $0x4e8] sm:$0xff]  ;;  %v418_v58 = vld [vmem:[#allocation2 + $0x560] sm:$0xff] }
  0xee   :  { %v407_v50 = vld [vmem:[#allocation2 + $0x508] sm:$0xff]  ;;  %v4942_v51 = vcombine.high %v399_v41, %v403_v43  ;;  %v426_v4 = vld [vmem:[#allocation2 + $0x5a0] sm:$0xff] }
  0xef   :  { %1843 = vmatpush1.bf16.msra.mxu0 %v4859_v28  ;;  %1925 = vmatpush1.bf16.msra.mxu1 %v4861_v29  ;;  %v4915_v28 = vcombine.low %v374_v13, %v378_v14  ;;  %v4917_v29 = vcombine.low %v375_v15, %v379_v17  ;;  %v411_v52 = vld [vmem:[#allocation2 + $0x528] sm:$0xff]  ;;  %v434_v13 = vld [vmem:[#allocation2 + $0x5e0] sm:$0xff] }
  0xf0   :  { %1844 = vmatprep.subr.bf16.mxu0 %v4868_v30  ;;  %1926 = vmatprep.subr.bf16.mxu1 %v4870_v31  ;;  %v4924_v30 = vcombine.high %v382_v21, %v386_v22  ;;  %v390_v31 = vld [vmem:[#allocation2 + $0x480] sm:$0xff]  ;;  %v415_v60 = vld [vmem:[#allocation2 + $0x548] sm:$0xff]  ;;  %v4950_v61 = vcombine.high %v407_v50, %v411_v52 }
  0xf1   :  { %v419_v62 = vld [vmem:[#allocation2 + $0x568] sm:$0xff]  ;;  %v442_v21 = vld [vmem:[#allocation2 + $0x620] sm:$0xff] }
  0xf2   :  { %v423_v5 = vld [vmem:[#allocation2 + $0x588] sm:$0xff]  ;;  %v4958_v6 = vcombine.high %v415_v60, %v419_v62 }
  0xf3   :  { %1845 = vmatpush1.bf16.msra.mxu0 %v4867_v36  ;;  %1927 = vmatpush1.bf16.msra.mxu1 %v4869_v37  ;;  %v6493_v36 = vpack.c.bf16 %v210_v26, %v210_v26  ;;  %v4925_v37 = vcombine.low %v383_v23, %v387_v25  ;;  %v427_v7 = vld [vmem:[#allocation2 + $0x5a8] sm:$0xff] }
  0xf4   :  { %1846 = vmatprep.subr.bf16.mxu0 %v4876_v38  ;;  %1928 = vmatprep.subr.bf16.mxu1 %v4878_v39  ;;  %v4932_v38 = vcombine.high %v390_v31, %v394_v32  ;;  %v398_v39 = vld [vmem:[#allocation2 + $0x4c0] sm:$0xff]  ;;  %v431_v14 = vld [vmem:[#allocation2 + $0x5c8] sm:$0xff]  ;;  %v4966_v15 = vcombine.high %v423_v5, %v427_v7 }
  0xf5   :  { %v439_v22 = vld [vmem:[#allocation2 + $0x608] sm:$0xff] }
  0xf7   :  { %1847 = vmatpush1.bf16.msra.mxu0 %v4875_v45  ;;  %1929 = vmatpush1.bf16.msra.mxu1 %v4877_v46  ;;  %v4931_v45 = vcombine.low %v390_v31, %v394_v32  ;;  %v4933_v46 = vcombine.low %v391_v33, %v395_v35  ;;  %v447_v31 = vld [vmem:[#allocation2 + $0x648] sm:$0xff] }
  0xf8   :  { %1848 = vmatprep.subr.bf16.mxu0 %v4884_v47  ;;  %1930 = vmatprep.subr.bf16.mxu1 %v4886_v48  ;;  %v4940_v47 = vcombine.high %v398_v39, %v402_v40  ;;  %v406_v48 = vld [vmem:[#allocation2 + $0x500] sm:$0xff]  ;;  %v451_v33 = vld [vmem:[#allocation2 + $0x668] sm:$0xff] }
  0xfb   :  { %1849 = vmatpush1.bf16.msra.mxu0 %v4883_v54  ;;  %1931 = vmatpush1.bf16.msra.mxu1 %v4885_v55  ;;  %v4939_v54 = vcombine.low %v398_v39, %v402_v40  ;;  %v4941_v55 = vcombine.low %v399_v41, %v403_v43  ;;  %v455_v39 = vld [vmem:[#allocation2 + $0x688] sm:$0xff]  ;;  %v4990_v40 = vcombine.high %v447_v31, %v451_v33 }
  0xfc   :  { %1850 = vmatprep.subr.bf16.mxu0 %v4892_v56  ;;  %1932 = vmatprep.subr.bf16.mxu1 %v4894_v57  ;;  %v4948_v56 = vcombine.high %v406_v48, %v410_v49  ;;  %v414_v57 = vld [vmem:[#allocation2 + $0x540] sm:$0xff]  ;;  %v459_v41 = vld [vmem:[#allocation2 + $0x6a8] sm:$0xff]  ;;  %v4989_v43 = vcombine.low %v447_v31, %v451_v33  ;;  %v252_v31 = vld [vmem:[#allocation2 + $0x30] sm:$0xff] }
  0xfd   :  { %v4955_v8 = vcombine.low %v414_v57, %v418_v58 }
  0xff   :  { %1851 = vmatpush1.bf16.msra.mxu0 %v4891_v0  ;;  %1933 = vmatpush1.bf16.msra.mxu1 %v4893_v1  ;;  %v4947_v0 = vcombine.low %v406_v48, %v410_v49  ;;  %v4949_v1 = vcombine.low %v407_v50, %v411_v52  ;;  %v463_v48 = vld [vmem:[#allocation2 + $0x6c8] sm:$0xff]  ;;  %v4998_v49 = vcombine.high %v455_v39, %v459_v41 }
 0x100   :  { %1852 = vmatprep.subr.bf16.mxu0 %v4900_v2  ;;  %1934 = vmatprep.subr.bf16.mxu1 %v4902_v3  ;;  %v4956_v2 = vcombine.high %v414_v57, %v418_v58  ;;  %v422_v3 = vld [vmem:[#allocation2 + $0x580] sm:$0xff]  ;;  %v467_v50 = vld [vmem:[#allocation2 + $0x6e8] sm:$0xff]  ;;  %v4997_v52 = vcombine.low %v455_v39, %v459_v41  ;;  %v260_v39 = vld [vmem:[#allocation2 + $0x70] sm:$0xff] }
 0x101   :  { %v4963_v17 = vcombine.low %v422_v3, %v426_v4  ;;  %v471_v57 = vld [vmem:[#allocation2 + $0x708] sm:$0xff]  ;;  %v5006_v58 = vcombine.high %v463_v48, %v467_v50 }
 0x103   :  { %1853 = vmatpush1.bf16.msra.mxu0 %v4899_v10  ;;  %1935 = vmatpush1.bf16.msra.mxu1 %v4901_v11  ;;  %v4957_v10 = vcombine.low %v415_v60, %v419_v62  ;;  %v4964_v11 = vcombine.high %v422_v3, %v426_v4  ;;  %v475_v60 = vld [vmem:[#allocation2 + $0x728] sm:$0xff]  ;;  %v5005_v62 = vcombine.low %v463_v48, %v467_v50  ;;  %v268_v48 = vld [vmem:[#allocation2 + $0xb0] sm:$0xff] }
 0x104   :  { %1854 = vmatprep.subr.bf16.mxu0 %v4908_v12  ;;  %1936 = vmatprep.subr.bf16.mxu1 %v4910_v16  ;;  %v430_v12 = vld [vmem:[#allocation2 + $0x5c0] sm:$0xff]  ;;  %v435_v16 = vld [vmem:[#allocation2 + $0x5e8] sm:$0xff]  ;;  %v5014_v4 = vcombine.high %v471_v57, %v475_v60 }
 0x105   :  { %v4974_v23 = vcombine.high %v431_v14, %v435_v16  ;;  %v4971_v25 = vcombine.low %v430_v12, %v434_v13  ;;  %v4973_v26 = vcombine.low %v431_v14, %v435_v16  ;;  %v479_v3 = vld [vmem:[#allocation2 + $0x748] sm:$0xff] }
 0x106   :  { %v491_v14 = vld [vmem:[#allocation2 + $0x7a8] sm:$0xff] }
 0x107   :  { %1855 = vmatpush1.bf16.msra.mxu0 %v4907_v19  ;;  %1937 = vmatpush1.bf16.msra.mxu1 %v4909_v59  ;;  %v4965_v19 = vcombine.low %v423_v5, %v427_v7  ;;  %v4972_v59 = vcombine.high %v430_v12, %v434_v13  ;;  %v483_v5 = vld [vmem:[#allocation2 + $0x768] sm:$0xff]  ;;  %v5013_v7 = vcombine.low %v471_v57, %v475_v60  ;;  %v277_v57 = vld [vmem:[#allocation2 + $0xf8] sm:$0xff] }
 0x108   :  { %1865 = vmatprep.subr.bf16.mxu0 %v4916_v20  ;;  %1947 = vmatprep.subr.bf16.mxu1 %v4918_v24  ;;  %v438_v20 = vld [vmem:[#allocation2 + $0x600] sm:$0xff]  ;;  %v443_v24 = vld [vmem:[#allocation2 + $0x628] sm:$0xff]  ;;  %v5022_v13 = vcombine.high %v479_v3, %v483_v5  ;;  %v5021_v16 = vcombine.low %v479_v3, %v483_v5  ;;  %v285_v3 = vld [vmem:[#allocation2 + $0x138] sm:$0xff] }
 0x109   :  { %v4982_v32 = vcombine.high %v439_v22, %v443_v24  ;;  %v4981_v35 = vcombine.low %v439_v22, %v443_v24  ;;  %v487_v12 = vld [vmem:[#allocation2 + $0x788] sm:$0xff] }
 0x10a   :  { %1857 = vmatmul.mubr.bf16.vlgmr.msra.gmra.mrb[0].mxu0 %v6491_v27  ;;  %1939 = vmatmul.mubr.bf16.vlgmr.msra.gmra.mrb[0].mxu1 %v6491_v27  ;;  %v499_v22 = vld [vmem:[#allocation2 + $0x7e8] sm:$0xff]  ;;  %v5029_v24 = vcombine.low %v487_v12, %v491_v14 }
 0x10b   :  { %1866 = vmatpush1.bf16.msra.mxu0 %v4915_v28  ;;  %1948 = vmatpush1.bf16.msra.mxu1 %v4917_v29  ;;  %v4980_v28 = vcombine.high %v438_v20, %v442_v21  ;;  %v446_v29 = vld [vmem:[#allocation2 + $0x640] sm:$0xff] }
 0x10c   :  { %1867 = vmatprep.subr.bf16.mxu0 %v4924_v30  ;;  %1949 = vmatprep.subr.bf16.mxu1 %v4926_v34  ;;  %v450_v30 = vld [vmem:[#allocation2 + $0x660] sm:$0xff]  ;;  %v4979_v34 = vcombine.low %v438_v20, %v442_v21  ;;  %v495_v20 = vld [vmem:[#allocation2 + $0x7c8] sm:$0xff]  ;;  %v5030_v21 = vcombine.high %v487_v12, %v491_v14  ;;  %v297_v14 = vld [vmem:[#allocation2 + $0x198] sm:$0xff] }
 0x10d   :  { %1897 = vmatprep.mubr.bf16.mxu0 %v6493_v36  ;;  %1979 = vmatprep.mubr.bf16.mxu1 %v6493_v36  ;;  %v5037_v33 = vcombine.low %v495_v20, %v499_v22 }
 0x10f   :  { %1868 = vmatpush1.bf16.msra.mxu0 %v4923_v63  ;;  %1950 = vmatpush1.bf16.msra.mxu1 %v4925_v37  ;;  %v4988_v63 = vcombine.high %v446_v29, %v450_v30  ;;  %v454_v37 = vld [vmem:[#allocation2 + $0x680] sm:$0xff] }
 0x110   :  { %1869 = vmatprep.subr.bf16.mxu0 %v4932_v38  ;;  %1951 = vmatprep.subr.bf16.mxu1 %v4934_v42  ;;  %v458_v38 = vld [vmem:[#allocation2 + $0x6a0] sm:$0xff]  ;;  %v4987_v42 = vcombine.low %v446_v29, %v450_v30  ;;  %v248_v29 = vld [vmem:[#allocation2 + $0x10] sm:$0xff]  ;;  %v5038_v30 = vcombine.high %v495_v20, %v499_v22  ;;  %v305_v22 = vld [vmem:[#allocation2 + $0x1d8] sm:$0xff] }
 0x111   :  { %v4791_v41 = vcombine.low %v248_v29, %v252_v31 }
 0x113   :  { %1870 = vmatpush1.bf16.msra.mxu0 %v4931_v45  ;;  %1952 = vmatpush1.bf16.msra.mxu1 %v4933_v46  ;;  %v4996_v45 = vcombine.high %v454_v37, %v458_v38  ;;  %v462_v46 = vld [vmem:[#allocation2 + $0x6c0] sm:$0xff] }
 0x114   :  { %1871 = vmatprep.subr.bf16.mxu0 %v4940_v47  ;;  %1953 = vmatprep.subr.bf16.mxu1 %v4942_v51  ;;  %v466_v47 = vld [vmem:[#allocation2 + $0x6e0] sm:$0xff]  ;;  %v4995_v51 = vcombine.low %v454_v37, %v458_v38  ;;  %v256_v37 = vld [vmem:[#allocation2 + $0x50] sm:$0xff] }
 0x115   :  { %v4799_v50 = vcombine.low %v256_v37, %v260_v39 }
 0x117   :  { %1872 = vmatpush1.bf16.msra.mxu0 %v4939_v54  ;;  %1954 = vmatpush1.bf16.msra.mxu1 %v4941_v55  ;;  %v5004_v54 = vcombine.high %v462_v46, %v466_v47  ;;  %v470_v55 = vld [vmem:[#allocation2 + $0x700] sm:$0xff] }
 0x118   :  { %1873 = vmatprep.subr.bf16.mxu0 %v4948_v56  ;;  %1955 = vmatprep.subr.bf16.mxu1 %v4950_v61  ;;  %v474_v56 = vld [vmem:[#allocation2 + $0x720] sm:$0xff]  ;;  %v5003_v61 = vcombine.low %v462_v46, %v466_v47  ;;  %v4800_v46 = vcombine.high %v256_v37, %v260_v39  ;;  %v264_v47 = vld [vmem:[#allocation2 + $0x90] sm:$0xff]  ;;  %v321_v39 = vld [vmem:[#allocation2 + $0x258] sm:$0xff] }
 0x11b   :  { %1874 = vmatpush1.bf16.msra.mxu0 %v4947_v0  ;;  %1956 = vmatpush1.bf16.msra.mxu1 %v4949_v1  ;;  %v5012_v0 = vcombine.high %v470_v55, %v474_v56  ;;  %v478_v1 = vld [vmem:[#allocation2 + $0x740] sm:$0xff] }
 0x11c   :  { %1875 = vmatprep.subr.bf16.mxu0 %v4956_v2  ;;  %1957 = vmatprep.subr.bf16.mxu1 %v4958_v6  ;;  %v482_v2 = vld [vmem:[#allocation2 + $0x760] sm:$0xff]  ;;  %v5011_v6 = vcombine.low %v470_v55, %v474_v56  ;;  %v276_v55 = vld [vmem:[#allocation2 + $0xf0] sm:$0xff]  ;;  %v273_v56 = vld [vmem:[#allocation2 + $0xd8] sm:$0xff] }
 0x11d   :  { %v4817_v5 = vcombine.low %v273_v56, %v277_v57 }
 0x11f   :  { %1876 = vmatpush1.bf16.msra.mxu0 %v4955_v8  ;;  %1958 = vmatpush1.bf16.msra.mxu1 %v4957_v10  ;;  %v5020_v8 = vcombine.high %v478_v1, %v482_v2  ;;  %v486_v10 = vld [vmem:[#allocation2 + $0x780] sm:$0xff] }
 0x120   :  { %1877 = vmatprep.subr.bf16.mxu0 %v4964_v11  ;;  %1959 = vmatprep.subr.bf16.mxu1 %v4966_v15  ;;  %v490_v11 = vld [vmem:[#allocation2 + $0x7a0] sm:$0xff]  ;;  %v5019_v15 = vcombine.low %v478_v1, %v482_v2  ;;  %v284_v1 = vld [vmem:[#allocation2 + $0x130] sm:$0xff]  ;;  %v281_v2 = vld [vmem:[#allocation2 + $0x118] sm:$0xff] }
 0x123   :  { %1878 = vmatpush1.bf16.msra.mxu0 %v4963_v17  ;;  %1960 = vmatpush1.bf16.msra.mxu1 %v4965_v19  ;;  %v5028_v17 = vcombine.high %v486_v10, %v490_v11  ;;  %v494_v19 = vld [vmem:[#allocation2 + $0x7c0] sm:$0xff] }
 0x124   :  { %1879 = vmatprep.subr.bf16.mxu0 %v4972_v59  ;;  %1961 = vmatprep.subr.bf16.mxu1 %v4974_v23  ;;  %v498_v59 = vld [vmem:[#allocation2 + $0x7e0] sm:$0xff]  ;;  %v5027_v23 = vcombine.low %v486_v10, %v490_v11  ;;  %v4826_v10 = vcombine.high %v281_v2, %v285_v3  ;;  %v292_v11 = vld [vmem:[#allocation2 + $0x170] sm:$0xff] }
 0x127   :  { %1880 = vmatpush1.bf16.msra.mxu0 %v4971_v25  ;;  %1962 = vmatpush1.bf16.msra.mxu1 %v4973_v26  ;;  %v5036_v25 = vcombine.high %v494_v19, %v498_v59  ;;  %v249_v26 = vld [vmem:[#allocation2 + $0x18] sm:$0xff] }
 0x128   :  { %1881 = vmatprep.subr.bf16.mxu0 %v4980_v28  ;;  %1963 = vmatprep.subr.bf16.mxu1 %v4982_v32  ;;  %v253_v28 = vld [vmem:[#allocation2 + $0x38] sm:$0xff]  ;;  %v5035_v32 = vcombine.low %v494_v19, %v498_v59  ;;  %v300_v59 = vld [vmem:[#allocation2 + $0x1b0] sm:$0xff] }
 0x129   :  { %v4794_v38 = vcombine.high %v249_v26, %v253_v28 }
 0x12b   :  { %1882 = vmatpush1.bf16.msra.mxu0 %v4979_v34  ;;  %1964 = vmatpush1.bf16.msra.mxu1 %v4981_v35  ;;  %v257_v34 = vld [vmem:[#allocation2 + $0x58] sm:$0xff] }
 0x12c   :  { %1883 = vmatprep.subr.bf16.mxu0 %v4988_v63  ;;  %1965 = vmatprep.subr.bf16.mxu1 %v4990_v40  ;;  %v261_v35 = vld [vmem:[#allocation2 + $0x78] sm:$0xff]  ;;  %v4792_v63 = vcombine.high %v248_v29, %v252_v31  ;;  %v6501_v40 = vpack.c.bf16 %v6485_v18, %v6485_v18 }
 0x12d   :  { %v4801_v18 = vcombine.low %v257_v34, %v261_v35  ;;  %v313_v31 = vld [vmem:[#allocation2 + $0x218] sm:$0xff] }
 0x12f   :  { %1884 = vmatpush1.bf16.msra.mxu0 %v4987_v42  ;;  %1966 = vmatpush1.bf16.msra.mxu1 %v4989_v43  ;;  %v4793_v42 = vcombine.low %v249_v26, %v253_v28  ;;  %v265_v43 = vld [vmem:[#allocation2 + $0x98] sm:$0xff]  ;;  %v308_v28 = vld [vmem:[#allocation2 + $0x1f0] sm:$0xff] }
 0x130   :  { %1885 = vmatprep.subr.bf16.mxu0 %v4996_v45  ;;  %1967 = vmatprep.subr.bf16.mxu1 %v4998_v49  ;;  %v269_v45 = vld [vmem:[#allocation2 + $0xb8] sm:$0xff]  ;;  %v4802_v49 = vcombine.high %v257_v34, %v261_v35  ;;  %v312_v34 = vld [vmem:[#allocation2 + $0x210] sm:$0xff] }
 0x131   :  { %v4809_v60 = vcombine.low %v265_v43, %v269_v45 }
 0x133   :  { %1886 = vmatpush1.bf16.msra.mxu0 %v4995_v51  ;;  %1968 = vmatpush1.bf16.msra.mxu1 %v4997_v52  ;;  %v4808_v51 = vcombine.high %v264_v47, %v268_v48  ;;  %v4810_v52 = vcombine.high %v265_v43, %v269_v45  ;;  %v320_v43 = vld [vmem:[#allocation2 + $0x250] sm:$0xff] }
 0x134   :  { %1887 = vmatprep.subr.bf16.mxu0 %v5004_v54  ;;  %1969 = vmatprep.subr.bf16.mxu1 %v5006_v58  ;;  %v272_v54 = vld [vmem:[#allocation2 + $0xd0] sm:$0xff]  ;;  %v4807_v58 = vcombine.low %v264_v47, %v268_v48 }
 0x137   :  { %1888 = vmatpush1.bf16.msra.mxu0 %v5003_v61  ;;  %1970 = vmatpush1.bf16.msra.mxu1 %v5005_v62  ;;  %v4816_v61 = vcombine.high %v272_v54, %v276_v55  ;;  %v4818_v62 = vcombine.high %v273_v56, %v277_v57  ;;  %v337_v57 = vld [vmem:[#allocation2 + $0x2d8] sm:$0xff] }
 0x138   :  { %1889 = vmatprep.subr.bf16.mxu0 %v5012_v0  ;;  %1971 = vmatprep.subr.bf16.mxu1 %v5014_v4  ;;  %v280_v0 = vld [vmem:[#allocation2 + $0x110] sm:$0xff]  ;;  %v4815_v4 = vcombine.low %v272_v54, %v276_v55 }
 0x139   :  { %v4823_v12 = vcombine.low %v280_v0, %v284_v1  ;;  %v332_v54 = vld [vmem:[#allocation2 + $0x2b0] sm:$0xff] }
 0x13b   :  { %1890 = vmatpush1.bf16.msra.mxu0 %v5011_v6  ;;  %1972 = vmatpush1.bf16.msra.mxu1 %v5013_v7  ;;  %v289_v6 = vld [vmem:[#allocation2 + $0x158] sm:$0xff] }
 0x13c   :  { %1891 = vmatprep.subr.bf16.mxu0 %v5020_v8  ;;  %1973 = vmatprep.subr.bf16.mxu1 %v5022_v13  ;;  %v293_v7 = vld [vmem:[#allocation2 + $0x178] sm:$0xff]  ;;  %v288_v8 = vld [vmem:[#allocation2 + $0x150] sm:$0xff]  ;;  %v4825_v13 = vcombine.low %v281_v2, %v285_v3 }
 0x13d   :  { %v4834_v19 = vcombine.high %v289_v6, %v293_v7  ;;  %v4831_v20 = vcombine.low %v288_v8, %v292_v11  ;;  %v345_v3 = vld [vmem:[#allocation2 + $0x318] sm:$0xff] }
 0x13f   :  { %1892 = vmatpush1.bf16.msra.mxu0 %v5019_v15  ;;  %1974 = vmatpush1.bf16.msra.mxu1 %v5021_v16  ;;  %v301_v15 = vld [vmem:[#allocation2 + $0x1b8] sm:$0xff]  ;;  %v4832_v16 = vcombine.high %v288_v8, %v292_v11 }
 0x140   :  { %1893 = vmatprep.subr.bf16.mxu0 %v5028_v17  ;;  %1975 = vmatprep.subr.bf16.mxu1 %v5030_v21  ;;  %v296_v17 = vld [vmem:[#allocation2 + $0x190] sm:$0xff]  ;;  %v4833_v21 = vcombine.low %v289_v6, %v293_v7  ;;  %v4842_v26 = vcombine.high %v297_v14, %v301_v15  ;;  %v353_v11 = vld [vmem:[#allocation2 + $0x358] sm:$0xff] }
 0x141   :  { %v4839_v29 = vcombine.low %v296_v17, %v300_v59  ;;  %v344_v6 = vld [vmem:[#allocation2 + $0x310] sm:$0xff] }
 0x143   :  { %1894 = vmatpush1.bf16.msra.mxu0 %v5027_v23  ;;  %1976 = vmatpush1.bf16.msra.mxu1 %v5029_v24  ;;  %v309_v23 = vld [vmem:[#allocation2 + $0x1f8] sm:$0xff]  ;;  %v4840_v24 = vcombine.high %v296_v17, %v300_v59 }
 0x144   :  { %1895 = vmatprep.subr.bf16.mxu0 %v5036_v25  ;;  %1977 = vmatprep.subr.bf16.mxu1 %v5038_v30  ;;  %v304_v25 = vld [vmem:[#allocation2 + $0x1d0] sm:$0xff]  ;;  %v4841_v30 = vcombine.low %v297_v14, %v301_v15  ;;  %v4850_v35 = vcombine.high %v305_v22, %v309_v23  ;;  %v361_v59 = vld [vmem:[#allocation2 + $0x398] sm:$0xff] }
 0x145   :  { %v4847_v37 = vcombine.low %v304_v25, %v308_v28  ;;  %v352_v14 = vld [vmem:[#allocation2 + $0x350] sm:$0xff] }
 0x147   :  { %1896 = vmatpush1.bf16.msra.mxu0 %v5035_v32  ;;  %1978 = vmatpush1.bf16.msra.mxu1 %v5037_v33  ;;  %v317_v32 = vld [vmem:[#allocation2 + $0x238] sm:$0xff]  ;;  %v4848_v33 = vcombine.high %v304_v25, %v308_v28 }
 0x148   :  { %1988 = vmatprep.subr.bf16.mxu0 %v4792_v63  ;;  %2070 = vmatprep.subr.bf16.mxu1 %v4794_v38  ;;  %v316_v63 = vld [vmem:[#allocation2 + $0x230] sm:$0xff]  ;;  %v4849_v38 = vcombine.low %v305_v22, %v309_v23  ;;  %v4858_v45 = vcombine.high %v313_v31, %v317_v32  ;;  %v4857_v48 = vcombine.low %v313_v31, %v317_v32  ;;  %v369_v28 = vld [vmem:[#allocation2 + $0x3d8] sm:$0xff] }
 0x149   :  { %v4855_v47 = vcombine.low %v312_v34, %v316_v63  ;;  %v360_v22 = vld [vmem:[#allocation2 + $0x390] sm:$0xff] }
 0x14a   :  { %1898 = vmatmul.mubr.bf16.vlgmr.msra.gmra.mrb[0].mxu0 %v6501_v40  ;;  %1980 = vmatmul.mubr.bf16.vlgmr.msra.gmra.mrb[0].mxu1 %v6501_v40  ;;  %v368_v31 = vld [vmem:[#allocation2 + $0x3d0] sm:$0xff] }
 0x14b   :  { %1989 = vmatpush1.bf16.msra.mxu0 %v4791_v41  ;;  %2071 = vmatpush1.bf16.msra.mxu1 %v4793_v42  ;;  %v325_v41 = vld [vmem:[#allocation2 + $0x278] sm:$0xff]  ;;  %v4856_v42 = vcombine.high %v312_v34, %v316_v63 }
 0x14c   :  { %1990 = vmatprep.subr.bf16.mxu0 %v4800_v46  ;;  %2072 = vmatprep.subr.bf16.mxu1 %v4802_v49  ;;  %v324_v46 = vld [vmem:[#allocation2 + $0x270] sm:$0xff]  ;;  %v329_v49 = vld [vmem:[#allocation2 + $0x298] sm:$0xff]  ;;  %v4865_v56 = vcombine.low %v321_v39, %v325_v41 }
 0x14d   :  { %2102 = vmatprep.mubr.bf16.mxu1 %v6478_v9  ;;  %2020 = vmatprep.mubr.bf16.mxu0 %v6478_v9  ;;  %v4824_v9 = vcombine.high %v280_v0, %v284_v1  ;;  %v4863_v55 = vcombine.low %v320_v43, %v324_v46  ;;  %v340_v0 = vld [vmem:[#allocation2 + $0x2f0] sm:$0xff] }
 0x14f   :  { %1991 = vmatpush1.bf16.msra.mxu0 %v4799_v50  ;;  %2073 = vmatpush1.bf16.msra.mxu1 %v4801_v18  ;;  %v333_v50 = vld [vmem:[#allocation2 + $0x2b8] sm:$0xff]  ;;  %v4864_v18 = vcombine.high %v320_v43, %v324_v46  ;;  %v388_v46 = vld [vmem:[#allocation2 + $0x470] sm:$0xff] }
 0x150   :  { %1992 = vmatprep.subr.bf16.mxu0 %v4808_v51  ;;  %2074 = vmatprep.subr.bf16.mxu1 %v4810_v52  ;;  %v328_v51 = vld [vmem:[#allocation2 + $0x290] sm:$0xff]  ;;  %v4866_v52 = vcombine.high %v321_v39, %v325_v41  ;;  %v4873_v2 = vcombine.low %v329_v49, %v333_v50 }
 0x151   :  { %v4871_v1 = vcombine.low %v328_v51, %v332_v54  ;;  %v380_v41 = vld [vmem:[#allocation2 + $0x430] sm:$0xff] }
 0x153   :  { %1993 = vmatpush1.bf16.msra.mxu0 %v4807_v58  ;;  %2075 = vmatpush1.bf16.msra.mxu1 %v4809_v60  ;;  %v341_v58 = vld [vmem:[#allocation2 + $0x2f8] sm:$0xff]  ;;  %v4872_v60 = vcombine.high %v328_v51, %v332_v54  ;;  %v396_v54 = vld [vmem:[#allocation2 + $0x4b0] sm:$0xff] }
 0x154   :  { %1994 = vmatprep.subr.bf16.mxu0 %v4816_v61  ;;  %2076 = vmatprep.subr.bf16.mxu1 %v4818_v62  ;;  %v336_v61 = vld [vmem:[#allocation2 + $0x2d0] sm:$0xff]  ;;  %v4874_v62 = vcombine.high %v329_v49, %v333_v50  ;;  %v4882_v7 = vcombine.high %v337_v57, %v341_v58  ;;  %v389_v49 = vld [vmem:[#allocation2 + $0x478] sm:$0xff] }
 0x155   :  { %v4879_v8 = vcombine.low %v336_v61, %v340_v0 }
 0x157   :  { %1995 = vmatpush1.bf16.msra.mxu0 %v4815_v4  ;;  %2077 = vmatpush1.bf16.msra.mxu1 %v4817_v5  ;;  %v349_v4 = vld [vmem:[#allocation2 + $0x338] sm:$0xff]  ;;  %v4880_v5 = vcombine.high %v336_v61, %v340_v0  ;;  %v404_v0 = vld [vmem:[#allocation2 + $0x4f0] sm:$0xff] }
 0x158   :  { %1996 = vmatprep.subr.bf16.mxu0 %v4824_v9  ;;  %2078 = vmatprep.subr.bf16.mxu1 %v4826_v10  ;;  %v348_v9 = vld [vmem:[#allocation2 + $0x330] sm:$0xff]  ;;  %v4881_v10 = vcombine.low %v337_v57, %v341_v58  ;;  %v4890_v15 = vcombine.high %v345_v3, %v349_v4  ;;  %v397_v57 = vld [vmem:[#allocation2 + $0x4b8] sm:$0xff] }
 0x159   :  { %v4887_v17 = vcombine.low %v344_v6, %v348_v9 }
 0x15b   :  { %1997 = vmatpush1.bf16.msra.mxu0 %v4823_v12  ;;  %2079 = vmatpush1.bf16.msra.mxu1 %v4825_v13  ;;  %v357_v12 = vld [vmem:[#allocation2 + $0x378] sm:$0xff]  ;;  %v4888_v13 = vcombine.high %v344_v6, %v348_v9 }
 0x15c   :  { %1998 = vmatprep.subr.bf16.mxu0 %v4832_v16  ;;  %2080 = vmatprep.subr.bf16.mxu1 %v4834_v19  ;;  %v356_v16 = vld [vmem:[#allocation2 + $0x370] sm:$0xff]  ;;  %v4889_v19 = vcombine.low %v345_v3, %v349_v4  ;;  %v4898_v23 = vcombine.high %v353_v11, %v357_v12  ;;  %v405_v3 = vld [vmem:[#allocation2 + $0x4f8] sm:$0xff] }
 0x15d   :  { %v4895_v25 = vcombine.low %v352_v14, %v356_v16 }
 0x15f   :  { %1999 = vmatpush1.bf16.msra.mxu0 %v4831_v20  ;;  %2081 = vmatpush1.bf16.msra.mxu1 %v4833_v21  ;;  %v365_v20 = vld [vmem:[#allocation2 + $0x3b8] sm:$0xff]  ;;  %v4896_v21 = vcombine.high %v352_v14, %v356_v16  ;;  %v416_v14 = vld [vmem:[#allocation2 + $0x550] sm:$0xff] }
 0x160   :  { %2000 = vmatprep.subr.bf16.mxu0 %v4840_v24  ;;  %2082 = vmatprep.subr.bf16.mxu1 %v4842_v26  ;;  %v364_v24 = vld [vmem:[#allocation2 + $0x3b0] sm:$0xff]  ;;  %v4897_v26 = vcombine.low %v353_v11, %v357_v12  ;;  %v4906_v32 = vcombine.high %v361_v59, %v365_v20  ;;  %v4905_v63 = vcombine.low %v361_v59, %v365_v20 }
 0x161   :  { %v4903_v34 = vcombine.low %v360_v22, %v364_v24 }
 0x163   :  { %2001 = vmatpush1.bf16.msra.mxu0 %v4839_v29  ;;  %2083 = vmatpush1.bf16.msra.mxu1 %v4841_v30  ;;  %v373_v29 = vld [vmem:[#allocation2 + $0x3f8] sm:$0xff]  ;;  %v4904_v30 = vcombine.high %v360_v22, %v364_v24  ;;  %v428_v22 = vld [vmem:[#allocation2 + $0x5b0] sm:$0xff] }
 0x164   :  { %2002 = vmatprep.subr.bf16.mxu0 %v4848_v33  ;;  %2084 = vmatprep.subr.bf16.mxu1 %v4850_v35  ;;  %v372_v33 = vld [vmem:[#allocation2 + $0x3f0] sm:$0xff]  ;;  %v425_v24 = vld [vmem:[#allocation2 + $0x598] sm:$0xff] }
 0x165   :  { %v376_v35 = vld [vmem:[#allocation2 + $0x410] sm:$0xff]  ;;  %v4912_v39 = vcombine.high %v368_v31, %v372_v33  ;;  %v4911_v43 = vcombine.low %v368_v31, %v372_v33 }
 0x166   :  { %v4920_v50 = vcombine.high %v376_v35, %v380_v41  ;;  %v4919_v51 = vcombine.low %v376_v35, %v380_v41  ;;  %v432_v33 = vld [vmem:[#allocation2 + $0x5d0] sm:$0xff]  ;;  %v433_v35 = vld [vmem:[#allocation2 + $0x5d8] sm:$0xff] }
 0x167   :  { %2003 = vmatpush1.bf16.msra.mxu0 %v4847_v37  ;;  %2085 = vmatpush1.bf16.msra.mxu1 %v4849_v38  ;;  %v377_v37 = vld [vmem:[#allocation2 + $0x418] sm:$0xff] }
 0x168   :  { %2004 = vmatprep.subr.bf16.mxu0 %v4856_v42  ;;  %2086 = vmatprep.subr.bf16.mxu1 %v4858_v45  ;;  %v381_v38 = vld [vmem:[#allocation2 + $0x438] sm:$0xff]  ;;  %v4914_v42 = vcombine.high %v369_v28, %v373_v29  ;;  %v384_v45 = vld [vmem:[#allocation2 + $0x450] sm:$0xff] }
 0x169   :  { %v4928_v58 = vcombine.high %v384_v45, %v388_v46  ;;  %v4927_v61 = vcombine.low %v384_v45, %v388_v46  ;;  %v441_v45 = vld [vmem:[#allocation2 + $0x618] sm:$0xff] }
 0x16a   :  { %v445_v46 = vld [vmem:[#allocation2 + $0x638] sm:$0xff] }
 0x16b   :  { %2005 = vmatpush1.bf16.msra.mxu0 %v4855_v47  ;;  %2087 = vmatpush1.bf16.msra.mxu1 %v4857_v48  ;;  %v4913_v47 = vcombine.low %v369_v28, %v373_v29  ;;  %v385_v48 = vld [vmem:[#allocation2 + $0x458] sm:$0xff] }
 0x16c   :  { %2006 = vmatprep.subr.bf16.mxu0 %v4864_v18  ;;  %2088 = vmatprep.subr.bf16.mxu1 %v4866_v52  ;;  %v4922_v18 = vcombine.high %v377_v37, %v381_v38  ;;  %v392_v52 = vld [vmem:[#allocation2 + $0x490] sm:$0xff] }
 0x16d   :  { %v4936_v4 = vcombine.high %v392_v52, %v396_v54  ;;  %v4935_v6 = vcombine.low %v392_v52, %v396_v54  ;;  %v4986_v54 = vcombine.high %v441_v45, %v445_v46 }
 0x16f   :  { %2007 = vmatpush1.bf16.msra.mxu0 %v4863_v55  ;;  %2089 = vmatpush1.bf16.msra.mxu1 %v4865_v56  ;;  %v4921_v55 = vcombine.low %v377_v37, %v381_v38  ;;  %v393_v56 = vld [vmem:[#allocation2 + $0x498] sm:$0xff] }
 0x170   :  { %2008 = vmatprep.subr.bf16.mxu0 %v4872_v60  ;;  %2090 = vmatprep.subr.bf16.mxu1 %v4874_v62  ;;  %v4930_v60 = vcombine.high %v385_v48, %v389_v49  ;;  %v400_v62 = vld [vmem:[#allocation2 + $0x4d0] sm:$0xff]  ;;  %v4937_v9 = vcombine.low %v393_v56, %v397_v57 }
 0x171   :  { %v4944_v11 = vcombine.high %v400_v62, %v404_v0 }
 0x173   :  { %2009 = vmatpush1.bf16.msra.mxu0 %v4871_v1  ;;  %2091 = vmatpush1.bf16.msra.mxu1 %v4873_v2  ;;  %v4929_v1 = vcombine.low %v385_v48, %v389_v49  ;;  %v401_v2 = vld [vmem:[#allocation2 + $0x4d8] sm:$0xff]  ;;  %v448_v48 = vld [vmem:[#allocation2 + $0x650] sm:$0xff] }
 0x174   :  { %2010 = vmatprep.subr.bf16.mxu0 %v4880_v5  ;;  %2092 = vmatprep.subr.bf16.mxu1 %v4882_v7  ;;  %v4938_v5 = vcombine.high %v393_v56, %v397_v57  ;;  %v408_v7 = vld [vmem:[#allocation2 + $0x510] sm:$0xff]  ;;  %v4946_v12 = vcombine.high %v401_v2, %v405_v3  ;;  %v4945_v16 = vcombine.low %v401_v2, %v405_v3 }
 0x175   :  { %v452_v49 = vld [vmem:[#allocation2 + $0x670] sm:$0xff] }
 0x176   :  { %v456_v56 = vld [vmem:[#allocation2 + $0x690] sm:$0xff] }
 0x177   :  { %2011 = vmatpush1.bf16.msra.mxu0 %v4879_v8  ;;  %2093 = vmatpush1.bf16.msra.mxu1 %v4881_v10  ;;  %v409_v8 = vld [vmem:[#allocation2 + $0x518] sm:$0xff]  ;;  %v460_v57 = vld [vmem:[#allocation2 + $0x6b0] sm:$0xff] }
 0x178   :  { %2012 = vmatprep.subr.bf16.mxu0 %v4888_v13  ;;  %2094 = vmatprep.subr.bf16.mxu1 %v4890_v15  ;;  %v413_v10 = vld [vmem:[#allocation2 + $0x538] sm:$0xff]  ;;  %v4943_v13 = vcombine.low %v400_v62, %v404_v0  ;;  %v420_v15 = vld [vmem:[#allocation2 + $0x570] sm:$0xff]  ;;  %v4992_v62 = vcombine.high %v448_v48, %v452_v49 }
 0x179   :  { %v4954_v59 = vcombine.high %v409_v8, %v413_v10  ;;  %v4959_v29 = vcombine.low %v416_v14, %v420_v15  ;;  %v464_v2 = vld [vmem:[#allocation2 + $0x6d0] sm:$0xff] }
 0x17a   :  { %v468_v3 = vld [vmem:[#allocation2 + $0x6f0] sm:$0xff] }
 0x17b   :  { %2013 = vmatpush1.bf16.msra.mxu0 %v4887_v17  ;;  %2095 = vmatpush1.bf16.msra.mxu1 %v4889_v19  ;;  %v417_v17 = vld [vmem:[#allocation2 + $0x558] sm:$0xff] }
 0x17c   :  { %2014 = vmatprep.subr.bf16.mxu0 %v4896_v21  ;;  %2096 = vmatprep.subr.bf16.mxu1 %v4898_v23  ;;  %v424_v21 = vld [vmem:[#allocation2 + $0x590] sm:$0xff]  ;;  %v4953_v23 = vcombine.low %v409_v8, %v413_v10 }
 0x17d   :  { %v4968_v31 = vcombine.high %v424_v21, %v428_v22  ;;  %v4967_v37 = vcombine.low %v424_v21, %v428_v22  ;;  %v472_v8 = vld [vmem:[#allocation2 + $0x710] sm:$0xff]  ;;  %v481_v21 = vld [vmem:[#allocation2 + $0x758] sm:$0xff] }
 0x17e   :  { %v476_v10 = vld [vmem:[#allocation2 + $0x730] sm:$0xff]  ;;  %v485_v22 = vld [vmem:[#allocation2 + $0x778] sm:$0xff] }
 0x17f   :  { %2015 = vmatpush1.bf16.msra.mxu0 %v4895_v25  ;;  %2097 = vmatpush1.bf16.msra.mxu1 %v4897_v26  ;;  %v429_v25 = vld [vmem:[#allocation2 + $0x5b8] sm:$0xff]  ;;  %v4960_v26 = vcombine.high %v416_v14, %v420_v15 }
 0x180   :  { %2016 = vmatprep.subr.bf16.mxu0 %v4904_v30  ;;  %2098 = vmatprep.subr.bf16.mxu1 %v4906_v32  ;;  %v4970_v32 = vcombine.high %v425_v24, %v429_v25  ;;  %v4969_v38 = vcombine.low %v425_v24, %v429_v25  ;;  %v473_v14 = vld [vmem:[#allocation2 + $0x718] sm:$0xff] }
 0x181   :  { %v477_v15 = vld [vmem:[#allocation2 + $0x738] sm:$0xff] }
 0x182   :  { %v5017_v24 = vcombine.low %v473_v14, %v477_v15 }
 0x183   :  { %2017 = vmatpush1.bf16.msra.mxu0 %v4903_v34  ;;  %2099 = vmatpush1.bf16.msra.mxu1 %v4905_v63  ;;  %v436_v34 = vld [vmem:[#allocation2 + $0x5f0] sm:$0xff]  ;;  %v437_v63 = vld [vmem:[#allocation2 + $0x5f8] sm:$0xff] }
 0x184   :  { %2018 = vmatprep.subr.bf16.mxu0 %v4912_v39  ;;  %2100 = vmatprep.subr.bf16.mxu1 %v4914_v42  ;;  %v4976_v39 = vcombine.high %v432_v33, %v436_v34  ;;  %v4978_v41 = vcombine.high %v433_v35, %v437_v63  ;;  %v440_v42 = vld [vmem:[#allocation2 + $0x610] sm:$0xff] }
 0x187   :  { %2019 = vmatpush1.bf16.msra.mxu0 %v4911_v43  ;;  %2101 = vmatpush1.bf16.msra.mxu1 %v4913_v47  ;;  %v444_v43 = vld [vmem:[#allocation2 + $0x630] sm:$0xff]  ;;  %v4975_v47 = vcombine.low %v432_v33, %v436_v34  ;;  %v5025_v33 = vcombine.low %v481_v21, %v485_v22 }
 0x188   :  { %2029 = vmatprep.subr.bf16.mxu0 %v4920_v50  ;;  %2111 = vmatprep.subr.bf16.mxu1 %v4922_v18  ;;  %v4977_v50 = vcombine.low %v433_v35, %v437_v63  ;;  %v449_v18 = vld [vmem:[#allocation2 + $0x658] sm:$0xff]  ;;  %v4984_v52 = vcombine.high %v440_v42, %v444_v43  ;;  %v496_v63 = vld [vmem:[#allocation2 + $0x7d0] sm:$0xff] }
 0x18a   :  { %2021 = vmatmul.mubr.bf16.vlgmr.msra.gmra.mrb[4].mxu0 %v6491_v27  ;;  %2103 = vmatmul.mubr.bf16.vlgmr.msra.gmra.mrb[4].mxu1 %v6491_v27  ;;  %v412_v27 = vld [vmem:[#allocation2 + $0x530] sm:$0xff] }
 0x18b   :  { %2030 = vmatpush1.bf16.msra.mxu0 %v4919_v51  ;;  %2112 = vmatpush1.bf16.msra.mxu1 %v4921_v55  ;;  %v4952_v19 = vcombine.high %v408_v7, %v412_v27  ;;  %v4951_v20 = vcombine.low %v408_v7, %v412_v27  ;;  %v453_v51 = vld [vmem:[#allocation2 + $0x678] sm:$0xff]  ;;  %v4983_v55 = vcombine.low %v440_v42, %v444_v43 }
 0x18c   :  { %2031 = vmatprep.subr.bf16.mxu0 %v4928_v58  ;;  %2113 = vmatprep.subr.bf16.mxu1 %v4930_v60  ;;  %v4985_v58 = vcombine.low %v441_v45, %v445_v46  ;;  %v457_v60 = vld [vmem:[#allocation2 + $0x698] sm:$0xff]  ;;  %v4994_v0 = vcombine.high %v449_v18, %v453_v51  ;;  %v5000_v7 = vcombine.high %v456_v56, %v460_v57 }
 0x18d   :  { %2143 = vmatprep.mubr.bf16.mxu1 %v6493_v36  ;;  %2061 = vmatprep.mubr.bf16.mxu0 %v6493_v36  ;;  %v421_v36 = vld [vmem:[#allocation2 + $0x578] sm:$0xff] }
 0x18e   :  { %v4962_v28 = vcombine.high %v417_v17, %v421_v36  ;;  %v4961_v30 = vcombine.low %v417_v17, %v421_v36  ;;  %v5016_v36 = vcombine.high %v472_v8, %v476_v10 }
 0x18f   :  { %2032 = vmatpush1.bf16.msra.mxu0 %v4927_v61  ;;  %2114 = vmatpush1.bf16.msra.mxu1 %v4929_v1  ;;  %v461_v61 = vld [vmem:[#allocation2 + $0x6b8] sm:$0xff]  ;;  %v4991_v1 = vcombine.low %v448_v48, %v452_v49  ;;  %v5512_v48 = vld [vmem:[#allocation7 + $0x4] ss:$8 sps:$4 sm:$0xff]  }
 0x190   :  { %2033 = vmatprep.subr.bf16.mxu0 %v4936_v4  ;;  %2115 = vmatprep.subr.bf16.mxu1 %v4938_v5  ;;  %v4993_v4 = vcombine.low %v449_v18, %v453_v51  ;;  %v465_v5 = vld [vmem:[#allocation2 + $0x6d8] sm:$0xff]  ;;  %v5002_v27 = vcombine.high %v457_v60, %v461_v61  ;;  %v5515_v49 = vld [vmem:[#allocation7 + $0x104] ss:$8 sps:$4 sm:$0xff]   ;;  %v5513_v18 = vld [vmem:[#allocation7 + $0x100] ss:$8 sps:$4 sm:$0xff]  }
 0x191   :  { %v5518_v51 = vld [vmem:[#allocation7 + $0x14] ss:$8 sps:$4 sm:$0xff]  }
 0x193   :  { %2034 = vmatpush1.bf16.msra.mxu0 %v4935_v6  ;;  %2116 = vmatpush1.bf16.msra.mxu1 %v4937_v9  ;;  %v469_v6 = vld [vmem:[#allocation2 + $0x6f8] sm:$0xff]  ;;  %v4999_v9 = vcombine.low %v456_v56, %v460_v57  ;;  %v5524_v56 = vld [vmem:[#allocation7 + $0x24] ss:$8 sps:$4 sm:$0xff]  }
 0x194   :  { %2035 = vmatprep.subr.bf16.mxu0 %v4944_v11  ;;  %2117 = vmatprep.subr.bf16.mxu1 %v4946_v12  ;;  %v5001_v11 = vcombine.low %v457_v60, %v461_v61  ;;  %v5008_v12 = vcombine.high %v464_v2, %v468_v3  ;;  %v5009_v17 = vcombine.low %v465_v5, %v469_v6  ;;  %v5527_v57 = vld [vmem:[#allocation7 + $0x124] ss:$8 sps:$4 sm:$0xff]   ;;  %v5525_v60 = vld [vmem:[#allocation7 + $0x120] ss:$8 sps:$4 sm:$0xff]   ;;  %v5530_v61 = vld [vmem:[#allocation7 + $0x34] ss:$8 sps:$4 sm:$0xff]  }
 0x197   :  { %2036 = vmatpush1.bf16.msra.mxu0 %v4943_v13  ;;  %2118 = vmatpush1.bf16.msra.mxu1 %v4945_v16  ;;  %v5010_v13 = vcombine.high %v465_v5, %v469_v6  ;;  %v5007_v16 = vcombine.low %v464_v2, %v468_v3  ;;  %v5539_v2 = vld [vmem:[#allocation7 + $0x144] ss:$8 sps:$4 sm:$0xff]   ;;  %v5534_v3 = vld [vmem:[#allocation7 + $0x40] ss:$8 sps:$4 sm:$0xff]   ;;  %v5542_v5 = vld [vmem:[#allocation7 + $0x54] ss:$8 sps:$4 sm:$0xff]  }
 0x198   :  { %2037 = vmatprep.subr.bf16.mxu0 %v4952_v19  ;;  %2119 = vmatprep.subr.bf16.mxu1 %v4954_v59  ;;  %v5018_v19 = vcombine.high %v473_v14, %v477_v15  ;;  %v480_v59 = vld [vmem:[#allocation2 + $0x750] sm:$0xff]  ;;  %v5545_v6 = vld [vmem:[#allocation7 + $0x154] ss:$8 sps:$4 sm:$0xff]   ;;  %v5552_v14 = vld [vmem:[#allocation7 + $0x70] ss:$8 sps:$4 sm:$0xff]  }
 0x199   :  { %v5555_v15 = vld [vmem:[#allocation7 + $0x170] ss:$8 sps:$4 sm:$0xff]  }
 0x19b   :  { %2038 = vmatpush1.bf16.msra.mxu0 %v4951_v20  ;;  %2120 = vmatpush1.bf16.msra.mxu1 %v4953_v23  ;;  %v484_v20 = vld [vmem:[#allocation2 + $0x770] sm:$0xff]  ;;  %v5015_v23 = vcombine.low %v472_v8, %v476_v10 }
 0x19c   :  { %2039 = vmatprep.subr.bf16.mxu0 %v4960_v26  ;;  %2121 = vmatprep.subr.bf16.mxu1 %v4962_v28  ;;  %v5024_v25 = vcombine.high %v480_v59, %v484_v20  ;;  %v5026_v26 = vcombine.high %v481_v21, %v485_v22  ;;  %v488_v28 = vld [vmem:[#allocation2 + $0x790] sm:$0xff]  ;;  %v5564_v21 = vld [vmem:[#allocation7 + $0x90] ss:$8 sps:$4 sm:$0xff]  }
 0x19d   :  { %v5551_v8 = vld [vmem:[#allocation7 + $0x164] ss:$8 sps:$4 sm:$0xff]   ;;  %v5546_v10 = vld [vmem:[#allocation7 + $0x60] ss:$8 sps:$4 sm:$0xff]   ;;  %v5567_v22 = vld [vmem:[#allocation7 + $0x190] ss:$8 sps:$4 sm:$0xff]  }
 0x19f   :  { %2040 = vmatpush1.bf16.msra.mxu0 %v4959_v29  ;;  %2122 = vmatpush1.bf16.msra.mxu1 %v4961_v30  ;;  %v492_v29 = vld [vmem:[#allocation2 + $0x7b0] sm:$0xff]  ;;  %v489_v30 = vld [vmem:[#allocation2 + $0x798] sm:$0xff] }
 0x1a0   :  { %2041 = vmatprep.subr.bf16.mxu0 %v4968_v31  ;;  %2123 = vmatprep.subr.bf16.mxu1 %v4970_v32  ;;  %v493_v31 = vld [vmem:[#allocation2 + $0x7b8] sm:$0xff]  ;;  %v5023_v32 = vcombine.low %v480_v59, %v484_v20  ;;  %v5032_v34 = vcombine.high %v488_v28, %v492_v29 }
 0x1a1   :  { %v5034_v35 = vcombine.high %v489_v30, %v493_v31  ;;  %v5033_v42 = vcombine.low %v489_v30, %v493_v31  ;;  %v5566_v59 = vld [vmem:[#allocation7 + $0x94] ss:$8 sps:$4 sm:$0xff]   ;;  %v5576_v30 = vld [vmem:[#allocation7 + $0xb0] ss:$8 sps:$4 sm:$0xff]  }
 0x1a2   :  { %v5569_v20 = vld [vmem:[#allocation7 + $0x194] ss:$8 sps:$4 sm:$0xff]   ;;  %v5579_v31 = vld [vmem:[#allocation7 + $0x1b0] ss:$8 sps:$4 sm:$0xff]  }
 0x1a3   :  { %2042 = vmatpush1.bf16.msra.mxu0 %v4967_v37  ;;  %2124 = vmatpush1.bf16.msra.mxu1 %v4969_v38  ;;  %v500_v37 = vld [vmem:[#allocation2 + $0x7f0] sm:$0xff]  ;;  %v497_v38 = vld [vmem:[#allocation2 + $0x7d8] sm:$0xff] }
 0x1a4   :  { %2043 = vmatprep.subr.bf16.mxu0 %v4976_v39  ;;  %2125 = vmatprep.subr.bf16.mxu1 %v4978_v41  ;;  %v501_v39 = vld [vmem:[#allocation2 + $0x7f8] sm:$0xff]  ;;  %v5031_v41 = vcombine.low %v488_v28, %v492_v29  ;;  %v5040_v43 = vcombine.high %v496_v63, %v500_v37  ;;  %v5039_v46 = vcombine.low %v496_v63, %v500_v37 }
 0x1a5   :  { %v5042_v45 = vcombine.high %v497_v38, %v501_v39  ;;  %v5578_v28 = vld [vmem:[#allocation7 + $0xb4] ss:$8 sps:$4 sm:$0xff]  }
 0x1a6   :  { %v5581_v29 = vld [vmem:[#allocation7 + $0x1b4] ss:$8 sps:$4 sm:$0xff]  }
 0x1a7   :  { %2044 = vmatpush1.bf16.msra.mxu0 %v4975_v47  ;;  %2126 = vmatpush1.bf16.msra.mxu1 %v4977_v50  ;;  %v5041_v47 = vcombine.low %v497_v38, %v501_v39  ;;  %v5510_v50 = vld [vmem:[#allocation7] ss:$8 sps:$4 sm:$0xff]   ;;  %v5590_v63 = vld [vmem:[#allocation7 + $0xd4] ss:$8 sps:$4 sm:$0xff]   ;;  %v5588_v38 = vld [vmem:[#allocation7 + $0xd0] ss:$8 sps:$4 sm:$0xff]  }
 0x1a8   :  { %2045 = vmatprep.subr.bf16.mxu0 %v4984_v52  ;;  %2127 = vmatprep.subr.bf16.mxu1 %v4986_v54  ;;  %v5521_v52 = vld [vmem:[#allocation7 + $0x114] ss:$8 sps:$4 sm:$0xff]   ;;  %v5516_v54 = vld [vmem:[#allocation7 + $0x10] ss:$8 sps:$4 sm:$0xff]  }
 0x1a9   :  { %v5593_v37 = vld [vmem:[#allocation7 + $0x1d4] ss:$8 sps:$4 sm:$0xff]   ;;  %v5591_v39 = vld [vmem:[#allocation7 + $0x1d0] ss:$8 sps:$4 sm:$0xff]  }
 0x1ab   :  { %2046 = vmatpush1.bf16.msra.mxu0 %v4983_v55  ;;  %2128 = vmatpush1.bf16.msra.mxu1 %v4985_v58  ;;  %v5519_v55 = vld [vmem:[#allocation7 + $0x110] ss:$8 sps:$4 sm:$0xff]   ;;  %v5522_v58 = vld [vmem:[#allocation7 + $0x20] ss:$8 sps:$4 sm:$0xff]  }
 0x1ac   :  { %2047 = vmatprep.subr.bf16.mxu0 %v4992_v62  ;;  %2129 = vmatprep.subr.bf16.mxu1 %v4994_v0  ;;  %v5533_v62 = vld [vmem:[#allocation7 + $0x134] ss:$8 sps:$4 sm:$0xff]   ;;  %v5528_v0 = vld [vmem:[#allocation7 + $0x30] ss:$8 sps:$4 sm:$0xff]  }
 0x1af   :  { %2048 = vmatpush1.bf16.msra.mxu0 %v4991_v1  ;;  %2130 = vmatpush1.bf16.msra.mxu1 %v4993_v4  ;;  %v5536_v1 = vld [vmem:[#allocation7 + $0x44] ss:$8 sps:$4 sm:$0xff]   ;;  %v5537_v4 = vld [vmem:[#allocation7 + $0x140] ss:$8 sps:$4 sm:$0xff]  }
 0x1b0   :  { %2049 = vmatprep.subr.bf16.mxu0 %v5000_v7  ;;  %2131 = vmatprep.subr.bf16.mxu1 %v5002_v27  ;;  %v5540_v7 = vld [vmem:[#allocation7 + $0x50] ss:$8 sps:$4 sm:$0xff]  }
 0x1b1   :  { %v5543_v27 = vld [vmem:[#allocation7 + $0x150] ss:$8 sps:$4 sm:$0xff]  }
 0x1b3   :  { %2050 = vmatpush1.bf16.msra.mxu0 %v4999_v9  ;;  %2132 = vmatpush1.bf16.msra.mxu1 %v5001_v11  ;;  %v5548_v9 = vld [vmem:[#allocation7 + $0x64] ss:$8 sps:$4 sm:$0xff]   ;;  %v5549_v11 = vld [vmem:[#allocation7 + $0x160] ss:$8 sps:$4 sm:$0xff]  }
 0x1b4   :  { %2051 = vmatprep.subr.bf16.mxu0 %v5008_v12  ;;  %2133 = vmatprep.subr.bf16.mxu1 %v5010_v13  ;;  %v5554_v12 = vld [vmem:[#allocation7 + $0x74] ss:$8 sps:$4 sm:$0xff]  }
 0x1b5   :  { %v5557_v13 = vld [vmem:[#allocation7 + $0x174] ss:$8 sps:$4 sm:$0xff]  }
 0x1b7   :  { %2052 = vmatpush1.bf16.msra.mxu0 %v5007_v16  ;;  %2134 = vmatpush1.bf16.msra.mxu1 %v5009_v17  ;;  %v5560_v16 = vld [vmem:[#allocation7 + $0x84] ss:$8 sps:$4 sm:$0xff]  }
 0x1b8   :  { %2053 = vmatprep.subr.bf16.mxu0 %v5016_v36  ;;  %2135 = vmatprep.subr.bf16.mxu1 %v5018_v19  ;;  %v5563_v17 = vld [vmem:[#allocation7 + $0x184] ss:$8 sps:$4 sm:$0xff]   ;;  %v5558_v36 = vld [vmem:[#allocation7 + $0x80] ss:$8 sps:$4 sm:$0xff]  }
 0x1b9   :  { %v5561_v19 = vld [vmem:[#allocation7 + $0x180] ss:$8 sps:$4 sm:$0xff]  }
 0x1bb   :  { %2054 = vmatpush1.bf16.msra.mxu0 %v5015_v23  ;;  %2136 = vmatpush1.bf16.msra.mxu1 %v5017_v24  ;;  %v5572_v23 = vld [vmem:[#allocation7 + $0xa4] ss:$8 sps:$4 sm:$0xff]  }
 0x1bc   :  { %2055 = vmatprep.subr.bf16.mxu0 %v5024_v25  ;;  %2137 = vmatprep.subr.bf16.mxu1 %v5026_v26  ;;  %v5575_v24 = vld [vmem:[#allocation7 + $0x1a4] ss:$8 sps:$4 sm:$0xff]   ;;  %v5570_v25 = vld [vmem:[#allocation7 + $0xa0] ss:$8 sps:$4 sm:$0xff]  }
 0x1bd   :  { %v5573_v26 = vld [vmem:[#allocation7 + $0x1a0] ss:$8 sps:$4 sm:$0xff]  }
 0x1bf   :  { %2056 = vmatpush1.bf16.msra.mxu0 %v5023_v32  ;;  %2138 = vmatpush1.bf16.msra.mxu1 %v5025_v33  ;;  %v5584_v32 = vld [vmem:[#allocation7 + $0xc4] ss:$8 sps:$4 sm:$0xff]  }
 0x1c0   :  { %2057 = vmatprep.subr.bf16.mxu0 %v5032_v34  ;;  %2139 = vmatprep.subr.bf16.mxu1 %v5034_v35  ;;  %v5587_v33 = vld [vmem:[#allocation7 + $0x1c4] ss:$8 sps:$4 sm:$0xff]   ;;  %v5582_v34 = vld [vmem:[#allocation7 + $0xc0] ss:$8 sps:$4 sm:$0xff]  }
 0x1c1   :  { %v5585_v35 = vld [vmem:[#allocation7 + $0x1c0] ss:$8 sps:$4 sm:$0xff]  }
 0x1c3   :  { %2058 = vmatpush1.bf16.msra.mxu0 %v5031_v41  ;;  %2140 = vmatpush1.bf16.msra.mxu1 %v5033_v42  ;;  %v5596_v41 = vld [vmem:[#allocation7 + $0xe4] ss:$8 sps:$4 sm:$0xff]  }
 0x1c4   :  { %2059 = vmatprep.subr.bf16.mxu0 %v5040_v43  ;;  %2141 = vmatprep.subr.bf16.mxu1 %v5042_v45  ;;  %v5599_v42 = vld [vmem:[#allocation7 + $0x1e4] ss:$8 sps:$4 sm:$0xff]   ;;  %v5594_v43 = vld [vmem:[#allocation7 + $0xe0] ss:$8 sps:$4 sm:$0xff]  }
 0x1c5   :  { %v5597_v45 = vld [vmem:[#allocation7 + $0x1e0] ss:$8 sps:$4 sm:$0xff]  }
 0x1c7   :  { %2060 = vmatpush1.bf16.msra.mxu0 %v5039_v46  ;;  %2142 = vmatpush1.bf16.msra.mxu1 %v5041_v47  ;;  %v5602_v46 = vld [vmem:[#allocation7 + $0xf4] ss:$8 sps:$4 sm:$0xff]  }
 0x1c8   :  { %2372 = vmatprep.subr.bf16.mxu0 %v5512_v48  ;;  %2655 = vmatprep.subr.bf16.mxu1 %v5515_v49  ;;  %v5605_v47 = vld [vmem:[#allocation7 + $0x1f4] ss:$8 sps:$4 sm:$0xff]   ;;  %v5600_v48 = vld [vmem:[#allocation7 + $0xf0] ss:$8 sps:$4 sm:$0xff]  }
 0x1c9   :  { %v5603_v49 = vld [vmem:[#allocation7 + $0x1f0] ss:$8 sps:$4 sm:$0xff]  }
 0x1ca   :  { %2062 = vmatmul.mubr.bf16.vlgmr.msra.gmra.mrb[4].mxu0 %v6501_v40  ;;  %2144 = vmatmul.mubr.bf16.vlgmr.msra.gmra.mrb[4].mxu1 %v6501_v40  ;;  %v5531_v40 = vld [vmem:[#allocation7 + $0x130] ss:$8 sps:$4 sm:$0xff]  }
 0x1cb   :  { %2373 = vmatpush1.bf16.msra.mxu0 %v5510_v50  ;;  %2656 = vmatpush1.bf16.msra.mxu1 %v5513_v18  ;;  %v6514_v50 = vsub.s32 0, %v6462_v44  ;;  %v514_v18 = vsub.s32 2, %v6462_v44 }
 0x1cc   :  { %2374 = vmatprep.subr.bf16.mxu0 %v5518_v51  ;;  %2657 = vmatprep.subr.bf16.mxu1 %v5521_v52  ;;  %v6518_v51 = vsub.s32 1, %v6462_v44  ;;  %v6520_v52 = vld [vmem:[#allocation5] sm:$0xff] }
 0x1cf   :  { %2375 = vmatpush1.bf16.msra.mxu0 %v5516_v54  ;;  %2658 = vmatpush1.bf16.msra.mxu1 %v5519_v55  ;;  %v518_v54 = vsub.s32 3, %v6462_v44  ;;  %v507_v55 = vrot.slane %v6520_v52, %v6514_v50 }
 0x1d0   :  { %2376 = vmatprep.subr.bf16.mxu0 %v5524_v56  ;;  %2659 = vmatprep.subr.bf16.mxu1 %v5527_v57  ;;  %v515_v56 = vrot.slane %v6520_v52, %v514_v18  ;;  %v511_v57 = vrot.slane %v6520_v52, %v6518_v51 }
 0x1d3   :  { %2377 = vmatpush1.bf16.msra.mxu0 %v5522_v58  ;;  %2660 = vmatpush1.bf16.msra.mxu1 %v5525_v60  ;;  %v519_v58 = vrot.slane %v6520_v52, %v518_v54 }
 0x1d4   :  { %2378 = vmatprep.subr.bf16.mxu0 %v5530_v61  ;;  %2661 = vmatprep.subr.bf16.mxu1 %v5533_v62 }
 0x1d7   :  { %2379 = vmatpush1.bf16.msra.mxu0 %v5528_v0  ;;  %2662 = vmatpush1.bf16.msra.mxu1 %v5531_v40 }
 0x1d8   :  { %2380 = vmatprep.subr.bf16.mxu0 %v5536_v1  ;;  %2663 = vmatprep.subr.bf16.mxu1 %v5539_v2 }
 0x1db   :  { %2381 = vmatpush1.bf16.msra.mxu0 %v5534_v3  ;;  %2664 = vmatpush1.bf16.msra.mxu1 %v5537_v4 }
 0x1dc   :  { %2382 = vmatprep.subr.bf16.mxu0 %v5542_v5  ;;  %2665 = vmatprep.subr.bf16.mxu1 %v5545_v6 }
 0x1df   :  { %2383 = vmatpush1.bf16.msra.mxu0 %v5540_v7  ;;  %2666 = vmatpush1.bf16.msra.mxu1 %v5543_v27 }
 0x1e0   :  { %2384 = vmatprep.subr.bf16.mxu0 %v5548_v9  ;;  %2667 = vmatprep.subr.bf16.mxu1 %v5551_v8 }
 0x1e3   :  { %2385 = vmatpush1.bf16.msra.mxu0 %v5546_v10  ;;  %2668 = vmatpush1.bf16.msra.mxu1 %v5549_v11 }
 0x1e4   :  { %2386 = vmatprep.subr.bf16.mxu0 %v5554_v12  ;;  %2669 = vmatprep.subr.bf16.mxu1 %v5557_v13 }
 0x1e7   :  { %2387 = vmatpush1.bf16.msra.mxu0 %v5552_v14  ;;  %2670 = vmatpush1.bf16.msra.mxu1 %v5555_v15  ;;  %v5606_v14 = vld [vmem:[#allocation10 + $0xc0] sm:$0xff]  }
 0x1e8   :  { %2388 = vmatprep.subr.bf16.mxu0 %v5560_v16  ;;  %2671 = vmatprep.subr.bf16.mxu1 %v5563_v17  ;;  %v5607_v15 = vld [vmem:[#allocation10 + $0x80] sm:$0xff]  }
 0x1e9   :  { %v5608_v16 = vld [vmem:[#allocation10 + $0x40] sm:$0xff]  }
 0x1eb   :  { %2389 = vmatpush1.bf16.msra.mxu0 %v5558_v36  ;;  %2672 = vmatpush1.bf16.msra.mxu1 %v5561_v19  ;;  %v5609_v36 = vld [vmem:[#allocation10] sm:$0xff]   ;;  %v5610_v19 = vld [vmem:[#allocation10 + $0xc8] sm:$0xff]  }
 0x1ec   :  { %2390 = vmatprep.subr.bf16.mxu0 %v5566_v59  ;;  %2673 = vmatprep.subr.bf16.mxu1 %v5569_v20  ;;  %v5612_v59 = vld [vmem:[#allocation10 + $0x48] sm:$0xff]  }
 0x1ed   :  { %v5611_v20 = vld [vmem:[#allocation10 + $0x88] sm:$0xff]  }
 0x1ef   :  { %2391 = vmatpush1.bf16.msra.mxu0 %v5564_v21  ;;  %2674 = vmatpush1.bf16.msra.mxu1 %v5567_v22  ;;  %v5613_v21 = vld [vmem:[#allocation10 + $0x8] sm:$0xff]   ;;  %v5614_v22 = vld [vmem:[#allocation10 + $0xd0] sm:$0xff]  }
 0x1f0   :  { %2392 = vmatprep.subr.bf16.mxu0 %v5572_v23  ;;  %2675 = vmatprep.subr.bf16.mxu1 %v5575_v24  ;;  %v5616_v23 = vld [vmem:[#allocation10 + $0x50] sm:$0xff]  }
 0x1f1   :  { %v5615_v24 = vld [vmem:[#allocation10 + $0x90] sm:$0xff]  }
 0x1f3   :  { %2393 = vmatpush1.bf16.msra.mxu0 %v5570_v25  ;;  %2676 = vmatpush1.bf16.msra.mxu1 %v5573_v26  ;;  %v5617_v25 = vld [vmem:[#allocation10 + $0x10] sm:$0xff]   ;;  %v5618_v26 = vld [vmem:[#allocation10 + $0xd8] sm:$0xff]  }
 0x1f4   :  { %2394 = vmatprep.subr.bf16.mxu0 %v5578_v28  ;;  %2677 = vmatprep.subr.bf16.mxu1 %v5581_v29  ;;  %v5620_v28 = vld [vmem:[#allocation10 + $0x58] sm:$0xff]  }
 0x1f5   :  { %v5619_v29 = vld [vmem:[#allocation10 + $0x98] sm:$0xff]  }
 0x1f7   :  { %2395 = vmatpush1.bf16.msra.mxu0 %v5576_v30  ;;  %2678 = vmatpush1.bf16.msra.mxu1 %v5579_v31  ;;  %v5621_v30 = vld [vmem:[#allocation10 + $0x18] sm:$0xff]   ;;  %v5622_v31 = vld [vmem:[#allocation10 + $0xe0] sm:$0xff]  }
 0x1f8   :  { %2396 = vmatprep.subr.bf16.mxu0 %v5584_v32  ;;  %2679 = vmatprep.subr.bf16.mxu1 %v5587_v33  ;;  %v5624_v32 = vld [vmem:[#allocation10 + $0x60] sm:$0xff]  }
 0x1f9   :  { %v5623_v33 = vld [vmem:[#allocation10 + $0xa0] sm:$0xff]  }
 0x1fb   :  { %2397 = vmatpush1.bf16.msra.mxu0 %v5582_v34  ;;  %2680 = vmatpush1.bf16.msra.mxu1 %v5585_v35  ;;  %v5625_v34 = vld [vmem:[#allocation10 + $0x20] sm:$0xff]   ;;  %v5626_v35 = vld [vmem:[#allocation10 + $0xe8] sm:$0xff]  }
 0x1fc   :  { %2398 = vmatprep.subr.bf16.mxu0 %v5590_v63  ;;  %2681 = vmatprep.subr.bf16.mxu1 %v5593_v37  ;;  %v5628_v63 = vld [vmem:[#allocation10 + $0x68] sm:$0xff]  }
 0x1fd   :  { %v5627_v37 = vld [vmem:[#allocation10 + $0xa8] sm:$0xff]  }
 0x1ff   :  { %2399 = vmatpush1.bf16.msra.mxu0 %v5588_v38  ;;  %2682 = vmatpush1.bf16.msra.mxu1 %v5591_v39  ;;  %v5629_v38 = vld [vmem:[#allocation10 + $0x28] sm:$0xff]   ;;  %v5630_v39 = vld [vmem:[#allocation10 + $0xf0] sm:$0xff]  }
 0x200   :  { %2400 = vmatprep.subr.bf16.mxu0 %v5596_v41  ;;  %2683 = vmatprep.subr.bf16.mxu1 %v5599_v42  ;;  %v5631_v41 = vld [vmem:[#allocation10 + $0xb0] sm:$0xff]  }
 0x201   :  { %v5632_v42 = vld [vmem:[#allocation10 + $0x70] sm:$0xff]  }
 0x203   :  { %2401 = vmatpush1.bf16.msra.mxu0 %v5594_v43  ;;  %2684 = vmatpush1.bf16.msra.mxu1 %v5597_v45  ;;  %v5633_v43 = vld [vmem:[#allocation10 + $0x30] sm:$0xff]   ;;  %v5634_v45 = vld [vmem:[#allocation10 + $0xf8] sm:$0xff]  }
 0x204   :  { %2402 = vmatprep.subr.bf16.mxu0 %v5602_v46  ;;  %2685 = vmatprep.subr.bf16.mxu1 %v5605_v47  ;;  %v5635_v46 = vld [vmem:[#allocation10 + $0xb8] sm:$0xff]  }
 0x205   :  { %v5636_v47 = vld [vmem:[#allocation10 + $0x78] sm:$0xff]  }
 0x207   :  { %2403 = vmatpush1.bf16.msra.mxu0 %v5600_v48  ;;  %2686 = vmatpush1.bf16.msra.mxu1 %v5603_v49  ;;  %v5637_v48 = vld [vmem:[#allocation10 + $0x38] sm:$0xff]  }
 0x208   :  { %5349 = vmatprep.subr.bf16.mxu0 %v5606_v14  ;;  %5371 = vmatprep.subr.bf16.mxu1 %v5608_v16  ;;  %v5640_v49 = vld [vmem:[#allocation7 + $0x204] ss:$8 sps:$4 sm:$0xff]  }
 0x21d   :  { %v1899_v60 = vpop.f32.mrb[0].mxu0  ;;  %v1981_v62 = vpop.f32.mrb[0].mxu1 }
 0x21e   :  { %v5459_v61 = vadd.f32 %v1899_v60, %v507_v55  ;;  %v1901_v0 = vpop.f32.mrb[1].mxu0  ;;  %v5461_v40 = vadd.f32 %v1981_v62, %v515_v56  ;;  %v1983_v2 = vpop.f32.mrb[1].mxu1  ;;  %v526_v62 = vsub.s32 5, %v6462_v44 }
 0x21f   :  { %v5460_v1 = vadd.f32 %v1901_v0, %v511_v57  ;;  %v1903_v3 = vpop.f32.mrb[2].mxu0  ;;  %v5462_v5 = vadd.f32 %v1983_v2, %v519_v58  ;;  %v1985_v6 = vpop.f32.mrb[2].mxu1  ;;  %v2200_v0 = vld [vmem:[#allocation8] sm:$0x3] }
 0x220   :  { %v2152_v4 = vmax.f32 %v5459_v61, 0.0  ;;  %v1904_v7 = vpop.f32.mrb[3].mxu0  ;;  %v2154_v27 = vmax.f32 %v5461_v40, 0.0  ;;  %v1986_v8 = vpop.f32.mrb[3].mxu1  ;;  %v2483_v40 = vld [vmem:[#allocation8 + $0x2] sm:$0x3]  ;;  %v2205_v2 = vrot.slane %v2200_v0, %v6514_v50 }
 0x221   :  { %v2153_v9 = vmax.f32 %v5460_v1, 0.0  ;;  %v2155_v11 = vmax.f32 %v5462_v5, 0.0  ;;  %v527_v1 = vrot.slane %v6520_v52, %v526_v62  ;;  %v2488_v3 = vrot.slane %v2483_v40, %v6514_v50 }
 0x222   :  { %v2160_v10 = vpack.c.bf16 %v2152_v4, %v2152_v4  ;;  %v2162_v17 = vpack.c.bf16 %v2154_v27, %v2154_v27  ;;  %v2209_v4 = vrot.slane %v2200_v0, %v6518_v51  ;;  %v2492_v5 = vrot.slane %v2483_v40, %v6518_v51  ;;  %v5679_v0 = vld [vmem:[#allocation7 + $0x2d4] ss:$8 sps:$4 sm:$0xff]   ;;  %v5677_v40 = vld [vmem:[#allocation7 + $0x2d0] ss:$8 sps:$4 sm:$0xff]  }
 0x223   :  { %v2161_v12 = vpack.c.bf16 %v2153_v9, %v2153_v9  ;;  %v2163_v13 = vpack.c.bf16 %v2155_v11, %v2155_v11  ;;  %v522_v62 = vsub.s32 4, %v6462_v44 }
 0x225   :  { %2404 = vmatprep.mubr.bf16.mxu0 %v2161_v12  ;;  %2687 = vmatprep.mubr.bf16.mxu1 %v2163_v13 }
 0x226   :  { %2405 = vmatmul.mubr.bf16.vlgmr.msra.gmra.mrb[8].mxu0 %v2160_v10  ;;  %2688 = vmatmul.mubr.bf16.vlgmr.msra.gmra.mrb[8].mxu1 %v2162_v17 }
 0x227   :  { %5350 = vmatpush3.bf16.msra.mxu0 %v5607_v15  ;;  %5372 = vmatpush3.bf16.msra.mxu1 %v5609_v36 }
 0x228   :  { %5351 = vmatprep.subr.bf16.mxu0 %v5610_v19  ;;  %5373 = vmatprep.subr.bf16.mxu1 %v5612_v59 }
 0x22b   :  { %5352 = vmatpush3.bf16.msra.mxu0 %v5611_v20  ;;  %5374 = vmatpush3.bf16.msra.mxu1 %v5613_v21 }
 0x22c   :  { %5353 = vmatprep.subr.bf16.mxu0 %v5614_v22  ;;  %5375 = vmatprep.subr.bf16.mxu1 %v5616_v23 }
 0x22f   :  { %5354 = vmatpush3.bf16.msra.mxu0 %v5615_v24  ;;  %5376 = vmatpush3.bf16.msra.mxu1 %v5617_v25  ;;  %v5638_v25 = vld [vmem:[#allocation7 + $0x200] ss:$8 sps:$4 sm:$0xff]  }
 0x230   :  { %5355 = vmatprep.subr.bf16.mxu0 %v5618_v26  ;;  %5377 = vmatprep.subr.bf16.mxu1 %v5620_v28  ;;  %v5643_v28 = vld [vmem:[#allocation7 + $0x214] ss:$8 sps:$4 sm:$0xff]  }
 0x233   :  { %5356 = vmatpush3.bf16.msra.mxu0 %v5619_v29  ;;  %5378 = vmatpush3.bf16.msra.mxu1 %v5621_v30  ;;  %v5641_v30 = vld [vmem:[#allocation7 + $0x210] ss:$8 sps:$4 sm:$0xff]  }
 0x234   :  { %5357 = vmatprep.subr.bf16.mxu0 %v5622_v31  ;;  %5379 = vmatprep.subr.bf16.mxu1 %v5624_v32  ;;  %v5646_v31 = vld [vmem:[#allocation7 + $0x224] ss:$8 sps:$4 sm:$0xff]   ;;  %v5644_v32 = vld [vmem:[#allocation7 + $0x220] ss:$8 sps:$4 sm:$0xff]  }
 0x237   :  { %5358 = vmatpush3.bf16.msra.mxu0 %v5623_v33  ;;  %5380 = vmatpush3.bf16.msra.mxu1 %v5625_v34  ;;  %v5649_v33 = vld [vmem:[#allocation7 + $0x234] ss:$8 sps:$4 sm:$0xff]   ;;  %v5647_v34 = vld [vmem:[#allocation7 + $0x230] ss:$8 sps:$4 sm:$0xff]  }
 0x238   :  { %5359 = vmatprep.subr.bf16.mxu0 %v5626_v35  ;;  %5381 = vmatprep.subr.bf16.mxu1 %v5628_v63  ;;  %v5652_v35 = vld [vmem:[#allocation7 + $0x244] ss:$8 sps:$4 sm:$0xff]   ;;  %v5650_v63 = vld [vmem:[#allocation7 + $0x240] ss:$8 sps:$4 sm:$0xff]  }
 0x23b   :  { %5360 = vmatpush3.bf16.msra.mxu0 %v5627_v37  ;;  %5382 = vmatpush3.bf16.msra.mxu1 %v5629_v38  ;;  %v5655_v37 = vld [vmem:[#allocation7 + $0x254] ss:$8 sps:$4 sm:$0xff]   ;;  %v5653_v38 = vld [vmem:[#allocation7 + $0x250] ss:$8 sps:$4 sm:$0xff]  }
 0x23c   :  { %5361 = vmatprep.subr.bf16.mxu0 %v5630_v39  ;;  %5383 = vmatprep.subr.bf16.mxu1 %v5632_v42  ;;  %v5658_v39 = vld [vmem:[#allocation7 + $0x264] ss:$8 sps:$4 sm:$0xff]   ;;  %v5661_v42 = vld [vmem:[#allocation7 + $0x274] ss:$8 sps:$4 sm:$0xff]  }
 0x23f   :  { %5362 = vmatpush3.bf16.msra.mxu0 %v5631_v41  ;;  %5384 = vmatpush3.bf16.msra.mxu1 %v5633_v43  ;;  %v5656_v41 = vld [vmem:[#allocation7 + $0x260] ss:$8 sps:$4 sm:$0xff]   ;;  %v5659_v43 = vld [vmem:[#allocation7 + $0x270] ss:$8 sps:$4 sm:$0xff]  }
 0x240   :  { %5363 = vmatprep.subr.bf16.mxu0 %v5634_v45  ;;  %5385 = vmatprep.subr.bf16.mxu1 %v5636_v47  ;;  %v5664_v45 = vld [vmem:[#allocation7 + $0x284] ss:$8 sps:$4 sm:$0xff]   ;;  %v5667_v47 = vld [vmem:[#allocation7 + $0x294] ss:$8 sps:$4 sm:$0xff]  }
 0x243   :  { %5364 = vmatpush3.bf16.msra.mxu0 %v5635_v46  ;;  %5386 = vmatpush3.bf16.msra.mxu1 %v5637_v48  ;;  %v5662_v46 = vld [vmem:[#allocation7 + $0x280] ss:$8 sps:$4 sm:$0xff]   ;;  %v5665_v48 = vld [vmem:[#allocation7 + $0x290] ss:$8 sps:$4 sm:$0xff]  }
 0x244   :  { %3211 = vmatprep.subr.bf16.mxu0 %v5640_v49  ;;  %v5670_v49 = vld [vmem:[#allocation7 + $0x2a4] ss:$8 sps:$4 sm:$0xff]  }
 0x29d   :  { %v6529_v18 = vpop.f32.mrb[4].mxu0  ;;  %v6531_v54 = vpop.f32.mrb[4].mxu1 }
 0x29e   :  { %v2065_v55 = vpop.f32.mrb[5].mxu0  ;;  %v6533_v56 = vpop.f32.mrb[5].mxu1 }
 0x29f   :  { %v2067_v57 = vpop.f32.mrb[6].mxu0  ;;  %v2149_v58 = vpop.f32.mrb[6].mxu1  ;;  %v5464_v7 = vadd.f32 %v2065_v55, %v527_v1  ;;  %v5668_v55 = vld [vmem:[#allocation7 + $0x2a0] ss:$8 sps:$4 sm:$0xff]   ;;  %v523_v1 = vrot.slane %v6520_v52, %v522_v62  ;;  %v5707_v62 = vld [vmem:[#allocation7 + $0x314] ss:$8 sps:$4 sm:$0xff]  }
 0x2a0   :  { %v2068_v60 = vpop.f32.mrb[7].mxu0  ;;  %v2150_v61 = vpop.f32.mrb[7].mxu1  ;;  %v5673_v57 = vld [vmem:[#allocation7 + $0x2b4] ss:$8 sps:$4 sm:$0xff]   ;;  %v5671_v58 = vld [vmem:[#allocation7 + $0x2b0] ss:$8 sps:$4 sm:$0xff]  }
 0x2a1   :  { %v2157_v20 = vmax.f32 %v5464_v7, 0.0  ;;  %v5676_v60 = vld [vmem:[#allocation7 + $0x2c4] ss:$8 sps:$4 sm:$0xff]   ;;  %v5674_v61 = vld [vmem:[#allocation7 + $0x2c0] ss:$8 sps:$4 sm:$0xff]  }
 0x2a3   :  { %v2165_v29 = vpack.c.bf16 %v2157_v20, %v2157_v20  ;;  %v5700_v20 = vld [vmem:[#allocation10 + $0x178] sm:$0xff]  }
 0x2f9   :  { %v2406_v6 = vpop.f32.mrb[8].mxu0  ;;  %v2689_v9 = vpop.f32.mrb[8].mxu1 }
 0x2fa   :  { %v2407_v27 = vadd.f32 %v2406_v6, %v2205_v2  ;;  %v2408_v8 = vpop.f32.mrb[9].mxu0  ;;  %v2690_v10 = vadd.f32 %v2689_v9, %v2488_v3  ;;  %v2691_v12 = vpop.f32.mrb[9].mxu1  ;;  %v5682_v2 = vld [vmem:[#allocation7 + $0x2e4] ss:$8 sps:$4 sm:$0xff]   ;;  %v5680_v3 = vld [vmem:[#allocation7 + $0x2e0] ss:$8 sps:$4 sm:$0xff]  }
 0x2fb   :  { %v2409_v11 = vadd.f32 %v2408_v8, %v2209_v4  ;;  %v2410_v13 = vpop.f32.mrb[10].mxu0  ;;  %v2692_v15 = vadd.f32 %v2691_v12, %v2492_v5  ;;  %v2693_v16 = vpop.f32.mrb[10].mxu1  ;;  %v5463_v4 = vadd.f32 %v6529_v18, %v523_v1  ;;  %v5685_v5 = vld [vmem:[#allocation7 + $0x2f4] ss:$8 sps:$4 sm:$0xff]   ;;  %v5683_v6 = vld [vmem:[#allocation7 + $0x2f0] ss:$8 sps:$4 sm:$0xff]  }
 0x2fc   :  { %v2413_v14 = vmax.f32 %v2407_v27, 0.0  ;;  %v2411_v17 = vpop.f32.mrb[11].mxu0  ;;  %v2696_v36 = vmax.f32 %v2690_v10, 0.0  ;;  %v2694_v59 = vpop.f32.mrb[11].mxu1  ;;  %v5686_v9 = vld [vmem:[#allocation10 + $0x140] sm:$0xff]   ;;  %v5688_v10 = vld [vmem:[#allocation10 + $0x148] sm:$0xff]  }
 0x2fd   :  { %v2414_v19 = vmax.f32 %v2409_v11, 0.0  ;;  %v2697_v22 = vmax.f32 %v2692_v15, 0.0  ;;  %v2156_v7 = vmax.f32 %v5463_v4, 0.0  ;;  %v5687_v8 = vld [vmem:[#allocation10 + $0x100] sm:$0xff]   ;;  %5393 = vmatprep.subr.bf16.mxu1 %v5686_v9  ;;  %v5689_v11 = vld [vmem:[#allocation10 + $0x108] sm:$0xff]   ;;  %v5690_v12 = vld [vmem:[#allocation10 + $0x150] sm:$0xff]  }
 0x2fe   :  { %v2415_v21 = vpack.c.bf16 %v2413_v14, %v2413_v14  ;;  %v2698_v26 = vpack.c.bf16 %v2696_v36, %v2696_v36  ;;  %v5691_v13 = vld [vmem:[#allocation10 + $0x110] sm:$0xff]   ;;  %v5692_v18 = vld [vmem:[#allocation10 + $0x158] sm:$0xff]   ;;  %v5694_v15 = vld [vmem:[#allocation10 + $0x160] sm:$0xff]  }
 0x2ff   :  { %v2416_v23 = vpack.c.bf16 %v2414_v19, %v2414_v19  ;;  %v2699_v24 = vpack.c.bf16 %v2697_v22, %v2697_v22  ;;  %v2164_v27 = vpack.c.bf16 %v2156_v7, %v2156_v7  ;;  %v5693_v14 = vld [vmem:[#allocation10 + $0x118] sm:$0xff]   ;;  %v5695_v16 = vld [vmem:[#allocation10 + $0x120] sm:$0xff]   ;;  %v5696_v17 = vld [vmem:[#allocation10 + $0x168] sm:$0xff]  }
 0x300   :  { %v5697_v36 = vld [vmem:[#allocation10 + $0x128] sm:$0xff]   ;;  %v5698_v19 = vld [vmem:[#allocation10 + $0x170] sm:$0xff]   ;;  %v5704_v22 = vld [vmem:[#allocation7 + $0x304] ss:$8 sps:$4 sm:$0xff]  }
 0x301   :  { %2997 = vmatprep.mubr.bf16.mxu1 %v2416_v23  ;;  %2861 = vmatprep.mubr.bf16.mxu0 %v2699_v24  ;;  %v5699_v59 = vld [vmem:[#allocation10 + $0x130] sm:$0xff]   ;;  %v5708_v1 = vld [vmem:[#allocation7 + $0x320] ss:$8 sps:$4 sm:$0xff]   ;;  %v5716_v4 = vld [vmem:[#allocation7 + $0x344] ss:$8 sps:$4 sm:$0xff]  }
 0x302   :  { %2998 = vmatmul.mubr.bf16.vlgmr.msra.gmra.mrb[12].mxu1 %v2415_v21  ;;  %2862 = vmatmul.mubr.bf16.vlgmr.msra.gmra.mrb[12].mxu0 %v2698_v26  ;;  %v5701_v21 = vld [vmem:[#allocation10 + $0x138] sm:$0xff]   ;;  %v5717_v7 = vld [vmem:[#allocation7 + $0x350] ss:$8 sps:$4 sm:$0xff]  }
 0x303   :  { %3212 = vmatpush1.bf16.msra.mxu0 %v5638_v25  ;;  %3243 = vmatprep.mubr.bf16.mxu0 %v2165_v29  ;;  %v5720_v9 = vld [vmem:[#allocation7 + $0x360] ss:$8 sps:$4 sm:$0xff]  }
 0x304   :  { %3213 = vmatprep.subr.bf16.mxu0 %v5643_v28  ;;  %5394 = vmatpush3.bf16.msra.mxu1 %v5687_v8  ;;  %v5725_v8 = vld [vmem:[#allocation7 + $0x374] ss:$8 sps:$4 sm:$0xff]  }
 0x305   :  { %5395 = vmatprep.subr.bf16.mxu1 %v5688_v10  ;;  %v5723_v10 = vld [vmem:[#allocation7 + $0x370] ss:$8 sps:$4 sm:$0xff]  }
 0x307   :  { %3214 = vmatpush1.bf16.msra.mxu0 %v5641_v30 }
 0x308   :  { %3215 = vmatprep.subr.bf16.mxu0 %v5646_v31  ;;  %5396 = vmatpush3.bf16.msra.mxu1 %v5689_v11  ;;  %v5728_v11 = vld [vmem:[#allocation7 + $0x384] ss:$8 sps:$4 sm:$0xff]  }
 0x309   :  { %5397 = vmatprep.subr.bf16.mxu1 %v5690_v12  ;;  %v5726_v12 = vld [vmem:[#allocation7 + $0x380] ss:$8 sps:$4 sm:$0xff]  }
 0x30b   :  { %3216 = vmatpush1.bf16.msra.mxu0 %v5644_v32 }
 0x30c   :  { %3217 = vmatprep.subr.bf16.mxu0 %v5649_v33  ;;  %5398 = vmatpush3.bf16.msra.mxu1 %v5691_v13  ;;  %v5731_v13 = vld [vmem:[#allocation7 + $0x394] ss:$8 sps:$4 sm:$0xff]  }
 0x30d   :  { %5399 = vmatprep.subr.bf16.mxu1 %v5692_v18  ;;  %v5729_v18 = vld [vmem:[#allocation7 + $0x390] ss:$8 sps:$4 sm:$0xff]  }
 0x30f   :  { %3218 = vmatpush1.bf16.msra.mxu0 %v5647_v34 }
 0x310   :  { %3219 = vmatprep.subr.bf16.mxu0 %v5652_v35  ;;  %5400 = vmatpush3.bf16.msra.mxu1 %v5693_v14  ;;  %v534_v35 = vsub.s32 7, %v6462_v44  ;;  %v5734_v14 = vld [vmem:[#allocation7 + $0x3a4] ss:$8 sps:$4 sm:$0xff]  }
 0x311   :  { %5401 = vmatprep.subr.bf16.mxu1 %v5694_v15  ;;  %v5732_v15 = vld [vmem:[#allocation7 + $0x3a0] ss:$8 sps:$4 sm:$0xff]  }
 0x313   :  { %3220 = vmatpush1.bf16.msra.mxu0 %v5650_v63  ;;  %v3039_v63 = vld [vmem:[#allocation8 + $0x4] sm:$0x3] }
 0x314   :  { %3221 = vmatprep.subr.bf16.mxu0 %v5655_v37  ;;  %5402 = vmatpush3.bf16.msra.mxu1 %v5695_v16  ;;  %v535_v37 = vrot.slane %v6520_v52, %v534_v35  ;;  %v5737_v16 = vld [vmem:[#allocation7 + $0x3b4] ss:$8 sps:$4 sm:$0xff]  }
 0x315   :  { %5403 = vmatprep.subr.bf16.mxu1 %v5696_v17  ;;  %v5735_v17 = vld [vmem:[#allocation7 + $0x3b0] ss:$8 sps:$4 sm:$0xff]  }
 0x316   :  { %v5755_v35 = vld [vmem:[#allocation10 + $0x190] sm:$0xff]  }
 0x317   :  { %3222 = vmatpush1.bf16.msra.mxu0 %v5653_v38  ;;  %v3044_v38 = vrot.slane %v3039_v63, %v6514_v50 }
 0x318   :  { %3223 = vmatprep.subr.bf16.mxu0 %v5658_v39  ;;  %5404 = vmatpush3.bf16.msra.mxu1 %v5697_v36  ;;  %v3048_v39 = vrot.slane %v3039_v63, %v6518_v51  ;;  %v5740_v36 = vld [vmem:[#allocation7 + $0x3c4] ss:$8 sps:$4 sm:$0xff]  }
 0x319   :  { %5405 = vmatprep.subr.bf16.mxu1 %v5698_v19  ;;  %v5738_v19 = vld [vmem:[#allocation7 + $0x3c0] ss:$8 sps:$4 sm:$0xff]  }
 0x31a   :  { %v5757_v63 = vld [vmem:[#allocation10 + $0x198] sm:$0xff]  }
 0x31b   :  { %3224 = vmatpush1.bf16.msra.mxu0 %v5656_v41  ;;  %v5466_v41 = vadd.f32 %v6533_v56, %v535_v37  ;;  %v5710_v56 = vld [vmem:[#allocation7 + $0x324] ss:$8 sps:$4 sm:$0xff]  }
 0x31c   :  { %3225 = vmatprep.subr.bf16.mxu0 %v5661_v42  ;;  %5406 = vmatpush3.bf16.msra.mxu1 %v5699_v59  ;;  %v530_v59 = vsub.s32 6, %v6462_v44  ;;  %v5758_v37 = vld [vmem:[#allocation10 + $0x1e0] sm:$0xff]  }
 0x31d   :  { %5407 = vmatprep.subr.bf16.mxu1 %v5700_v20  ;;  %v5743_v20 = vld [vmem:[#allocation7 + $0x3d4] ss:$8 sps:$4 sm:$0xff]  }
 0x31f   :  { %3226 = vmatpush1.bf16.msra.mxu0 %v5659_v43 }
 0x320   :  { %3227 = vmatprep.subr.bf16.mxu0 %v5664_v45  ;;  %5408 = vmatpush3.bf16.msra.mxu1 %v5701_v21  ;;  %v5741_v21 = vld [vmem:[#allocation7 + $0x3d0] ss:$8 sps:$4 sm:$0xff]  }
 0x321   :  { %3632 = vmatprep.subr.bf16.mxu1 %v5704_v22  ;;  %v531_v22 = vrot.slane %v6520_v52, %v530_v59  ;;  %v5753_v52 = vld [vmem:[#allocation10 + $0x188] sm:$0xff]   ;;  %v5781_v59 = vld [vmem:[#allocation13 + $0x50] ss:$8 sps:$4 sm:$0xff]  }
 0x323   :  { %3228 = vmatpush1.bf16.msra.mxu0 %v5662_v46 }
 0x324   :  { %3229 = vmatprep.subr.bf16.mxu0 %v5667_v47 }
 0x327   :  { %3230 = vmatpush1.bf16.msra.mxu0 %v5665_v48 }
 0x328   :  { %3231 = vmatprep.subr.bf16.mxu0 %v5670_v49 }
 0x32b   :  { %3232 = vmatpush1.bf16.msra.mxu0 %v5668_v55  ;;  %v2159_v55 = vmax.f32 %v5466_v41, 0.0  ;;  %v5761_v41 = vld [vmem:[#allocation10 + $0x1a8] sm:$0xff]  }
 0x32c   :  { %3233 = vmatprep.subr.bf16.mxu0 %v5673_v57 }
 0x32f   :  { %3234 = vmatpush1.bf16.msra.mxu0 %v5671_v58 }
 0x330   :  { %3235 = vmatprep.subr.bf16.mxu0 %v5676_v60  ;;  %v5702_v60 = vld [vmem:[#allocation7 + $0x300] ss:$8 sps:$4 sm:$0xff]  }
 0x333   :  { %3236 = vmatpush1.bf16.msra.mxu0 %v5674_v61 }
 0x334   :  { %3237 = vmatprep.subr.bf16.mxu0 %v5679_v0  ;;  %v2167_v0 = vpack.c.bf16 %v2159_v55, %v2159_v55 }
 0x337   :  { %3238 = vmatpush1.bf16.msra.mxu0 %v5677_v40  ;;  %v5705_v40 = vld [vmem:[#allocation7 + $0x310] ss:$8 sps:$4 sm:$0xff]  }
 0x338   :  { %3239 = vmatprep.subr.bf16.mxu0 %v5682_v2  ;;  %v5713_v2 = vld [vmem:[#allocation7 + $0x334] ss:$8 sps:$4 sm:$0xff]  }
 0x33b   :  { %3240 = vmatpush1.bf16.msra.mxu0 %v5680_v3  ;;  %v5711_v3 = vld [vmem:[#allocation7 + $0x330] ss:$8 sps:$4 sm:$0xff]  }
 0x33c   :  { %3241 = vmatprep.subr.bf16.mxu0 %v5685_v5  ;;  %v5714_v5 = vld [vmem:[#allocation7 + $0x340] ss:$8 sps:$4 sm:$0xff]  }
 0x33f   :  { %3242 = vmatpush1.bf16.msra.mxu0 %v5683_v6  ;;  %v5719_v6 = vld [vmem:[#allocation7 + $0x354] ss:$8 sps:$4 sm:$0xff]  }
 0x342   :  { %3244 = vmatmul.mubr.bf16.vlgmr.msra.gmra.mrb[16].mxu0 %v2164_v27  ;;  %v5722_v27 = vld [vmem:[#allocation7 + $0x364] ss:$8 sps:$4 sm:$0xff]  }
 0x3d5   :  { %v5387_v23 = vpop.f32.mrb[12].mxu1  ;;  %v5365_v24 = vpop.f32.mrb[12].mxu0 }
 0x3d6   :  { %v5388_v25 = vpop.f32.mrb[13].mxu1  ;;  %v5366_v26 = vpop.f32.mrb[13].mxu0 }
 0x3d7   :  { %v5389_v28 = vadd.f32 %v5388_v25, %v5387_v23  ;;  %v5390_v29 = vpop.f32.mrb[14].mxu1  ;;  %v5367_v30 = vadd.f32 %v5366_v26, %v5365_v24  ;;  %v5368_v31 = vpop.f32.mrb[14].mxu0  ;;  %v5746_v23 = vld [vmem:[#allocation7 + $0x3e4] ss:$8 sps:$4 sm:$0xff]   ;;  %v5744_v24 = vld [vmem:[#allocation7 + $0x3e0] ss:$8 sps:$4 sm:$0xff]   ;;  %v5465_v25 = vadd.f32 %v6531_v54, %v531_v22 }
 0x3d8   :  { %v5391_v32 = vpop.f32.mrb[15].mxu1  ;;  %v5369_v33 = vpop.f32.mrb[15].mxu0  ;;  %v5749_v26 = vld [vmem:[#allocation7 + $0x3f4] ss:$8 sps:$4 sm:$0xff]   ;;  %v5751_v31 = vld [vmem:[#allocation10 + $0x180] sm:$0xff]   ;;  %v5756_v54 = vld [vmem:[#allocation10 + $0x1d8] sm:$0xff]  }
 0x3d9   :  { %v6544_v34 = vadd.f32 %v5389_v28, %v5367_v30  ;;  %v5747_v28 = vld [vmem:[#allocation7 + $0x3f0] ss:$8 sps:$4 sm:$0xff]   ;;  %v2158_v29 = vmax.f32 %v5465_v25, 0.0  ;;  %v5750_v30 = vld [vmem:[#allocation10 + $0x1c0] sm:$0xff]  }
 0x3da   :  { %v5752_v32 = vld [vmem:[#allocation10 + $0x1c8] sm:$0xff]   ;;  %5415 = vmatprep.subr.bf16.mxu0 %v5750_v30  ;;  %v5754_v33 = vld [vmem:[#allocation10 + $0x1d0] sm:$0xff]  }
 0x3db   :  { %v2166_v44 = vpack.c.bf16 %v2158_v29, %v2158_v29  ;;  %5416 = vmatpush3.bf16.msra.mxu0 %v5751_v31  ;;  %v5789_v22 = vld [vmem:[#allocation13 + $0x74] ss:$8 sps:$4 sm:$0xff]   ;;  %v5790_v25 = vld [vmem:[#allocation13 + $0x80] ss:$8 sps:$4 sm:$0xff]   ;;  %v5798_v29 = vld [vmem:[#allocation13 + $0xa4] ss:$8 sps:$4 sm:$0xff]  }
 0x3dc   :  { %5417 = vmatprep.subr.bf16.mxu0 %v5752_v32  ;;  %v5801_v30 = vld [vmem:[#allocation13 + $0xb4] ss:$8 sps:$4 sm:$0xff]   ;;  %v5799_v31 = vld [vmem:[#allocation13 + $0xb0] ss:$8 sps:$4 sm:$0xff]   ;;  %v5804_v32 = vld [vmem:[#allocation13 + $0xc4] ss:$8 sps:$4 sm:$0xff]  }
 0x3df   :  { %5418 = vmatpush3.bf16.msra.mxu0 %v5753_v52  ;;  %v5802_v52 = vld [vmem:[#allocation13 + $0xc0] ss:$8 sps:$4 sm:$0xff]  }
 0x3e0   :  { %5419 = vmatprep.subr.bf16.mxu0 %v5754_v33  ;;  %v5807_v33 = vld [vmem:[#allocation13 + $0xd4] ss:$8 sps:$4 sm:$0xff]  }
 0x3e3   :  { %5420 = vmatpush3.bf16.msra.mxu0 %v5755_v35  ;;  %v5805_v35 = vld [vmem:[#allocation13 + $0xd0] ss:$8 sps:$4 sm:$0xff]  }
 0x3e4   :  { %5421 = vmatprep.subr.bf16.mxu0 %v5756_v54 }
 0x3e7   :  { %5422 = vmatpush3.bf16.msra.mxu0 %v5757_v63  ;;  %v5810_v63 = vld [vmem:[#allocation13 + $0xe4] ss:$8 sps:$4 sm:$0xff]  }
 0x3e8   :  { %5423 = vmatprep.subr.bf16.mxu0 %v5758_v37  ;;  %v5808_v37 = vld [vmem:[#allocation13 + $0xe0] ss:$8 sps:$4 sm:$0xff]  }
 0x415   :  { %v3245_v42 = vpop.f32.mrb[16].mxu0 }
 0x416   :  { %v3246_v43 = vadd.f32 %v3245_v42, %v3044_v38  ;;  %v3247_v45 = vpop.f32.mrb[17].mxu0  ;;  %v5759_v38 = vld [vmem:[#allocation10 + $0x1a0] sm:$0xff]   ;;  %v5762_v42 = vld [vmem:[#allocation10 + $0x1f0] sm:$0xff]  }
 0x417   :  { %v3248_v46 = vadd.f32 %v3247_v45, %v3048_v39  ;;  %v3249_v47 = vpop.f32.mrb[18].mxu0  ;;  %v5760_v39 = vld [vmem:[#allocation10 + $0x1e8] sm:$0xff]   ;;  %5424 = vmatpush3.bf16.msra.mxu0 %v5759_v38  ;;  %v5764_v45 = vld [vmem:[#allocation10 + $0x1f8] sm:$0xff]  }
 0x418   :  { %v3252_v48 = vmax.f32 %v3246_v43, 0.0  ;;  %v3250_v49 = vpop.f32.mrb[19].mxu0  ;;  %5425 = vmatprep.subr.bf16.mxu0 %v5760_v39  ;;  %v5763_v43 = vld [vmem:[#allocation10 + $0x1b0] sm:$0xff]  }
 0x419   :  { %v3253_v57 = vmax.f32 %v3248_v46, 0.0  ;;  %v5765_v46 = vld [vmem:[#allocation10 + $0x1b8] sm:$0xff]   ;;  %v5768_v47 = vld [vmem:[#allocation13 + $0x4] ss:$8 sps:$4 sm:$0xff]  }
 0x41a   :  { %v3254_v61 = vpack.c.bf16 %v3252_v48, %v3252_v48  ;;  %v5813_v39 = vld [vmem:[#allocation13 + $0xf4] ss:$8 sps:$4 sm:$0xff]  }
 0x41b   :  { %v3255_v58 = vpack.c.bf16 %v3253_v57, %v3253_v57  ;;  %5426 = vmatpush3.bf16.msra.mxu0 %v5761_v41  ;;  %v5811_v41 = vld [vmem:[#allocation13 + $0xf0] ss:$8 sps:$4 sm:$0xff]  }
 0x41c   :  { %5427 = vmatprep.subr.bf16.mxu0 %v5762_v42 }
 0x41d   :  { %3417 = vmatprep.mubr.bf16.mxu1 %v3255_v58 }
 0x41e   :  { %3418 = vmatmul.mubr.bf16.vlgmr.msra.gmra.mrb[16].mxu1 %v3254_v61  ;;  %v3460_v61 = vld [vmem:[#allocation8 + $0x6] sm:$0x3] }
 0x41f   :  { %3633 = vmatpush1.bf16.msra.mxu1 %v5702_v60  ;;  %3664 = vmatprep.mubr.bf16.mxu1 %v2167_v0  ;;  %v3465_v0 = vrot.slane %v3460_v61, %v6514_v50 }
 0x420   :  { %3634 = vmatprep.subr.bf16.mxu1 %v5707_v62  ;;  %5428 = vmatpush3.bf16.msra.mxu0 %v5763_v43  ;;  %v6560_v62 = vld [vmem:[%s6605_s1] sm:$0xff] }
 0x421   :  { %5429 = vmatprep.subr.bf16.mxu0 %v5764_v45  ;;  %v221_v54 = vcombine.high %v6560_v62, %v6560_v62  ;;  %v5816_v43 = vld [vmem:[#allocation13 + $0x104] ss:$8 sps:$4 sm:$0xff]  }
 0x423   :  { %3635 = vmatpush1.bf16.msra.mxu1 %v5705_v40  ;;  %v3469_v40 = vrot.slane %v3460_v61, %v6518_v51  ;;  %v6573_v38 = vrot.slane %v221_v54, %v6465_v53  ;;  %v5828_v61 = vld [vmem:[#allocation13 + $0x144] ss:$8 sps:$4 sm:$0xff]  }
 0x424   :  { %3636 = vmatprep.subr.bf16.mxu1 %v5710_v56  ;;  %5430 = vmatpush3.bf16.msra.mxu0 %v5765_v46  ;;  %v6566_v56 = vrot.slane %v6560_v62, %v6465_v53  ;;  %v5814_v46 = vld [vmem:[#allocation13 + $0x100] ss:$8 sps:$4 sm:$0xff]   ;;  %v5817_v53 = vld [vmem:[#allocation13 + $0x110] ss:$8 sps:$4 sm:$0xff]   ;;  %v5895_v54 = vld [vmem:[#allocation14 + $0xa4] ss:$8 sps:$4 sm:$0xff]  }
 0x425   :  { %4252 = vmatprep.subr.bf16.mxu0 %v5768_v47  ;;  %v237_v42 = vcombine.high %v6573_v38, %v6573_v38  ;;  %v5826_v62 = vld [vmem:[#allocation13 + $0x140] ss:$8 sps:$4 sm:$0xff]  }
 0x426   :  { %v242_v45 = vpack.c.bf16 %v6566_v56, %v6566_v56 }
 0x427   :  { %3637 = vmatpush1.bf16.msra.mxu1 %v5708_v1  ;;  %v245_v47 = vpack.c.bf16 %v237_v42, %v237_v42  ;;  %v5901_v42 = vld [vmem:[#allocation14 + $0xc4] ss:$8 sps:$4 sm:$0xff]  }
 0x428   :  { %3638 = vmatprep.subr.bf16.mxu1 %v5713_v2 }
 0x42b   :  { %3639 = vmatpush1.bf16.msra.mxu1 %v5711_v3 }
 0x42c   :  { %3640 = vmatprep.subr.bf16.mxu1 %v5716_v4 }
 0x42f   :  { %3641 = vmatpush1.bf16.msra.mxu1 %v5714_v5  ;;  %v236_v5 = vcombine.high %v6566_v56, %v6566_v56  ;;  %v5834_v56 = vld [vmem:[#allocation13 + $0x164] ss:$8 sps:$4 sm:$0xff]  }
 0x430   :  { %3642 = vmatprep.subr.bf16.mxu1 %v5719_v6 }
 0x433   :  { %3643 = vmatpush1.bf16.msra.mxu1 %v5717_v7 }
 0x434   :  { %3644 = vmatprep.subr.bf16.mxu1 %v5722_v27 }
 0x437   :  { %3645 = vmatpush1.bf16.msra.mxu1 %v5720_v9 }
 0x438   :  { %3646 = vmatprep.subr.bf16.mxu1 %v5725_v8  ;;  %v5766_v8 = vld [vmem:[#allocation13] ss:$8 sps:$4 sm:$0xff]  }
 0x43b   :  { %3647 = vmatpush1.bf16.msra.mxu1 %v5723_v10  ;;  %v243_v10 = vpack.c.bf16 %v236_v5, %v236_v5  ;;  %v5835_v5 = vld [vmem:[#allocation13 + $0x170] ss:$8 sps:$4 sm:$0xff]  }
 0x43c   :  { %3648 = vmatprep.subr.bf16.mxu1 %v5728_v11 }
 0x43f   :  { %3649 = vmatpush1.bf16.msra.mxu1 %v5726_v12  ;;  %v5771_v12 = vld [vmem:[#allocation13 + $0x14] ss:$8 sps:$4 sm:$0xff]  }
 0x440   :  { %3650 = vmatprep.subr.bf16.mxu1 %v5731_v13  ;;  %v5769_v13 = vld [vmem:[#allocation13 + $0x10] ss:$8 sps:$4 sm:$0xff]  }
 0x443   :  { %3651 = vmatpush1.bf16.msra.mxu1 %v5729_v18  ;;  %v5774_v18 = vld [vmem:[#allocation13 + $0x24] ss:$8 sps:$4 sm:$0xff]  }
 0x444   :  { %3652 = vmatprep.subr.bf16.mxu1 %v5734_v14  ;;  %v5772_v14 = vld [vmem:[#allocation13 + $0x20] ss:$8 sps:$4 sm:$0xff]  }
 0x447   :  { %3653 = vmatpush1.bf16.msra.mxu1 %v5732_v15  ;;  %v5777_v15 = vld [vmem:[#allocation13 + $0x34] ss:$8 sps:$4 sm:$0xff]  }
 0x448   :  { %3654 = vmatprep.subr.bf16.mxu1 %v5737_v16  ;;  %v5775_v16 = vld [vmem:[#allocation13 + $0x30] ss:$8 sps:$4 sm:$0xff]  }
 0x44b   :  { %3655 = vmatpush1.bf16.msra.mxu1 %v5735_v17  ;;  %v5780_v17 = vld [vmem:[#allocation13 + $0x44] ss:$8 sps:$4 sm:$0xff]  }
 0x44c   :  { %3656 = vmatprep.subr.bf16.mxu1 %v5740_v36  ;;  %v5778_v36 = vld [vmem:[#allocation13 + $0x40] ss:$8 sps:$4 sm:$0xff]  }
 0x44f   :  { %3657 = vmatpush1.bf16.msra.mxu1 %v5738_v19  ;;  %v5783_v19 = vld [vmem:[#allocation13 + $0x54] ss:$8 sps:$4 sm:$0xff]  }
 0x450   :  { %3658 = vmatprep.subr.bf16.mxu1 %v5743_v20  ;;  %v5786_v20 = vld [vmem:[#allocation13 + $0x64] ss:$8 sps:$4 sm:$0xff]  }
 0x453   :  { %3659 = vmatpush1.bf16.msra.mxu1 %v5741_v21  ;;  %v5784_v21 = vld [vmem:[#allocation13 + $0x60] ss:$8 sps:$4 sm:$0xff]  }
 0x454   :  { %3660 = vmatprep.subr.bf16.mxu1 %v5746_v23  ;;  %v5787_v23 = vld [vmem:[#allocation13 + $0x70] ss:$8 sps:$4 sm:$0xff]  }
 0x457   :  { %3661 = vmatpush1.bf16.msra.mxu1 %v5744_v24  ;;  %v5792_v24 = vld [vmem:[#allocation13 + $0x84] ss:$8 sps:$4 sm:$0xff]  }
 0x458   :  { %3662 = vmatprep.subr.bf16.mxu1 %v5749_v26  ;;  %v5795_v26 = vld [vmem:[#allocation13 + $0x94] ss:$8 sps:$4 sm:$0xff]  }
 0x45b   :  { %3663 = vmatpush1.bf16.msra.mxu1 %v5747_v28  ;;  %v5793_v28 = vld [vmem:[#allocation13 + $0x90] ss:$8 sps:$4 sm:$0xff]  }
 0x45e   :  { %3665 = vmatmul.mubr.bf16.vlgmr.msra.gmra.mrb[20].mxu1 %v2166_v44  ;;  %v5796_v44 = vld [vmem:[#allocation13 + $0xa0] ss:$8 sps:$4 sm:$0xff]  }
 0x4f1   :  { %v5409_v48 = vpop.f32.mrb[16].mxu1 }
 0x4f2   :  { %v5410_v49 = vpop.f32.mrb[17].mxu1 }
 0x4f3   :  { %v5411_v55 = vadd.f32 %v5410_v49, %v5409_v48  ;;  %v5412_v57 = vpop.f32.mrb[18].mxu1  ;;  %v5819_v48 = vld [vmem:[#allocation13 + $0x114] ss:$8 sps:$4 sm:$0xff]   ;;  %v5822_v49 = vld [vmem:[#allocation13 + $0x124] ss:$8 sps:$4 sm:$0xff]  }
 0x4f4   :  { %v5413_v58 = vpop.f32.mrb[19].mxu1  ;;  %v5825_v57 = vld [vmem:[#allocation13 + $0x134] ss:$8 sps:$4 sm:$0xff]  }
 0x4f5   :  { %v6555_v60 = vadd.f32 %v5411_v55, %v6544_v34  ;;  %v5820_v55 = vld [vmem:[#allocation13 + $0x120] ss:$8 sps:$4 sm:$0xff]   ;;  %v5823_v58 = vld [vmem:[#allocation13 + $0x130] ss:$8 sps:$4 sm:$0xff]  }
 0x531   :  { %v3666_v1 = vpop.f32.mrb[20].mxu1 }
 0x532   :  { %v3667_v2 = vadd.f32 %v3666_v1, %v3465_v0  ;;  %v3668_v3 = vpop.f32.mrb[21].mxu1  ;;  %v5831_v0 = vld [vmem:[#allocation13 + $0x154] ss:$8 sps:$4 sm:$0xff]   ;;  %v5832_v1 = vld [vmem:[#allocation13 + $0x160] ss:$8 sps:$4 sm:$0xff]  }
 0x533   :  { %v3669_v4 = vadd.f32 %v3668_v3, %v3469_v40  ;;  %v3670_v34 = vpop.f32.mrb[22].mxu1  ;;  %v5829_v40 = vld [vmem:[#allocation13 + $0x150] ss:$8 sps:$4 sm:$0xff]   ;;  %v5863_v3 = vld [vmem:[#allocation14] ss:$8 sps:$4 sm:$0xff]  }
 0x534   :  { %v3673_v6 = vmax.f32 %v3667_v2, 0.0  ;;  %v3671_v7 = vpop.f32.mrb[23].mxu1  ;;  %v5837_v2 = vld [vmem:[#allocation13 + $0x174] ss:$8 sps:$4 sm:$0xff]  }
 0x535   :  { %v3674_v27 = vmax.f32 %v3669_v4, 0.0  ;;  %v5865_v4 = vld [vmem:[#allocation14 + $0x4] ss:$8 sps:$4 sm:$0xff]   ;;  %v5868_v34 = vld [vmem:[#allocation14 + $0x14] ss:$8 sps:$4 sm:$0xff]  }
 0x536   :  { %v3675_v11 = vpack.c.bf16 %v3673_v6, %v3673_v6  ;;  %4542 = vmatprep.subr.bf16.mxu1 %v5865_v4  ;;  %v5840_v6 = vld [vmem:[#allocation13 + $0x184] ss:$8 sps:$4 sm:$0xff]   ;;  %v5866_v7 = vld [vmem:[#allocation14 + $0x10] ss:$8 sps:$4 sm:$0xff]  }
 0x537   :  { %v3676_v9 = vpack.c.bf16 %v3674_v27, %v3674_v27  ;;  %4543 = vmatpush1.bf16.msra.mxu1 %v5863_v3  ;;  %v5871_v27 = vld [vmem:[#allocation14 + $0x24] ss:$8 sps:$4 sm:$0xff]  }
 0x538   :  { %4544 = vmatprep.subr.bf16.mxu1 %v5868_v34 }
 0x539   :  { %3838 = vmatprep.mubr.bf16.mxu0 %v3676_v9  ;;  %v5838_v9 = vld [vmem:[#allocation13 + $0x180] ss:$8 sps:$4 sm:$0xff]  }
 0x53a   :  { %3839 = vmatmul.mubr.bf16.vlgmr.msra.gmra.mrb[20].mxu0 %v3675_v11  ;;  %v5874_v11 = vld [vmem:[#allocation14 + $0x34] ss:$8 sps:$4 sm:$0xff]  }
 0x53b   :  { %4253 = vmatpush1.bf16.msra.mxu0 %v5766_v8  ;;  %4284 = vmatprep.mubr.bf16.mxu0 %v243_v10  ;;  %v5843_v8 = vld [vmem:[#allocation13 + $0x194] ss:$8 sps:$4 sm:$0xff]   ;;  %v5869_v10 = vld [vmem:[#allocation14 + $0x20] ss:$8 sps:$4 sm:$0xff]  }
 0x53c   :  { %4254 = vmatprep.subr.bf16.mxu0 %v5771_v12  ;;  %4545 = vmatpush1.bf16.msra.mxu1 %v5866_v7  ;;  %v5841_v12 = vld [vmem:[#allocation13 + $0x190] ss:$8 sps:$4 sm:$0xff]  }
 0x53d   :  { %4546 = vmatprep.subr.bf16.mxu1 %v5871_v27 }
 0x53f   :  { %4255 = vmatpush1.bf16.msra.mxu0 %v5769_v13  ;;  %v5846_v13 = vld [vmem:[#allocation13 + $0x1a4] ss:$8 sps:$4 sm:$0xff]  }
 0x540   :  { %4256 = vmatprep.subr.bf16.mxu0 %v5774_v18  ;;  %4547 = vmatpush1.bf16.msra.mxu1 %v5869_v10  ;;  %v5872_v18 = vld [vmem:[#allocation14 + $0x30] ss:$8 sps:$4 sm:$0xff]   ;;  %v5912_v10 = vld [vmem:[#allocation17] sm:$0xff]  }
 0x541   :  { %4548 = vmatprep.subr.bf16.mxu1 %v5874_v11 }
 0x543   :  { %4257 = vmatpush1.bf16.msra.mxu0 %v5772_v14  ;;  %v5877_v14 = vld [vmem:[#allocation14 + $0x44] ss:$8 sps:$4 sm:$0xff]  }
 0x544   :  { %4258 = vmatprep.subr.bf16.mxu0 %v5777_v15  ;;  %v5844_v15 = vld [vmem:[#allocation13 + $0x1a0] ss:$8 sps:$4 sm:$0xff]   ;;  %4549 = vmatpush1.bf16.msra.mxu1 %v5872_v18  ;;  %v5915_v18 = vld [vmem:[#allocation17 + $0x50] sm:$0xff]  }
 0x545   :  { %4550 = vmatprep.subr.bf16.mxu1 %v5877_v14  ;;  %v5916_v14 = vld [vmem:[#allocation17 + $0x10] sm:$0xff]  }
 0x547   :  { %4259 = vmatpush1.bf16.msra.mxu0 %v5775_v16  ;;  %v5849_v16 = vld [vmem:[#allocation13 + $0x1b4] ss:$8 sps:$4 sm:$0xff]  }
 0x548   :  { %4260 = vmatprep.subr.bf16.mxu0 %v5780_v17  ;;  %v5875_v17 = vld [vmem:[#allocation14 + $0x40] ss:$8 sps:$4 sm:$0xff]  }
 0x549   :  { %4551 = vmatpush1.bf16.msra.mxu1 %v5875_v17  ;;  %v5919_v17 = vld [vmem:[#allocation17 + $0x60] sm:$0xff]  }
 0x54b   :  { %4261 = vmatpush1.bf16.msra.mxu0 %v5778_v36  ;;  %v5880_v36 = vld [vmem:[#allocation14 + $0x54] ss:$8 sps:$4 sm:$0xff]  }
 0x54c   :  { %4262 = vmatprep.subr.bf16.mxu0 %v5783_v19  ;;  %v5847_v19 = vld [vmem:[#allocation13 + $0x1b0] ss:$8 sps:$4 sm:$0xff]   ;;  %4552 = vmatprep.subr.bf16.mxu1 %v5880_v36  ;;  %v5920_v36 = vld [vmem:[#allocation17 + $0x20] sm:$0xff]  }
 0x54f   :  { %4263 = vmatpush1.bf16.msra.mxu0 %v5781_v59  ;;  %v5852_v59 = vld [vmem:[#allocation13 + $0x1c4] ss:$8 sps:$4 sm:$0xff]  }
 0x550   :  { %4264 = vmatprep.subr.bf16.mxu0 %v5786_v20  ;;  %v5878_v20 = vld [vmem:[#allocation14 + $0x50] ss:$8 sps:$4 sm:$0xff]  }
 0x551   :  { %4553 = vmatpush1.bf16.msra.mxu1 %v5878_v20  ;;  %v5923_v20 = vld [vmem:[#allocation17 + $0x70] sm:$0xff]  }
 0x553   :  { %4265 = vmatpush1.bf16.msra.mxu0 %v5784_v21  ;;  %v5883_v21 = vld [vmem:[#allocation14 + $0x64] ss:$8 sps:$4 sm:$0xff]  }
 0x554   :  { %4266 = vmatprep.subr.bf16.mxu0 %v5789_v22  ;;  %v5850_v22 = vld [vmem:[#allocation13 + $0x1c0] ss:$8 sps:$4 sm:$0xff]   ;;  %4554 = vmatprep.subr.bf16.mxu1 %v5883_v21  ;;  %v5924_v21 = vld [vmem:[#allocation17 + $0x30] sm:$0xff]  }
 0x557   :  { %4267 = vmatpush1.bf16.msra.mxu0 %v5787_v23  ;;  %v5855_v23 = vld [vmem:[#allocation13 + $0x1d4] ss:$8 sps:$4 sm:$0xff]  }
 0x558   :  { %4268 = vmatprep.subr.bf16.mxu0 %v5792_v24  ;;  %v5881_v24 = vld [vmem:[#allocation14 + $0x60] ss:$8 sps:$4 sm:$0xff]  }
 0x559   :  { %4555 = vmatpush1.bf16.msra.mxu1 %v5881_v24  ;;  %v4370_v24 = vld [vmem:[#allocation16] sm:$0x3] }
 0x55b   :  { %4269 = vmatpush1.bf16.msra.mxu0 %v5790_v25  ;;  %v5886_v25 = vld [vmem:[#allocation14 + $0x74] ss:$8 sps:$4 sm:$0xff]  }
 0x55c   :  { %4270 = vmatprep.subr.bf16.mxu0 %v5795_v26  ;;  %v5853_v26 = vld [vmem:[#allocation13 + $0x1d0] ss:$8 sps:$4 sm:$0xff]   ;;  %4556 = vmatprep.subr.bf16.mxu1 %v5886_v25  ;;  %v4375_v25 = vrot.slane %v4370_v24, %v6514_v50 }
 0x55f   :  { %4271 = vmatpush1.bf16.msra.mxu0 %v5793_v28  ;;  %v5858_v28 = vld [vmem:[#allocation13 + $0x1e4] ss:$8 sps:$4 sm:$0xff]  }
 0x560   :  { %4272 = vmatprep.subr.bf16.mxu0 %v5798_v29  ;;  %v5884_v29 = vld [vmem:[#allocation14 + $0x70] ss:$8 sps:$4 sm:$0xff]  }
 0x561   :  { %4557 = vmatpush1.bf16.msra.mxu1 %v5884_v29 }
 0x563   :  { %4273 = vmatpush1.bf16.msra.mxu0 %v5796_v44  ;;  %v5889_v44 = vld [vmem:[#allocation14 + $0x84] ss:$8 sps:$4 sm:$0xff]  }
 0x564   :  { %4274 = vmatprep.subr.bf16.mxu0 %v5801_v30  ;;  %v5856_v30 = vld [vmem:[#allocation13 + $0x1e0] ss:$8 sps:$4 sm:$0xff]   ;;  %4558 = vmatprep.subr.bf16.mxu1 %v5889_v44 }
 0x567   :  { %4275 = vmatpush1.bf16.msra.mxu0 %v5799_v31  ;;  %v5861_v31 = vld [vmem:[#allocation13 + $0x1f4] ss:$8 sps:$4 sm:$0xff]  }
 0x568   :  { %4276 = vmatprep.subr.bf16.mxu0 %v5804_v32  ;;  %v5887_v32 = vld [vmem:[#allocation14 + $0x80] ss:$8 sps:$4 sm:$0xff]  }
 0x569   :  { %4559 = vmatpush1.bf16.msra.mxu1 %v5887_v32 }
 0x56b   :  { %4277 = vmatpush1.bf16.msra.mxu0 %v5802_v52  ;;  %v5892_v52 = vld [vmem:[#allocation14 + $0x94] ss:$8 sps:$4 sm:$0xff]  }
 0x56c   :  { %4278 = vmatprep.subr.bf16.mxu0 %v5807_v33  ;;  %v5859_v33 = vld [vmem:[#allocation13 + $0x1f0] ss:$8 sps:$4 sm:$0xff]   ;;  %4560 = vmatprep.subr.bf16.mxu1 %v5892_v52 }
 0x56f   :  { %4279 = vmatpush1.bf16.msra.mxu0 %v5805_v35  ;;  %v5890_v35 = vld [vmem:[#allocation14 + $0x90] ss:$8 sps:$4 sm:$0xff]  }
 0x570   :  { %4280 = vmatprep.subr.bf16.mxu0 %v5810_v63  ;;  %v244_v63 = vpack.c.bf16 %v6573_v38, %v6573_v38  ;;  %4561 = vmatpush1.bf16.msra.mxu1 %v5890_v35 }
 0x571   :  { %4562 = vmatprep.subr.bf16.mxu1 %v5895_v54 }
 0x573   :  { %4281 = vmatpush1.bf16.msra.mxu0 %v5808_v37  ;;  %v5893_v37 = vld [vmem:[#allocation14 + $0xa0] ss:$8 sps:$4 sm:$0xff]  }
 0x574   :  { %4282 = vmatprep.subr.bf16.mxu0 %v5813_v39  ;;  %v5898_v39 = vld [vmem:[#allocation14 + $0xb4] ss:$8 sps:$4 sm:$0xff]   ;;  %4563 = vmatpush1.bf16.msra.mxu1 %v5893_v37 }
 0x575   :  { %4564 = vmatprep.subr.bf16.mxu1 %v5898_v39 }
 0x577   :  { %4283 = vmatpush1.bf16.msra.mxu0 %v5811_v41  ;;  %v5896_v41 = vld [vmem:[#allocation14 + $0xb0] ss:$8 sps:$4 sm:$0xff]  }
 0x578   :  { %4293 = vmatprep.subr.bf16.mxu0 %v5816_v43  ;;  %4565 = vmatpush1.bf16.msra.mxu1 %v5896_v41  ;;  %v5899_v43 = vld [vmem:[#allocation14 + $0xc0] ss:$8 sps:$4 sm:$0xff]  }
 0x579   :  { %4566 = vmatprep.subr.bf16.mxu1 %v5901_v42 }
 0x57a   :  { %4285 = vmatmul.mubr.bf16.vlgmr.msra.gmra.mrb[24].mxu0 %v242_v45  ;;  %v5904_v45 = vld [vmem:[#allocation14 + $0xd4] ss:$8 sps:$4 sm:$0xff]  }
 0x57b   :  { %4294 = vmatpush1.bf16.msra.mxu0 %v5814_v46  ;;  %4325 = vmatprep.mubr.bf16.mxu0 %v245_v47  ;;  %v5902_v46 = vld [vmem:[#allocation14 + $0xd0] ss:$8 sps:$4 sm:$0xff]   ;;  %v5907_v47 = vld [vmem:[#allocation14 + $0xe4] ss:$8 sps:$4 sm:$0xff]  }
 0x57c   :  { %4295 = vmatprep.subr.bf16.mxu0 %v5819_v48  ;;  %4567 = vmatpush1.bf16.msra.mxu1 %v5899_v43  ;;  %v5905_v48 = vld [vmem:[#allocation14 + $0xe0] ss:$8 sps:$4 sm:$0xff]  }
 0x57d   :  { %4568 = vmatprep.subr.bf16.mxu1 %v5904_v45 }
 0x57f   :  { %4296 = vmatpush1.bf16.msra.mxu0 %v5817_v53 }
 0x580   :  { %4297 = vmatprep.subr.bf16.mxu0 %v5822_v49  ;;  %4569 = vmatpush1.bf16.msra.mxu1 %v5902_v46 }
 0x581   :  { %4570 = vmatprep.subr.bf16.mxu1 %v5907_v47 }
 0x583   :  { %4298 = vmatpush1.bf16.msra.mxu0 %v5820_v55 }
 0x584   :  { %4299 = vmatprep.subr.bf16.mxu0 %v5825_v57  ;;  %4571 = vmatpush1.bf16.msra.mxu1 %v5905_v48 }
 0x587   :  { %4300 = vmatpush1.bf16.msra.mxu0 %v5823_v58  ;;  %v5910_v58 = vld [vmem:[#allocation14 + $0xf4] ss:$8 sps:$4 sm:$0xff]  }
 0x588   :  { %4301 = vmatprep.subr.bf16.mxu0 %v5828_v61  ;;  %v5235_v61 = vld [vmem:[#allocation11] ss:$0 sm:$0xff]  ;;  %4572 = vmatprep.subr.bf16.mxu1 %v5910_v58 }
 0x58b   :  { %4302 = vmatpush1.bf16.msra.mxu0 %v5826_v62 }
 0x58c   :  { %4303 = vmatprep.subr.bf16.mxu0 %v5831_v0  ;;  %v5908_v0 = vld [vmem:[#allocation14 + $0xf0] ss:$8 sps:$4 sm:$0xff]  }
 0x58d   :  { %4573 = vmatpush1.bf16.msra.mxu1 %v5908_v0 }
 0x58f   :  { %4304 = vmatpush1.bf16.msra.mxu0 %v5829_v40 }
 0x590   :  { %4305 = vmatprep.subr.bf16.mxu0 %v5834_v56  ;;  %v5911_v56 = vld [vmem:[#allocation17 + $0x40] sm:$0xff]  }
 0x591   :  { %5437 = vmatprep.subr.bf16.mxu1 %v5911_v56 }
 0x593   :  { %4306 = vmatpush1.bf16.msra.mxu0 %v5832_v1  ;;  %v3920_v1 = vld [vmem:[%s6613_s9] sm:$0x3]  ;;  %s6224_s9 = smov [#allocation20]  }
 0x594   :  { %4307 = vmatprep.subr.bf16.mxu0 %v5837_v2  ;;  %v3925_v2 = vrot.slane %v3920_v1, %v6514_v50  ;;  %v3929_v3 = vrot.slane %v3920_v1, %v6518_v51  ;;  %s4769_s25 = sshll.u32 %s6224_s9, 4  ;;  %s4770_s25 = int_to_ptr.vmem [resolvable:$true] %s4769_s25 }
 0x595   :  { %s6169_s26 = scalar_lea.vmem %s4770_s25, 32  ;;  %p6174_p5 = scmp.lt.s32.totalorder %s4770_s25, %s4770_s25 }
 0x596   :  { %p6170_p4 = scmp.ne.s32.totalorder %s4770_s25, %s6169_s26  ;;  %p6175_p6 = scmp.lt.s32.totalorder %s6169_s26, %s6169_s26 }
 0x597   :  { %4308 = vmatpush1.bf16.msra.mxu0 %v5835_v5 }
 0x598   :  { %4309 = vmatprep.subr.bf16.mxu0 %v5840_v6  ;;  %p6176_p7 = por %p6175_p6, %p6174_p5 }
 0x59a   :  { %p6177_p8 = pnand %p6176_p7, %p6170_p4 }
 0x59b   :  { %4310 = vmatpush1.bf16.msra.mxu0 %v5838_v9 }
 0x59c   :  { %4311 = vmatprep.subr.bf16.mxu0 %v5843_v8 }
 0x59f   :  { %4312 = vmatpush1.bf16.msra.mxu0 %v5841_v12  ;;  %v5913_v12 = vld [vmem:[#allocation17 + $0x48] sm:$0xff]  }
 0x5a0   :  { %4313 = vmatprep.subr.bf16.mxu0 %v5846_v13  ;;  %v5914_v13 = vld [vmem:[#allocation17 + $0x8] sm:$0xff]  }
 0x5a3   :  { %4314 = vmatpush1.bf16.msra.mxu0 %v5844_v15  ;;  %v5917_v15 = vld [vmem:[#allocation17 + $0x58] sm:$0xff]  }
 0x5a4   :  { %4315 = vmatprep.subr.bf16.mxu0 %v5849_v16  ;;  %v5918_v16 = vld [vmem:[#allocation17 + $0x18] sm:$0xff]  }
 0x5a7   :  { %4316 = vmatpush1.bf16.msra.mxu0 %v5847_v19  ;;  %v5921_v19 = vld [vmem:[#allocation17 + $0x68] sm:$0xff]  }
 0x5a8   :  { %4317 = vmatprep.subr.bf16.mxu0 %v5852_v59  ;;  %v5922_v59 = vld [vmem:[#allocation17 + $0x28] sm:$0xff]  }
 0x5ab   :  { %4318 = vmatpush1.bf16.msra.mxu0 %v5850_v22  ;;  %v5925_v22 = vld [vmem:[#allocation17 + $0x78] sm:$0xff]  }
 0x5ac   :  { %4319 = vmatprep.subr.bf16.mxu0 %v5855_v23  ;;  %v5926_v23 = vld [vmem:[#allocation17 + $0x38] sm:$0xff]  }
 0x5af   :  { %4320 = vmatpush1.bf16.msra.mxu0 %v5853_v26  ;;  %v4379_v26 = vrot.slane %v4370_v24, %v6518_v51 }
 0x5b0   :  { %4321 = vmatprep.subr.bf16.mxu0 %v5858_v28 }
 0x5b3   :  { %4322 = vmatpush1.bf16.msra.mxu0 %v5856_v30 }
 0x5b4   :  { %4323 = vmatprep.subr.bf16.mxu0 %v5861_v31 }
 0x5b7   :  { %4324 = vmatpush1.bf16.msra.mxu0 %v5859_v33 }
 0x5ba   :  { %4326 = vmatmul.mubr.bf16.vlgmr.msra.gmra.mrb[24].mxu0 %v244_v63 }
 0x60d   :  { %v5431_v38 = vpop.f32.mrb[20].mxu0 }
 0x60e   :  { %v5432_v53 = vpop.f32.mrb[21].mxu0 }
 0x60f   :  { %v5433_v49 = vadd.f32 %v5432_v53, %v5431_v38  ;;  %v5434_v55 = vpop.f32.mrb[22].mxu0 }
 0x610   :  { %v5435_v57 = vpop.f32.mrb[23].mxu0 }
 0x611   :  { %v3846_v62 = vadd.f32 %v5433_v49, %v6555_v60 }
 0x613   :  { %v3854_v40 = vadd.f32 %v5235_v61, %v3846_v62 }
 0x615   :  { %3855 = vst [vmem:[#allocation20] sm:$0x3] %v3854_v40 }
 0x68d   :  { %v4327_v4 = vpop.f32.mrb[24].mxu0 }
 0x68e   :  { %v5467_v34 = vadd.f32 %v4327_v4, %v3925_v2  ;;  %v4329_v5 = vpop.f32.mrb[25].mxu0 }
 0x68f   :  { %v5468_v6 = vadd.f32 %v4329_v5, %v3929_v3  ;;  %v4331_v60 = vpop.f32.mrb[26].mxu0 }
 0x690   :  { %v4334_v7 = vmax.f32 %v5467_v34, 0.0  ;;  %v4332_v27 = vpop.f32.mrb[27].mxu0 }
 0x691   :  { %v4335_v9 = vmax.f32 %v5468_v6, 0.0 }
 0x692   :  { %v4336_v11 = vpack.c.bf16 %v4334_v7, %v4334_v7 }
 0x693   :  { %v4337_v8 = vpack.c.bf16 %v4335_v9, %v4335_v9 }
 0x695   :  { %4574 = vmatprep.mubr.bf16.mxu1 %v4337_v8 }
 0x696   :  { %4575 = vmatmul.mubr.bf16.vlgmr.msra.gmra.mrb[24].mxu1 %v4336_v11 }
 0x697   :  { %5438 = vmatpush3.bf16.msra.mxu1 %v5912_v10 }
 0x698   :  { %5439 = vmatprep.subr.bf16.mxu1 %v5913_v12 }
 0x69b   :  { %5440 = vmatpush3.bf16.msra.mxu1 %v5914_v13 }
 0x69c   :  { %5441 = vmatprep.subr.bf16.mxu1 %v5915_v18 }
 0x69f   :  { %5442 = vmatpush3.bf16.msra.mxu1 %v5916_v14 }
 0x6a0   :  { %5443 = vmatprep.subr.bf16.mxu1 %v5917_v15 }
 0x6a3   :  { %5444 = vmatpush3.bf16.msra.mxu1 %v5918_v16 }
 0x6a4   :  { %5445 = vmatprep.subr.bf16.mxu1 %v5919_v17 }
 0x6a7   :  { %5446 = vmatpush3.bf16.msra.mxu1 %v5920_v36 }
 0x6a8   :  { %5447 = vmatprep.subr.bf16.mxu1 %v5921_v19 }
 0x6ab   :  { %5448 = vmatpush3.bf16.msra.mxu1 %v5922_v59 }
 0x6ac   :  { %5449 = vmatprep.subr.bf16.mxu1 %v5923_v20 }
 0x6af   :  { %5450 = vmatpush3.bf16.msra.mxu1 %v5924_v21 }
 0x6b0   :  { %5451 = vmatprep.subr.bf16.mxu1 %v5925_v22 }
 0x6b3   :  { %5452 = vmatpush3.bf16.msra.mxu1 %v5926_v23 }
 0x769   :  { %v4576_v28 = vpop.f32.mrb[24].mxu1 }
 0x76a   :  { %v4577_v29 = vadd.f32 %v4576_v28, %v4375_v25  ;;  %v4578_v44 = vpop.f32.mrb[25].mxu1 }
 0x76b   :  { %v4579_v30 = vadd.f32 %v4578_v44, %v4379_v26  ;;  %v4580_v31 = vpop.f32.mrb[26].mxu1 }
 0x76c   :  { %v4583_v32 = vmax.f32 %v4577_v29, 0.0  ;;  %v4581_v52 = vpop.f32.mrb[27].mxu1 }
 0x76d   :  { %v4584_v33 = vmax.f32 %v4579_v30, 0.0 }
 0x76e   :  { %v4585_v54 = vpack.c.bf16 %v4583_v32, %v4583_v32 }
 0x76f   :  { %v4586_v35 = vpack.c.bf16 %v4584_v33, %v4584_v33 }
 0x771   :  { %4754 = vmatprep.mubr.bf16.mxu1 %v4586_v35 }
 0x772   :  { %4755 = vmatmul.mubr.bf16.vlgmr.msra.gmra.mrb[28].mxu1 %v4585_v54 }
 0x773   :  { %6180 = shalt.err (!%p6177_p8)
}
 0x774   :  { %s6181_s4 = scalar_lea.hbm %s6618_s14, 32 }
 0x775   :  { %p6182_p9 = scmp.ne.s32.totalorder %s6618_s14, %s6181_s4  ;;  %p6185_p10 = scmp.lt.u32.totalorder %s6181_s4, %s6618_s14 }
 0x777   :  { %p6187_p11 = pnand %p6185_p10, %p6182_p9 }
 0x779   :  { %6190 = shalt.err (!%p6187_p11)
}
 0x77a   :  { %4772 = dma.vmem_to_hbm [thread:$0]  %s4770_s25, 32, %s6618_s14, [#allocation4]   ;;  %v5332_v51 = vld [vmem:[#allocation19] ss:$0 sm:$0xff] }
 0x845   :  { %v5453_v50 = vpop.f32.mrb[28].mxu1 }
 0x846   :  { %v5454_v63 = vpop.f32.mrb[29].mxu1 }
 0x847   :  { %v5455_v37 = vadd.f32 %v5454_v63, %v5453_v50  ;;  %v5456_v39 = vpop.f32.mrb[30].mxu1 }
 0x848   :  { %v5457_v41 = vpop.f32.mrb[31].mxu1 }
 0x849   :  { %v4757_v42 = vadd.f32 %v5455_v37, %v5332_v51 }
 0x84b   :  { %4762 = vst [vmem:[%s6619_s15] sm:$0x3] %v4757_v42 }
 0x84c   :  { %6203 = dma.done.wait [#allocation4], 32  }
 0x84d   :  { %6204 = vsyncadd [#allocation4], 4294967264 }
 0x84e   :  { %4780 = vsyncpa [#allocation3], 1 }
 0x84f   :  { %4781 = vsyncpa [#allocation6], 1 }
 0x850   :  { %4782 = vsyncpa [#allocation9], 1 }
 0x851   :  { %4783 = vsyncpa [#allocation12], 1 }
 0x852   :  { %4784 = vsyncpa [#allocation15], 1 }
 0x853   :  { %4785 = vsyncpa [#allocation18], 1 }
 0x854   :  { %4786 = vsyncpa [#allocation4], 1 }

</bundles_post_ra>
